<compile_context>
chip_gen: v6e
topology: v6e:2x2x1
jax: 0.10.0
libtpu: 0.0.40
codegen_flags: <defaults>
</compile_context>

<pallas_src>
import math
import jax
import jax.numpy as jnp
from jax import lax
from jax.experimental import pallas as pl
from jax.experimental.pallas import tpu as pltpu

CHANNELS = 20      # hard-coded in the PyTorch forward (20 landmark heat maps)
KSIZE = 21         # forward uses padding=10 -> kernel_size 21 gives 'same' output
SIGMA = 3.0        # deterministic synthetic sigma
PAD = 10
H = W = 224        # hard-coded spatial size in the PyTorch forward
H_TILE = 112       # 2 row-tiles per batch element; multiple of 8 (sublane aligned)

_INV_SIGMA = 1.0 / SIGMA


def _heatmap_kernel(lm_ref, o_ref):
    # lm_ref: (1, 2, C, 1)   packed landmark coords for one batch element (row / col planes)
    # o_ref : (1, C, TH, W)  one H-tile of the normalized Gaussian heat maps
    C = o_ref.shape[1]
    TH = o_ref.shape[2]
    Wb = o_ref.shape[3]
    h0 = pl.program_id(1) * TH                  # first global row of this tile

    xs = lm_ref[0, 0]                           # (C, 1) row coordinate (H axis)
    ys = lm_ref[0, 1]                           # (C, 1) col coordinate (W axis)
    flag = jnp.minimum(xs, ys) != -1.0          # (C, 1) valid-landmark mask (spec: min != -1)

    # Truncate toward zero, matching `.astype(np.int)` in the reference scatter.
    xi = xs.astype(jnp.int32).astype(jnp.float32)
    yi = ys.astype(jnp.int32).astype(jnp.float32)

    # Analytic per-channel max of the truncated separable Gaussian over the FULL 224x224 map
    # (value at the in-range grid point closest to the centre).  Exact because the plane is a
    # non-negative separable outer product; keeps the H-split exact with no global reduction.
    dx0 = jnp.clip(xi, 0.0, H - 1.0) - xi
    dy0 = jnp.clip(yi, 0.0, W - 1.0) - yi
    rmax = jnp.where(jnp.abs(dx0) <= PAD, jnp.exp(-0.5 * (dx0 * _INV_SIGMA) ** 2), 0.0)
    cmax = jnp.where(jnp.abs(dy0) <= PAD, jnp.exp(-0.5 * (dy0 * _INV_SIGMA) ** 2), 0.0)
    m = rmax * cmax                             # (C, 1) un-normalized plane maximum
    valid = jnp.logical_and(flag, m > 0.0)      # invalid / fully-out-of-support -> zero plane
    denom = jnp.where(valid, m, 1.0)            # guard /0
    scale = jnp.where(valid, 1.0 / denom, 0.0)  # (C, 1)

    # Lane-dense 1D Gaussians: spatial axis on the 128-lane axis (~3 / ~6 vregs total),
    # so the iota/sub/exp/where chain is a handful of vector ops + EUP pushes.
    ih = (lax.broadcasted_iota(jnp.int32, (C, TH), 1) + h0).astype(jnp.float32)   # (C, TH)
    iw = lax.broadcasted_iota(jnp.int32, (C, Wb), 1).astype(jnp.float32)          # (C, W)
    dh = ih - xi
    dw = iw - yi
    gh = jnp.where(jnp.abs(dh) <= PAD, jnp.exp(-0.5 * (dh * _INV_SIGMA) ** 2), 0.0)  # (C, TH)
    gw = jnp.where(jnp.abs(dw) <= PAD, jnp.exp(-0.5 * (dw * _INV_SIGMA) ** 2), 0.0)  # (C, W)
    gw = gw * scale       # fold normalization + flag into the small column factor

    # Separable outer product, broadcast straight into the output tile (VPU broadcast-mul;
    # a K=1 contraction would leave the MXU idle, so deliberately NOT jnp.dot).
    o_ref[0] = gh[:, :, None] * gw[:, None, :]          # (C, TH, W)


def gaussian_smoothing_forward(landmark):
    """landmark: (B, 20, 2) float32, integer-valued coords; invalid landmarks are -1."""
    landmark = landmark.astype(jnp.float32)
    B, C, _ = landmark.shape
    # Pack coords as (B, 2, C, 1): the kernel slices per-axis coords directly as (C, 1)
    # sublane vectors (tiny array, negligible cost).
    lm_packed = jnp.transpose(landmark, (0, 2, 1))[..., None]

    n_h = H // H_TILE
    return pl.pallas_call(
        _heatmap_kernel,
        out_shape=jax.ShapeDtypeStruct((B, C, H, W), jnp.float32),
        grid_spec=pltpu.PrefetchScalarGridSpec(
            num_scalar_prefetch=0,
            grid=(B, n_h),
            in_specs=[pl.BlockSpec((1, 2, C, 1), lambda b, h: (b, 0, 0, 0))],
            out_specs=pl.BlockSpec((1, C, H_TILE, W), lambda b, h: (b, 0, h, 0)),
        ),
        compiler_params=pltpu.CompilerParams(
            dimension_semantics=("parallel", "parallel")),
    )(lm_packed)


def _reference(landmark):
    """Pure-JAX reference: one-hot scatter + true depthwise conv + max normalization."""
    landmark = landmark.astype(jnp.float32)
    B, C, _ = landmark.shape
    flag = jnp.min(landmark, axis=2) != -1
    xi = landmark[..., 0].astype(jnp.int32)
    yi = landmark[..., 1].astype(jnp.int32)
    row = jax.nn.one_hot(xi, H, dtype=jnp.float32)            # (B, C, H)
    col = jax.nn.one_hot(yi, W, dtype=jnp.float32)            # (B, C, W)
    maps = row[..., :, None] * col[..., None, :] * flag[..., None, None].astype(jnp.float32)

    x1 = jnp.arange(KSIZE, dtype=jnp.float32) - (KSIZE - 1) / 2.0
    g1 = (1.0 / (SIGMA * math.sqrt(2.0 * math.pi))) * jnp.exp(-0.5 * (x1 / SIGMA) ** 2)
    k2d = jnp.outer(g1, g1)
    k2d = k2d / jnp.sum(k2d)
    w = jnp.tile(k2d[None, None], (C, 1, 1, 1))               # (C, 1, 21, 21)
    smoothed = lax.conv_general_dilated(
        maps, w, window_strides=(1, 1), padding=[(PAD, PAD), (PAD, PAD)],
        dimension_numbers=("NCHW", "OIHW", "NCHW"), feature_group_count=C,
        precision=lax.Precision.HIGHEST)

    m = jnp.max(smoothed.reshape(B, C, -1), axis=2)
    denom = jnp.where(flag, m, 1.0)
    return jnp.where(flag[..., None, None], smoothed / denom[..., None, None], smoothed)


if __name__ == "__main__":
    key = jax.random.PRNGKey(0)
    B = 2
    k1, k2 = jax.random.split(key)
    coords = jax.random.randint(k1, (B, CHANNELS, 2), 0, H).astype(jnp.float32)
    # mark a few landmarks as invalid (-1), like real data would
    invalid = jax.random.bernoulli(k2, 0.2, (B, CHANNELS))
    landmark = jnp.where(invalid[..., None], -1.0, coords)

    out = gaussian_smoothing_forward(landmark)
    out = jax.block_until_ready(out)
    assert out.shape == (B, CHANNELS, H, W)

    ref = _reference(landmark)
    max_err = float(jnp.max(jnp.abs(out - ref)))
    assert max_err < 1e-4, f"mismatch vs depthwise-conv reference: {max_err}"

    print("KERNEL_OK")
</pallas_src>

<mosaic_0001>
module attributes {stable_mosaic.version = 11 : i64} {
  func.func @_heatmap_kernel(%arg0: i32, %arg1: i32, %arg2: memref<1x2x20x1xf32, #tpu.memory_space<vmem>>, %arg3: memref<1x20x112x224xf32, #tpu.memory_space<vmem>>) attributes {dimension_semantics = [#tpu.dimension_semantics<parallel>, #tpu.dimension_semantics<parallel>], iteration_bounds = array<i64: 2, 2>, scalar_prefetch = 0 : i64, scratch_operands = 0 : i64, tpu.core_type = #tpu.core_type<tc>, window_params = [{transform_indices = @transform_0, window_bounds = array<i64: 1, 2, 20, 1>}, {transform_indices = @transform_1, window_bounds = array<i64: 1, 20, 112, 224>}]} {
    %c112_i32 = arith.constant 112 : i32
    %0 = arith.muli %arg1, %c112_i32 : i32
    %c0 = arith.constant 0 : index
    %c0_0 = arith.constant 0 : index
    %c0_1 = arith.constant 0 : index
    %c0_2 = arith.constant 0 : index
    %1 = vector.load %arg2[%c0, %c0_0, %c0_1, %c0_2] : memref<1x2x20x1xf32, #tpu.memory_space<vmem>>, vector<1x1x20x1xf32>
    %2 = vector.shape_cast %1 : vector<1x1x20x1xf32> to vector<20x1xf32>
    %c0_3 = arith.constant 0 : index
    %c1 = arith.constant 1 : index
    %c0_4 = arith.constant 0 : index
    %c0_5 = arith.constant 0 : index
    %3 = vector.load %arg2[%c0_3, %c1, %c0_4, %c0_5] : memref<1x2x20x1xf32, #tpu.memory_space<vmem>>, vector<1x1x20x1xf32>
    %4 = vector.shape_cast %3 : vector<1x1x20x1xf32> to vector<20x1xf32>
    %5 = arith.minimumf %2, %4 : vector<20x1xf32>
    %cst = arith.constant -1.000000e+00 : f32
    %6 = vector.broadcast %cst : f32 to vector<20x1xf32>
    %7 = arith.cmpf one, %5, %6 : vector<20x1xf32>
    %8 = arith.fptosi %2 : vector<20x1xf32> to vector<20x1xi32>
    %9 = arith.sitofp %8 : vector<20x1xi32> to vector<20x1xf32>
    %10 = arith.fptosi %4 : vector<20x1xf32> to vector<20x1xi32>
    %11 = arith.sitofp %10 : vector<20x1xi32> to vector<20x1xf32>
    %cst_6 = arith.constant 0.000000e+00 : f32
    %cst_7 = arith.constant 2.230000e+02 : f32
    %12 = vector.broadcast %cst_6 : f32 to vector<20x1xf32>
    %13 = arith.maximumf %12, %9 : vector<20x1xf32>
    %14 = vector.broadcast %cst_7 : f32 to vector<20x1xf32>
    %15 = arith.minimumf %14, %13 : vector<20x1xf32>
    %16 = arith.subf %15, %9 : vector<20x1xf32>
    %cst_8 = arith.constant 0.000000e+00 : f32
    %cst_9 = arith.constant 2.230000e+02 : f32
    %17 = vector.broadcast %cst_8 : f32 to vector<20x1xf32>
    %18 = arith.maximumf %17, %11 : vector<20x1xf32>
    %19 = vector.broadcast %cst_9 : f32 to vector<20x1xf32>
    %20 = arith.minimumf %19, %18 : vector<20x1xf32>
    %21 = arith.subf %20, %11 : vector<20x1xf32>
    %22 = math.absf %16 : vector<20x1xf32>
    %cst_10 = arith.constant 1.000000e+01 : f32
    %23 = vector.broadcast %cst_10 : f32 to vector<20x1xf32>
    %24 = arith.cmpf ole, %22, %23 : vector<20x1xf32>
    %cst_11 = arith.constant 0.333333343 : f32
    %25 = vector.broadcast %cst_11 : f32 to vector<20x1xf32>
    %26 = arith.mulf %16, %25 : vector<20x1xf32>
    %27 = arith.mulf %26, %26 : vector<20x1xf32>
    %cst_12 = arith.constant -5.000000e-01 : f32
    %28 = vector.broadcast %cst_12 : f32 to vector<20x1xf32>
    %29 = arith.mulf %28, %27 : vector<20x1xf32>
    %30 = math.exp %29 : vector<20x1xf32>
    %cst_13 = arith.constant 0.000000e+00 : f32
    %31 = vector.broadcast %cst_13 : f32 to vector<20x1xf32>
    %32 = arith.select %24, %30, %31 : vector<20x1xi1>, vector<20x1xf32>
    %33 = math.absf %21 : vector<20x1xf32>
    %cst_14 = arith.constant 1.000000e+01 : f32
    %34 = vector.broadcast %cst_14 : f32 to vector<20x1xf32>
    %35 = arith.cmpf ole, %33, %34 : vector<20x1xf32>
    %cst_15 = arith.constant 0.333333343 : f32
    %36 = vector.broadcast %cst_15 : f32 to vector<20x1xf32>
    %37 = arith.mulf %21, %36 : vector<20x1xf32>
    %38 = arith.mulf %37, %37 : vector<20x1xf32>
    %cst_16 = arith.constant -5.000000e-01 : f32
    %39 = vector.broadcast %cst_16 : f32 to vector<20x1xf32>
    %40 = arith.mulf %39, %38 : vector<20x1xf32>
    %41 = math.exp %40 : vector<20x1xf32>
    %cst_17 = arith.constant 0.000000e+00 : f32
    %42 = vector.broadcast %cst_17 : f32 to vector<20x1xf32>
    %43 = arith.select %35, %41, %42 : vector<20x1xi1>, vector<20x1xf32>
    %44 = arith.mulf %32, %43 : vector<20x1xf32>
    %cst_18 = arith.constant 0.000000e+00 : f32
    %45 = vector.broadcast %cst_18 : f32 to vector<20x1xf32>
    %46 = arith.cmpf ogt, %44, %45 : vector<20x1xf32>
    %47 = arith.andi %7, %46 : vector<20x1xi1>
    %cst_19 = arith.constant 1.000000e+00 : f32
    %48 = vector.broadcast %cst_19 : f32 to vector<20x1xf32>
    %49 = arith.select %47, %44, %48 : vector<20x1xi1>, vector<20x1xf32>
    %cst_20 = arith.constant 1.000000e+00 : f32
    %50 = vector.broadcast %cst_20 : f32 to vector<20x1xf32>
    %51 = arith.divf %50, %49 : vector<20x1xf32>
    %cst_21 = arith.constant 0.000000e+00 : f32
    %52 = vector.broadcast %cst_21 : f32 to vector<20x1xf32>
    %53 = arith.select %47, %51, %52 : vector<20x1xi1>, vector<20x1xf32>
    %54 = tpu.iota {dimensions = array<i32: 1>} : vector<20x112xi32>
    %55 = vector.broadcast %0 : i32 to vector<20x112xi32>
    %56 = arith.addi %54, %55 : vector<20x112xi32>
    %57 = arith.sitofp %56 : vector<20x112xi32> to vector<20x112xf32>
    %58 = tpu.iota {dimensions = array<i32: 1>} : vector<20x224xi32>
    %59 = arith.sitofp %58 : vector<20x224xi32> to vector<20x224xf32>
    %60 = vector.broadcast %9 : vector<20x1xf32> to vector<20x112xf32>
    %61 = arith.subf %57, %60 : vector<20x112xf32>
    %62 = vector.broadcast %11 : vector<20x1xf32> to vector<20x224xf32>
    %63 = arith.subf %59, %62 : vector<20x224xf32>
    %64 = math.absf %61 : vector<20x112xf32>
    %cst_22 = arith.constant 1.000000e+01 : f32
    %65 = vector.broadcast %cst_22 : f32 to vector<20x112xf32>
    %66 = arith.cmpf ole, %64, %65 : vector<20x112xf32>
    %cst_23 = arith.constant 0.333333343 : f32
    %67 = vector.broadcast %cst_23 : f32 to vector<20x112xf32>
    %68 = arith.mulf %61, %67 : vector<20x112xf32>
    %69 = arith.mulf %68, %68 : vector<20x112xf32>
    %cst_24 = arith.constant -5.000000e-01 : f32
    %70 = vector.broadcast %cst_24 : f32 to vector<20x112xf32>
    %71 = arith.mulf %70, %69 : vector<20x112xf32>
    %72 = math.exp %71 : vector<20x112xf32>
    %cst_25 = arith.constant 0.000000e+00 : f32
    %73 = vector.broadcast %cst_25 : f32 to vector<20x112xf32>
    %74 = arith.select %66, %72, %73 : vector<20x112xi1>, vector<20x112xf32>
    %75 = math.absf %63 : vector<20x224xf32>
    %cst_26 = arith.constant 1.000000e+01 : f32
    %76 = vector.broadcast %cst_26 : f32 to vector<20x224xf32>
    %77 = arith.cmpf ole, %75, %76 : vector<20x224xf32>
    %cst_27 = arith.constant 0.333333343 : f32
    %78 = vector.broadcast %cst_27 : f32 to vector<20x224xf32>
    %79 = arith.mulf %63, %78 : vector<20x224xf32>
    %80 = arith.mulf %79, %79 : vector<20x224xf32>
    %cst_28 = arith.constant -5.000000e-01 : f32
    %81 = vector.broadcast %cst_28 : f32 to vector<20x224xf32>
    %82 = arith.mulf %81, %80 : vector<20x224xf32>
    %83 = math.exp %82 : vector<20x224xf32>
    %cst_29 = arith.constant 0.000000e+00 : f32
    %84 = vector.broadcast %cst_29 : f32 to vector<20x224xf32>
    %85 = arith.select %77, %83, %84 : vector<20x224xi1>, vector<20x224xf32>
    %86 = vector.broadcast %53 : vector<20x1xf32> to vector<20x224xf32>
    %87 = arith.mulf %85, %86 : vector<20x224xf32>
    %88 = vector.shape_cast %74 : vector<20x112xf32> to vector<20x112x1xf32>
    %89 = vector.shape_cast %87 : vector<20x224xf32> to vector<20x1x224xf32>
    %90 = vector.broadcast %88 : vector<20x112x1xf32> to vector<20x112x224xf32>
    %91 = vector.broadcast %89 : vector<20x1x224xf32> to vector<20x112x224xf32>
    %92 = arith.mulf %90, %91 : vector<20x112x224xf32>
    %c0_30 = arith.constant 0 : index
    %c0_31 = arith.constant 0 : index
    %c0_32 = arith.constant 0 : index
    %c0_33 = arith.constant 0 : index
    %93 = vector.load %arg3[%c0_30, %c0_31, %c0_32, %c0_33] : memref<1x20x112x224xf32, #tpu.memory_space<vmem>>, vector<1x20x112x224xf32>
    %94 = vector.shape_cast %93 : vector<1x20x112x224xf32> to vector<20x112x224xf32>
    %95 = vector.shape_cast %92 : vector<20x112x224xf32> to vector<1x20x112x224xf32>
    tpu.vector_store %arg3[%c0_30, %c0_31, %c0_32, %c0_33], %95 {strides = array<i32>} : memref<1x20x112x224xf32, #tpu.memory_space<vmem>>, vector<1x20x112x224xf32>,
    return
  }
  func.func @transform_0(%arg0: i32, %arg1: i32) -> (i32, i32, i32, i32) {
    %c0_i32 = arith.constant 0 : i32
    %c0_i32_0 = arith.constant 0 : i32
    %c0_i32_1 = arith.constant 0 : i32
    %c0_i32_2 = arith.constant 0 : i32
    return %arg0, %c0_i32, %c0_i32_0, %c0_i32_1 : i32, i32, i32, i32
  }
  func.func @transform_1(%arg0: i32, %arg1: i32) -> (i32, i32, i32, i32) {
    %c0_i32 = arith.constant 0 : i32
    %c0_i32_0 = arith.constant 0 : i32
    %c0_i32_1 = arith.constant 0 : i32
    return %arg0, %c0_i32, %arg1, %c0_i32_0 : i32, i32, i32, i32
  }
}

</mosaic_0001>

<bundles_post_ra>
// kernel: tpu_custom_call.1
= control target key start
LH: loop header
LB: loop body
LE: loop exit
PB: predicated region body
PF: predicated region fallthrough
CT: control target
= control target key end

     0   :  { %6 = vsyncpa [#allocation3], 0  ;;  %s5484_s0 = inlined_call_operand.vmem [shape: f32[2,2,20,1], index: 0, kind: input, shape index: {}]   ;;  %s5485_s1 = inlined_call_operand.hbm [shape: f32[2,20,224,224], index: 1, kind: output, shape index: {}]  }
   0x1   :  { %8 = vsyncpa [#allocation3 + $0x1], 0  ;;  %s3371_s6 = smov 0   ;;  %s3373_s7 = smov 0  }
   0x2   :  { %s3375_s8 = smov 0   ;;  %s3377_s9 = smov 0  }
   0x3   :  { %s3379_s10 = smov 0   ;;  %s3381_s11 = smov 0  }
   0x4   :  { %s3383_s12 = smov 0   ;;  %s3385_s13 = smov 0  }
   0x5 LB: > { %s3131_s14 = sadd.s32 4294967295, %s3350_s13   ;;  %s3132_s15 = sadd.s32 4294967294, %s3350_s13   ;;  %s3350_s13 = sphi %s3385_s13, %s14_s13   ;;  %s3346_s12 = sphi %s3383_s12, %s5515_s12   ;;  %s3342_s11 = sphi %s3381_s11, %s5514_s11   ;;  %s3338_s10 = sphi %s3379_s10, %s5513_s10   ;;  %s3334_s9 = sphi %s3377_s9, %s5512_s9   ;;  %s3330_s8 = sphi %s3375_s8, %s5511_s8   ;;  %s3326_s7 = sphi %s3373_s7, %s5510_s7   ;;  %s3322_s6 = sphi %s3371_s6, %s5509_s6  }
   0x6   : > { %s23_s16 = sadd.s32 1, %s3342_s11  ;;  %s26_s17 = sadd.s32 1, %s3346_s12 }
   0x7   : > { %p24_p0 = scmp.ge.s32.totalorder %s23_s16, 2  ;;  %p71_p1 = scmp.ne.s32.totalorder %s3330_s8, %s3326_s7 }
   0x8   : > { %p72_p2 = scmp.eq.s32.totalorder %s3131_s14, 3  ;;  %p77_p5 = scmp.ne.s32.totalorder %s3326_s7, %s3322_s6 }
   0x9   : > { %s5517_s16 = smov (%p24_p0, %s23_s16), 0  ;;  %s5519_s17 = smov (!%p24_p0, %s26_s17), %s3346_s12 }
   0xa   : > { %s57_s18 = ssub.s32 %s3342_s11, %s5517_s16  ;;  %p3422_p3 = por %p72_p2, %p71_p1 }
   0xb   : > { %p28_p4 = scmp.ge.s32.totalorder %s5519_s17, 2  ;;  %p78_p6 = scmp.eq.s32.totalorder %s3132_s15, 3 }
   0xc   : > { %p3135_p7 = scmp.ge.s32.totalorder %s3350_s13, 1  ;;  %p104_p9 = scmp.lt.s32.totalorder %s3350_s13, 5 }
   0xd   : > { %s5521_s17 = smov (%p28_p4, %s5519_s17), 0  ;;  %p3431_p8 = por %p78_p6, %p77_p5 }
   0xe   : > { %s56_s21 = ssub.s32 %s3346_s12, %s5521_s17  ;;  %s61_s22 = sadd.s32 1, %s3330_s8 }
   0xf   : > { %s58_s23 = sor.u32 %s57_s18, %s56_s21  ;;  %p105_p10 = pnand %p3135_p7, %p104_p9 }
  0x10   : > { %p59_p11 = scmp.eq.s32.totalorder %s58_s23, 0 }
  0x11   : > { %108 = sbr.rel (%p105_p10) target bundleno = 873 (0x369), region = 24 }
  0x12   : > { %s3440_s24 = scalar_select %p59_p11, %s3330_s8, %s61_s22  }
  0x16   : > { %p124_p12 = scmp.lt.s32.totalorder %s3338_s10, 1  ;;  %v3352_v0 = vmov 0   ;;  %s130_s30 = smul.u32 112, %s3334_s9 }
  0x17   : > { %3246 = vset.pattern.permute.xlu0 %v3352_v0  ;;  %3247 = vset.pattern.permute.xlu1 %v3352_v0  ;;  %s121_s2 = sand.u32 1, %s3326_s7  }
  0x18   : > { %s125_s25 = scalar_select %p124_p12, %s3338_s10, 1 }
  0x19   : > { %s3145_s3 = smul.u32 4480, %s121_s2  ;;  %s3016_s5 = scalar_lea.sflag [#allocation3], %s121_s2 }
  0x1a   : > { %s3146_s26 = smul.u32 48, %s125_s25 }
  0x1b   : > { %s3815_s4 = scalar_lea.vmem [#allocation2], %s3145_s3 }
  0x1c   : > { %s128_s29 = scalar_lea.vmem %s5484_s0, %s3146_s26 }
  0x1d   : > { %v3447_v1 = vld [vmem:[%s128_s29] sm:$0xff]  ;;  %v3449_v2 = vld [vmem:[%s128_s29 + $0x8] sm:$0xff]  ;;  %v3456_v7 = vld [vmem:[%s128_s29 + $0x10] sm:$0xf] }
  0x1e   : > { %v3451_v3 = vld [vmem:[%s128_s29 + $0x20] sm:$0xff]  ;;  %v3147_v4 = vtrunc.f32 %v3447_v1  ;;  %v3149_v5 = vtrunc.f32 %v3449_v2  ;;  %v3458_v8 = vld [vmem:[%s128_s29 + $0x18] sm:$0xff]  ;;  %v3460_v9 = vld [vmem:[%s128_s29 + $0x28] sm:$0xf]  ;;  %v3151_v10 = vtrunc.f32 %v3456_v7 }
  0x1f   : > { %v3155_v6 = vtrunc.f32 %v3451_v3  ;;  %v3153_v11 = vtrunc.f32 %v3458_v8  ;;  %v3157_v12 = vtrunc.f32 %v3460_v9 }
  0x20   : > { %v3148_v13 = vcvt.f32.s32 %v3147_v4  ;;  %v3150_v14 = vcvt.f32.s32 %v3149_v5  ;;  %v3152_v16 = vcvt.f32.s32 %v3151_v10 }
  0x21   : > { %v3156_v15 = vcvt.f32.s32 %v3155_v6  ;;  %v3154_v17 = vcvt.f32.s32 %v3153_v11  ;;  %v3158_v18 = vcvt.f32.s32 %v3157_v12 }
  0x22   : > { %v147_v19 = vcvt.s32.f32 %v3148_v13  ;;  %v148_v20 = vcvt.s32.f32 %v3150_v14  ;;  %v149_v22 = vcvt.s32.f32 %v3152_v16 }
  0x23   : > { %v154_v21 = vcvt.s32.f32 %v3156_v15  ;;  %v153_v23 = vcvt.s32.f32 %v3154_v17  ;;  %v155_v24 = vcvt.s32.f32 %v3158_v18  ;;  %v139_v17 = vmin.f32 %v3449_v2, %v3451_v3 }
  0x24   : > { %253 = vperm.xlu0 %3246, %v147_v19   ;;  %v156_v25 = vmax.f32 %v147_v19, 0.0  ;;  %v157_v26 = vmax.f32 %v148_v20, 0.0  ;;  %263 = vperm.xlu1 %3247, %v149_v22   ;;  %v158_v28 = vmax.f32 %v149_v22, 0.0 }
  0x25   : > { %v166_v27 = vmax.f32 %v154_v21, 0.0  ;;  %v165_v29 = vmax.f32 %v153_v23, 0.0  ;;  %v167_v30 = vmax.f32 %v155_v24, 0.0  ;;  %vm142_vm6 = vcmp.ne.f32.partialorder %v139_v17, -1.0 }
  0x26   : > { %v159_v31 = vmin.f32 %v156_v25, 223.0  ;;  %v160_v32 = vmin.f32 %v157_v26, 223.0  ;;  %v161_v34 = vmin.f32 %v158_v28, 223.0  ;;  %v140_v25 = vmin.f32 %v3456_v7, %v3460_v9 }
  0x27   : > { %v169_v33 = vmin.f32 %v166_v27, 223.0  ;;  %v168_v35 = vmin.f32 %v165_v29, 223.0  ;;  %v170_v36 = vmin.f32 %v167_v30, 223.0 }
  0x28   : > { %v162_v37 = vsub.f32 %v159_v31, %v147_v19  ;;  %v163_v38 = vsub.f32 %v160_v32, %v148_v20  ;;  %258 = vperm.xlu0 %3246, %v148_v20   ;;  %v164_v40 = vsub.f32 %v161_v34, %v149_v22  ;;  %271 = vperm.xlu1 %3247, %v153_v23   ;;  %vm143_vm10 = vcmp.ne.f32.partialorder %v140_v25, -1.0 }
  0x29   : > { %v172_v39 = vsub.f32 %v169_v33, %v154_v21  ;;  %v171_v41 = vsub.f32 %v168_v35, %v153_v23  ;;  %v173_v42 = vsub.f32 %v170_v36, %v155_v24  ;;  %v138_v23 = vmin.f32 %v3447_v1, %v3458_v8 }
  0x2a   : > { %v180_v43 = vmul.f32 0.33333334, %v162_v37  ;;  %v181_v44 = vmul.f32 0.33333334, %v163_v38  ;;  %v182_v46 = vmul.f32 0.33333334, %v164_v40 }
  0x2b   : > { %v205_v45 = vmul.f32 0.33333334, %v172_v39  ;;  %v204_v47 = vmul.f32 0.33333334, %v171_v41  ;;  %v206_v48 = vmul.f32 0.33333334, %v173_v42 }
  0x2c   : > { %v183_v49 = vmul.f32 %v180_v43, %v180_v43  ;;  %v184_v50 = vmul.f32 %v181_v44, %v181_v44  ;;  %276 = vperm.xlu0 %3246, %v154_v21   ;;  %v185_v52 = vmul.f32 %v182_v46, %v182_v46  ;;  %281 = vperm.xlu1 %3247, %v155_v24   ;;  %v175_v6 = vand.u32 2147483647, %v163_v38 }
  0x2d   : > { %v208_v51 = vmul.f32 %v205_v45, %v205_v45  ;;  %v207_v53 = vmul.f32 %v204_v47, %v204_v47  ;;  %v209_v54 = vmul.f32 %v206_v48, %v206_v48  ;;  %v199_v10 = vand.u32 2147483647, %v172_v39 }
  0x2e   : > { %v186_v55 = vmul.f32 -0.5, %v183_v49  ;;  %v187_v56 = vmul.f32 -0.5, %v184_v50  ;;  %v188_v58 = vmul.f32 -0.5, %v185_v52  ;;  %v174_v11 = vand.u32 2147483647, %v162_v37 }
  0x2f   : > { %v211_v57 = vmul.f32 -0.5, %v208_v51  ;;  %v210_v59 = vmul.f32 -0.5, %v207_v53  ;;  %v212_v60 = vmul.f32 -0.5, %v209_v54  ;;  %v176_v12 = vand.u32 2147483647, %v164_v40 }
  0x30   : > { %v189_v61 = vmul.f32 1.442695, %v186_v55  ;;  %v191_v62 = vmul.f32 1.442695, %v187_v56  ;;  %v193_v0 = vmul.f32 1.442695, %v188_v58  ;;  %v243_v40 = vlaneseq }
  0x31   : > { %v215_v63 = vmul.f32 1.442695, %v211_v57  ;;  %v213_v4 = vmul.f32 1.442695, %v210_v59  ;;  %v217_v5 = vmul.f32 1.442695, %v212_v60 }
  0x32   : > { %3248 = vpow2.f32 %v189_v61  ;;  %v198_v13 = vand.u32 2147483647, %v171_v41  ;;  %vm3465_vm0 = vcmp.le.f32.partialorder %v175_v6, 10.0  ;;  %v200_v15 = vand.u32 2147483647, %v173_v42 }
  0x33   : > { %3250 = vpow2.f32 %v191_v62  ;;  %vm202_vm1 = vcmp.le.f32.partialorder %v199_v10, 10.0  ;;  %vm3471_vm2 = vcmp.le.f32.partialorder %v174_v11, 10.0  ;;  %vm3475_vm3 = vcmp.le.f32.partialorder %v176_v12, 10.0 }
  0x34   : > { %3252 = vpow2.f32 %v215_v63  ;;  %vm201_vm4 = vcmp.le.f32.partialorder %v198_v13, 10.0  ;;  %vm203_vm5 = vcmp.le.f32.partialorder %v200_v15, 10.0  ;;  %vm141_vm8 = vcmp.ne.f32.partialorder %v138_v23, -1.0 }
  0x35   : > { %3254 = vpow2.f32 %v193_v0  ;;  %v244_v41 = vand.u32 127, %v243_v40  ;;  %v245_v42 = vstv %s130_s30 }
  0x36   : > { %3256 = vpow2.f32 %v213_v4 }
  0x37   : > { %3258 = vpow2.f32 %v217_v5  ;;  %v246_v43 = vadd.s32 %v245_v42, %v244_v41  ;;  %v248_v48 = vadd.s32 128, %v244_v41  ;;  %v249_v55 = vcvt.s32.f32 %v244_v41 }
  0x39   : > { %v247_v44 = vcvt.s32.f32 %v246_v43  ;;  %v250_v56 = vcvt.s32.f32 %v248_v48 }
  0x3f   : > { %v3249_v16 = vpop.eup %3248 }
  0x40   : > { %v3251_v19 = vpop.eup %3250  ;;  %v195_v3 = vsel %vm3471_vm2, %v3249_v16, 0.0 }
  0x41   : > { %v3253_v21 = vpop.eup %3252  ;;  %v196_v22 = vsel %vm3465_vm0, %v3251_v19, 0.0  ;;  %v3510_v19 = vshrl.u32 %v243_v40, 7 }
  0x42   : > { %v3255_v24 = vpop.eup %3254  ;;  %v220_v2 = vsel %vm202_vm1, %v3253_v21, 0.0 }
  0x43   : > { %v3257_v26 = vpop.eup %3256  ;;  %v223_v27 = vmul.f32 %v220_v2, %v196_v22  ;;  %v197_v28 = vsel %vm3475_vm3, %v3255_v24, 0.0  ;;  %v3517_v25 = vsub.s32 0, %v3510_v19  ;;  %v621_v31 = vsub.s32 4, %v3510_v19 }
  0x44   : > { %v3259_v29 = vpop.eup %3258  ;;  %v219_v30 = vsel %vm201_vm4, %v3257_v26, 0.0 }
  0x45   : > { %vm226_vm7 = vcmp.gt.f32.partialorder %v223_v27, 0.0  ;;  %v222_v1 = vmul.f32 %v219_v30, %v195_v3  ;;  %v221_v8 = vsel %vm203_vm5, %v3259_v29, 0.0  ;;  %v3520_v29 = vsub.s32 1, %v3510_v19 }
  0x46   : > { %vm3489_vm9 = vmand %vm142_vm6, %vm226_vm7  ;;  %v224_v32 = vmul.f32 %v221_v8, %v197_v28 }
  0x47   : > { %v232_v7 = vsel %vm3489_vm9, %v223_v27, 1.0  ;;  %vm225_vm11 = vcmp.gt.f32.partialorder %v222_v1, 0.0 }
  0x48   : > { %3260 = vrcp.f32 %v232_v7  ;;  %vm228_vm12 = vmand %vm141_vm8, %vm225_vm11  ;;  %vm227_vm13 = vcmp.gt.f32.partialorder %v224_v32, 0.0  ;;  %v739_v7 = vsub.s32 6, %v3510_v19  ;;  %vm2455_vm8 = vcmask 785408  }
  0x49   : > { %v231_v9 = vsel %vm228_vm12, %v222_v1, 1.0  ;;  %vm230_vm14 = vmand %vm143_vm10, %vm227_vm13 }
  0x4a   : > { %3262 = vrcp.f32 %v231_v9  ;;  %v233_v33 = vsel %vm230_vm14, %v224_v32, 1.0  ;;  %v680_v32 = vsub.s32 5, %v3510_v19 }
  0x4b   : > { %3264 = vrcp.f32 %v233_v33  ;;  %v798_v33 = vsub.s32 7, %v3510_v19 }
  0x55   : > { %v3261_v34 = vpop.eup %3260 }
  0x56   : > { %v241_v35 = vsel %vm3489_vm9, %v3261_v34, 0.0  ;;  %v3529_v34 = vsub.s32 2, %v3510_v19 }
  0x57   : > { %v3263_v36 = vpop.eup %3262  ;;  %369 = vperm.xlu1 %3247, %v241_v35   ;;  %v562_v35 = vsub.s32 3, %v3510_v19 }
  0x58   : > { %v3265_v37 = vpop.eup %3264  ;;  %v240_v38 = vsel %vm228_vm12, %v3263_v36, 0.0 }
  0x59   : > { %364 = vperm.xlu0 %3246, %v240_v38   ;;  %v242_v39 = vsel %vm230_vm14, %v3265_v37, 0.0 }
  0x5d   : > { %374 = vperm.xlu0 %3246, %v242_v39  }
  0x9f   : > { %v254_v45 = vpop.permute.xlu0 %253  ;;  %v264_v47 = vpop.permute.xlu1 %263 }
  0xa0   : > { %v266_v46 = vsub.f32 %v247_v44, %v254_v45  ;;  %v268_v49 = vsub.f32 %v247_v44, %v264_v47 }
  0xa2   : > { %v296_v50 = vmul.f32 0.33333334, %v266_v46  ;;  %v298_v52 = vmul.f32 0.33333334, %v268_v49  ;;  %v290_v2 = vand.u32 2147483647, %v266_v46 }
  0xa3   : > { %v259_v51 = vpop.permute.xlu0 %258  ;;  %v272_v60 = vpop.permute.xlu1 %271  ;;  %v292_v28 = vand.u32 2147483647, %v268_v49 }
  0xa4   : > { %v299_v53 = vmul.f32 %v296_v50, %v296_v50  ;;  %v267_v54 = vsub.f32 %v247_v44, %v259_v51  ;;  %v301_v57 = vmul.f32 %v298_v52, %v298_v52  ;;  %v3502_v10 = vsub.f32 %v249_v55, %v272_v60 }
  0xa5   : > { %v3504_v12 = vsub.f32 %v250_v56, %v272_v60  ;;  %vm293_vm15 = vcmp.le.f32.partialorder %v290_v2, 10.0  ;;  %vm295_vm1 = vcmp.le.f32.partialorder %v292_v28, 10.0 }
  0xa6   : > { %v302_v58 = vmul.f32 -0.5, %v299_v53  ;;  %v297_v59 = vmul.f32 0.33333334, %v267_v54  ;;  %v304_v62 = vmul.f32 -0.5, %v301_v57  ;;  %v326_v16 = vmul.f32 0.33333334, %v3502_v10 }
  0xa7   : > { %v277_v61 = vpop.permute.xlu0 %276  ;;  %v282_v17 = vpop.permute.xlu1 %281  ;;  %v327_v18 = vmul.f32 0.33333334, %v3504_v12  ;;  %v291_v26 = vand.u32 2147483647, %v267_v54 }
  0xa8   : > { %v305_v63 = vmul.f32 1.442695, %v302_v58  ;;  %v300_v0 = vmul.f32 %v297_v59, %v297_v59  ;;  %v3498_v4 = vsub.f32 %v249_v55, %v277_v61  ;;  %v3500_v5 = vsub.f32 %v250_v56, %v277_v61 }
  0xa9   : > { %v309_v6 = vmul.f32 1.442695, %v304_v62  ;;  %v3512_v22 = vsub.f32 %v249_v55, %v282_v17  ;;  %v3514_v23 = vsub.f32 %v250_v56, %v282_v17  ;;  %v332_v24 = vmul.f32 %v326_v16, %v326_v16 }
  0xaa   : > { %3266 = vpow2.f32 %v305_v63  ;;  %v303_v11 = vmul.f32 -0.5, %v300_v0  ;;  %v328_v13 = vmul.f32 0.33333334, %v3498_v4  ;;  %v329_v15 = vmul.f32 0.33333334, %v3500_v5 }
  0xab   : > { %3268 = vpow2.f32 %v309_v6  ;;  %v333_v3 = vmul.f32 %v327_v18, %v327_v18  ;;  %v330_v1 = vmul.f32 0.33333334, %v3512_v22  ;;  %v331_v8 = vmul.f32 0.33333334, %v3514_v23 }
  0xac   : > { %v307_v14 = vmul.f32 1.442695, %v303_v11  ;;  %v334_v20 = vmul.f32 %v328_v13, %v328_v13  ;;  %v335_v21 = vmul.f32 %v329_v15, %v329_v15  ;;  %v338_v9 = vmul.f32 -0.5, %v332_v24 }
  0xad   : > { %v339_v36 = vmul.f32 -0.5, %v333_v3  ;;  %vm3532_vm0 = vcmp.le.f32.partialorder %v291_v26, 10.0  ;;  %v336_v43 = vmul.f32 %v330_v1, %v330_v1  ;;  %v337_v44 = vmul.f32 %v331_v8, %v331_v8 }
  0xae   : > { %3270 = vpow2.f32 %v307_v14  ;;  %v340_v27 = vmul.f32 -0.5, %v334_v20  ;;  %v341_v30 = vmul.f32 -0.5, %v335_v21  ;;  %v344_v48 = vmul.f32 1.442695, %v338_v9 }
  0xaf   : > { %v346_v52 = vmul.f32 1.442695, %v339_v36  ;;  %v342_v60 = vmul.f32 -0.5, %v336_v43  ;;  %v343_v61 = vmul.f32 -0.5, %v337_v44  ;;  %v3353_v18 = vmov 1966171168  }
  0xb0   : > { %v348_v39 = vmul.f32 1.442695, %v340_v27  ;;  %v350_v42 = vmul.f32 1.442695, %v341_v30  ;;  %v1572_v20 = vunpack.c.l.s4 %v3353_v18  ;;  %v314_v21 = vand.u32 2147483647, %v3502_v10 }
  0xb1   : > { %v352_v16 = vmul.f32 1.442695, %v342_v60  ;;  %v354_v17 = vmul.f32 1.442695, %v343_v61  ;;  %v315_v24 = vand.u32 2147483647, %v3504_v12 }
  0xb2   : > { %3272 = vpow2.f32 %v348_v39  ;;  %v316_v26 = vand.u32 2147483647, %v3498_v4  ;;  %v317_v27 = vand.u32 2147483647, %v3500_v5  ;;  %v1573_v28 = vunpack.c.0.s8 %v1572_v20 }
  0xb3   : > { %3274 = vpow2.f32 %v350_v42  ;;  %vm3603_vm2 = vcmp.le.f32.partialorder %v314_v21, 10.0  ;;  %vm3607_vm3 = vcmp.le.f32.partialorder %v315_v24, 10.0  ;;  %v318_v12 = vand.u32 2147483647, %v3512_v22 }
  0xb4   : > { %3276 = vpow2.f32 %v344_v48  ;;  %vm322_vm4 = vcmp.le.f32.partialorder %v316_v26, 10.0  ;;  %vm323_vm5 = vcmp.le.f32.partialorder %v317_v27, 10.0  ;;  %v3616_v4 = vsub.s32 %v1573_v28, %v3510_v19 }
  0xb5   : > { %3278 = vpow2.f32 %v346_v52  ;;  %vm3622_vm6 = vcmp.le.f32.partialorder %v318_v12, 10.0 }
  0xb6   : > { %3280 = vpow2.f32 %v352_v16 }
  0xb7   : > { %v3267_v37 = vpop.eup %3266  ;;  %3282 = vpow2.f32 %v354_v17 }
  0xb8   : > { %v3269_v40 = vpop.eup %3268  ;;  %v3536_v41 = vsel %vm293_vm15, %v3267_v37, 0.0 }
  0xb9   : > { %v3540_v45 = vrot.slane %v3536_v41, %v3517_v25  ;;  %v3543_v46 = vrot.slane %v3536_v41, %v621_v31  ;;  %v3546_v47 = vrot.slane %v3536_v41, %v680_v32  ;;  %v3549_v49 = vrot.slane %v3536_v41, %v739_v7 }
  0xba   : > { %v3552_v50 = vrot.slane %v3536_v41, %v798_v33  ;;  %v313_v51 = vsel %vm295_vm1, %v3269_v40, 0.0  ;;  %v3555_v54 = vrot.slane %v3536_v41, %v562_v35  ;;  %v3633_v38 = vrot.slane %v3536_v41, %v3520_v29 }
  0xbb   : > { %v3271_v53 = vpop.eup %3270  ;;  %v3558_v55 = vrot.slane %v313_v51, %v3517_v25  ;;  %v3561_v56 = vrot.slane %v313_v51, %v3520_v29  ;;  %v3564_v57 = vrot.slane %v313_v51, %v3529_v34  ;;  %388 = vbcast.lane.b32.xlu1 %v3540_v45, 256  ;;  %v3569_v59 = vrot.slane %v313_v51, %v562_v35 }
  0xbc   : > { %v312_v58 = vsel %vm3532_vm0, %v3271_v53, 0.0  ;;  %392 = vbcast.lane.b32.xlu0 %v3540_v45, 264 }
  0xbd   : > { %v3573_v62 = vrot.slane %v312_v58, %v3517_v25  ;;  %v3576_v63 = vrot.slane %v312_v58, %v3520_v29  ;;  %v3578_v0 = vrot.slane %v312_v58, %v621_v31  ;;  %v3580_v6 = vrot.slane %v312_v58, %v680_v32 }
  0xbe   : > { %v3582_v11 = vrot.slane %v312_v58, %v739_v7  ;;  %v3584_v13 = vrot.slane %v312_v58, %v798_v33  ;;  %v3587_v14 = vrot.slane %v312_v58, %v3529_v34  ;;  %v3589_v15 = vrot.slane %v312_v58, %v562_v35 }
  0xbf   : > { %396 = vbcast.lane.b32.xlu1 %v3540_v45, 272  ;;  %v3273_v2 = vpop.eup %3272  ;;  %v319_v31 = vand.u32 2147483647, %v3514_v23 }
  0xc0   : > { %400 = vbcast.lane.b32.xlu0 %v3540_v45, 280  ;;  %v3275_v3 = vpop.eup %3274  ;;  %v358_v32 = vsel %vm322_vm4, %v3273_v2, 0.0 }
  0xc1   : > { %v3277_v30 = vpop.eup %3276  ;;  %v359_v7 = vsel %vm323_vm5, %v3275_v3, 0.0  ;;  %vm3626_vm7 = vcmp.le.f32.partialorder %v319_v31, 10.0 }
  0xc2   : > { %v3279_v8 = vpop.eup %3278  ;;  %v356_v9 = vsel %vm3603_vm2, %v3277_v30, 0.0 }
  0xc3   : > { %404 = vbcast.lane.b32.xlu1 %v3540_v45, 288  ;;  %v3281_v5 = vpop.eup %3280  ;;  %v357_v22 = vsel %vm3607_vm3, %v3279_v8, 0.0 }
  0xc4   : > { %408 = vbcast.lane.b32.xlu0 %v3540_v45, 296  ;;  %v3283_v23 = vpop.eup %3282  ;;  %v360_v48 = vsel %vm3622_vm6, %v3281_v5, 0.0 }
  0xc5   : > { %v361_v51 = vsel %vm3626_vm7, %v3283_v23, 0.0 }
  0xc7   : > { %412 = vbcast.lane.b32.xlu1 %v3540_v45, 304 }
  0xc8   : > { %416 = vbcast.lane.b32.xlu0 %v3540_v45, 312 }
  0xcb   : > { %420 = vbcast.lane.b32.xlu1 %v3540_v45, 320 }
  0xcc   : > { %424 = vbcast.lane.b32.xlu0 %v3540_v45, 328 }
  0xcf   : > { %428 = vbcast.lane.b32.xlu1 %v3540_v45, 336 }
  0xd0   : > { %432 = vbcast.lane.b32.xlu0 %v3540_v45, 344 }
  0xd2   : > { %v370_v33 = vpop.permute.xlu1 %369 }
  0xd3   : > { %v379_v19 = vmul.f32 %v370_v33, %v358_v32  ;;  %v380_v37 = vmul.f32 %v370_v33, %v359_v7  ;;  %436 = vbcast.lane.b32.xlu1 %v3540_v45, 352 }
  0xd4   : > { %v365_v39 = vpop.permute.xlu0 %364  ;;  %440 = vbcast.lane.b32.xlu0 %v3540_v45, 360 }
  0xd5   : > { %v1619_v40 = vcombine.low %v379_v19, %v380_v37  ;;  %v1620_v42 = vcombine.high %v379_v19, %v380_v37  ;;  %v377_v43 = vmul.f32 %v365_v39, %v356_v9  ;;  %v378_v44 = vmul.f32 %v365_v39, %v357_v22 }
  0xd7   : > { %v1627_v52 = vrot.slane %v1619_v40, %v3616_v4  ;;  %v1634_v53 = vrot.slane %v1620_v42, %v3616_v4  ;;  %v1569_v58 = vcombine.low %v377_v43, %v378_v44  ;;  %v1570_v60 = vcombine.high %v377_v43, %v378_v44  ;;  %447 = vbcast.lane.b32.xlu1 %v3633_v38, 256 }
  0xd8   : > { %v375_v61 = vpop.permute.xlu0 %374  ;;  %451 = vbcast.lane.b32.xlu0 %v3633_v38, 264 }
  0xd9   : > { %v1635_v45 = vcombine.high %v1627_v52, %v1627_v52  ;;  %v1636_v16 = vcombine.high %v1634_v53, %v1634_v53  ;;  %v1643_v17 = vrot.slane %v1627_v52, %v3616_v4  ;;  %v1650_v18 = vrot.slane %v1634_v53, %v3616_v4 }
  0xda   : > { %v1577_v20 = vrot.slane %v1569_v58, %v3616_v4  ;;  %v1584_v21 = vrot.slane %v1570_v60, %v3616_v4  ;;  %v381_v24 = vmul.f32 %v375_v61, %v360_v48  ;;  %v382_v2 = vmul.f32 %v375_v61, %v361_v51 }
  0xdb   : > { %v1657_v3 = vrot.slane %v1635_v45, %v3616_v4  ;;  %v1664_v26 = vrot.slane %v1636_v16, %v3616_v4  ;;  %v1665_v27 = vcombine.high %v1643_v17, %v1643_v17  ;;  %v1666_v28 = vcombine.high %v1650_v18, %v1650_v18  ;;  %455 = vbcast.lane.b32.xlu1 %v3633_v38, 272 }
  0xdc   : > { %v3652_v30 = vrot.slane %v1643_v17, %v3517_v25  ;;  %v3655_v1 = vrot.slane %v1643_v17, %v3520_v29  ;;  %v3658_v8 = vrot.slane %v1650_v18, %v3517_v25  ;;  %v3661_v10 = vrot.slane %v1650_v18, %v3520_v29  ;;  %459 = vbcast.lane.b32.xlu0 %v3633_v38, 280 }
  0xdd   : > { %v1667_v12 = vcombine.high %v1657_v3, %v1657_v3  ;;  %v1668_v31 = vcombine.high %v1664_v26, %v1664_v26  ;;  %v3665_v5 = vrot.slane %v1657_v3, %v3517_v25  ;;  %v3668_v32 = vrot.slane %v1657_v3, %v3520_v29 }
  0xde   : > { %v3671_v7 = vrot.slane %v1665_v27, %v3517_v25  ;;  %v3674_v9 = vrot.slane %v1665_v27, %v3520_v29  ;;  %v3677_v22 = vrot.slane %v1664_v26, %v3517_v25  ;;  %v3680_v33 = vrot.slane %v1664_v26, %v3520_v29 }
  0xdf   : > { %v3683_v23 = vrot.slane %v1667_v12, %v3517_v25  ;;  %v3686_v35 = vrot.slane %v1667_v12, %v3520_v29  ;;  %v3689_v36 = vrot.slane %v1666_v28, %v3517_v25  ;;  %v3692_v19 = vrot.slane %v1666_v28, %v3520_v29  ;;  %463 = vbcast.lane.b32.xlu1 %v3633_v38, 288 }
  0xe0   : > { %v3696_v37 = vrot.slane %v1668_v31, %v3517_v25  ;;  %v3699_v39 = vrot.slane %v1668_v31, %v3520_v29  ;;  %v1585_v40 = vcombine.high %v1577_v20, %v1577_v20  ;;  %v1586_v42 = vcombine.high %v1584_v21, %v1584_v21  ;;  %467 = vbcast.lane.b32.xlu0 %v3633_v38, 296 }
  0xe1   : > { %v1593_v43 = vrot.slane %v1577_v20, %v3616_v4  ;;  %v1600_v44 = vrot.slane %v1584_v21, %v3616_v4  ;;  %v1669_v48 = vcombine.low %v381_v24, %v382_v2 }
  0xe2   : > { %5507 = vst [vmem:[#allocation7_spill] sm:$0xff] %v3699_v39  ;;  %v1607_v51 = vrot.slane %v1585_v40, %v3616_v4  ;;  %v1614_v52 = vrot.slane %v1586_v42, %v3616_v4 }
  0xe3   : > { %v1615_v53 = vcombine.high %v1593_v43, %v1593_v43  ;;  %v1616_v58 = vcombine.high %v1600_v44, %v1600_v44  ;;  %v3707_v60 = vrot.slane %v1593_v43, %v3517_v25  ;;  %v3710_v61 = vrot.slane %v1593_v43, %v3520_v29  ;;  %471 = vbcast.lane.b32.xlu1 %v3633_v38, 304 }
  0xe4   : > { %v1617_v45 = vcombine.high %v1607_v51, %v1607_v51  ;;  %v1618_v16 = vcombine.high %v1614_v52, %v1614_v52  ;;  %v3714_v17 = vrot.slane %v1607_v51, %v3517_v25  ;;  %v3717_v18 = vrot.slane %v1607_v51, %v3520_v29  ;;  %475 = vbcast.lane.b32.xlu0 %v3633_v38, 312 }
  0xe5   : > { %v3721_v20 = vrot.slane %v1615_v53, %v3517_v25  ;;  %v3724_v21 = vrot.slane %v1615_v53, %v3520_v29  ;;  %v3727_v24 = vrot.slane %v1600_v44, %v3517_v25  ;;  %v3730_v2 = vrot.slane %v1600_v44, %v3520_v29 }
  0xe6   : > { %v3733_v3 = vrot.slane %v1617_v45, %v3517_v25  ;;  %v3736_v26 = vrot.slane %v1617_v45, %v3520_v29  ;;  %v3739_v27 = vrot.slane %v1614_v52, %v3517_v25  ;;  %v3742_v28 = vrot.slane %v1614_v52, %v3520_v29 }
  0xe7   : > { %v3745_v12 = vrot.slane %v1616_v58, %v3517_v25  ;;  %v3748_v31 = vrot.slane %v1616_v58, %v3520_v29  ;;  %v3751_v40 = vrot.slane %v1618_v16, %v3517_v25  ;;  %v3754_v42 = vrot.slane %v1618_v16, %v3520_v29  ;;  %479 = vbcast.lane.b32.xlu1 %v3633_v38, 320 }
  0xe8   : > { %v1676_v43 = vrot.slane %v1669_v48, %v3616_v4  ;;  %483 = vbcast.lane.b32.xlu0 %v3633_v38, 328 }
  0xea   : > { %v1677_v44 = vcombine.high %v1676_v43, %v1676_v43  ;;  %v1684_v51 = vrot.slane %v1676_v43, %v3616_v4 }
  0xeb   : > { %487 = vbcast.lane.b32.xlu1 %v3633_v38, 336 }
  0xec   : > { %v1691_v52 = vrot.slane %v1677_v44, %v3616_v4  ;;  %v1692_v53 = vcombine.high %v1684_v51, %v1684_v51  ;;  %v3763_v58 = vrot.slane %v1684_v51, %v3517_v25  ;;  %v3766_v45 = vrot.slane %v1684_v51, %v3520_v29  ;;  %491 = vbcast.lane.b32.xlu0 %v3633_v38, 344 }
  0xee   : > { %v1693_v16 = vcombine.high %v1691_v52, %v1691_v52  ;;  %v3770_v48 = vrot.slane %v1691_v52, %v3517_v25  ;;  %v3773_v39 = vrot.slane %v1691_v52, %v3520_v29  ;;  %v3776_v43 = vrot.slane %v1692_v53, %v3517_v25 }
  0xef   : > { %v3779_v4 = vrot.slane %v1692_v53, %v3520_v29  ;;  %495 = vbcast.lane.b32.xlu1 %v3633_v38, 352  ;;  %v504_v52 = vrot.slane %v3536_v41, %v3529_v34 }
  0xf0   : > { %v3783_v44 = vrot.slane %v1693_v16, %v3517_v25  ;;  %v3786_v51 = vrot.slane %v1693_v16, %v3520_v29  ;;  %499 = vbcast.lane.b32.xlu0 %v3633_v38, 360 }
  0xf3   : > { %506 = vbcast.lane.b32.xlu1 %v504_v52, 256 }
  0xf4   : > { %510 = vbcast.lane.b32.xlu0 %v504_v52, 264 }
  0xf7   : > { %514 = vbcast.lane.b32.xlu1 %v504_v52, 272 }
  0xf8   : > { %518 = vbcast.lane.b32.xlu0 %v504_v52, 280 }
  0xfb   : > { %522 = vbcast.lane.b32.xlu1 %v504_v52, 288 }
  0xfc   : > { %526 = vbcast.lane.b32.xlu0 %v504_v52, 296 }
  0xff   : > { %530 = vbcast.lane.b32.xlu1 %v504_v52, 304 }
 0x100   : > { %534 = vbcast.lane.b32.xlu0 %v504_v52, 312 }
 0x103   : > { %538 = vbcast.lane.b32.xlu1 %v504_v52, 320 }
 0x104   : > { %542 = vbcast.lane.b32.xlu0 %v504_v52, 328 }
 0x107   : > { %546 = vbcast.lane.b32.xlu1 %v504_v52, 336 }
 0x108   : > { %550 = vbcast.lane.b32.xlu0 %v504_v52, 344 }
 0x10b   : > { %554 = vbcast.lane.b32.xlu1 %v504_v52, 352 }
 0x10c   : > { %558 = vbcast.lane.b32.xlu0 %v504_v52, 360 }
 0x10f   : > { %565 = vbcast.lane.b32.xlu1 %v3555_v54, 256 }
 0x110   : > { %569 = vbcast.lane.b32.xlu0 %v3555_v54, 264 }
 0x113   : > { %573 = vbcast.lane.b32.xlu1 %v3555_v54, 272 }
 0x114   : > { %577 = vbcast.lane.b32.xlu0 %v3555_v54, 280 }
 0x117   : > { %581 = vbcast.lane.b32.xlu1 %v3555_v54, 288 }
 0x118   : > { %585 = vbcast.lane.b32.xlu0 %v3555_v54, 296 }
 0x11b   : > { %589 = vbcast.lane.b32.xlu1 %v3555_v54, 304 }
 0x11c   : > { %593 = vbcast.lane.b32.xlu0 %v3555_v54, 312 }
 0x11f   : > { %597 = vbcast.lane.b32.xlu1 %v3555_v54, 320 }
 0x120   : > { %601 = vbcast.lane.b32.xlu0 %v3555_v54, 328 }
 0x123   : > { %605 = vbcast.lane.b32.xlu1 %v3555_v54, 336 }
 0x124   : > { %609 = vbcast.lane.b32.xlu0 %v3555_v54, 344 }
 0x127   : > { %613 = vbcast.lane.b32.xlu1 %v3555_v54, 352 }
 0x128   : > { %617 = vbcast.lane.b32.xlu0 %v3555_v54, 360 }
 0x12b   : > { %624 = vbcast.lane.b32.xlu1 %v3543_v46, 256 }
 0x12c   : > { %628 = vbcast.lane.b32.xlu0 %v3543_v46, 264 }
 0x12d   : > { %v389_v25 = vpop.permute.xlu1 %388 }
 0x12e   : > { %v1894_v29 = vmul.f32 %v3707_v60, %v389_v25  ;;  %v1895_v34 = vmul.f32 %v3710_v61, %v389_v25  ;;  %v393_v41 = vpop.permute.xlu0 %392 }
 0x12f   : > { %v1896_v38 = vmul.f32 %v3707_v60, %v393_v41  ;;  %v1897_v53 = vmul.f32 %v3710_v61, %v393_v41  ;;  %632 = vbcast.lane.b32.xlu1 %v3543_v46, 272 }
 0x130   : > { %2454 = vst [vmem:[%s3815_s4] sm:$0xff] %v1894_v29  ;;  %2456 = vst.msk [vmem:[%s3815_s4 + $0x8] sm:$0xff] %vm2455_vm8, %v1895_v34  ;;  %636 = vbcast.lane.b32.xlu0 %v3543_v46, 280 }
 0x131   : > { %2457 = vst [vmem:[%s3815_s4 + $0x10] sm:$0xff] %v1896_v38  ;;  %2458 = vst.msk [vmem:[%s3815_s4 + $0x18] sm:$0xff] %vm2455_vm8, %v1897_v53  ;;  %v397_v54 = vpop.permute.xlu1 %396 }
 0x132   : > { %v1898_v16 = vmul.f32 %v3707_v60, %v397_v54  ;;  %v1899_v52 = vmul.f32 %v3710_v61, %v397_v54  ;;  %v401_v25 = vpop.permute.xlu0 %400 }
 0x133   : > { %v1900_v41 = vmul.f32 %v3707_v60, %v401_v25  ;;  %v1901_v29 = vmul.f32 %v3710_v61, %v401_v25  ;;  %640 = vbcast.lane.b32.xlu1 %v3543_v46, 288 }
 0x134   : > { %2459 = vst [vmem:[%s3815_s4 + $0x20] sm:$0xff] %v1898_v16  ;;  %2460 = vst.msk [vmem:[%s3815_s4 + $0x28] sm:$0xff] %vm2455_vm8, %v1899_v52  ;;  %644 = vbcast.lane.b32.xlu0 %v3543_v46, 296 }
 0x135   : > { %2461 = vst [vmem:[%s3815_s4 + $0x30] sm:$0xff] %v1900_v41  ;;  %2462 = vst.msk [vmem:[%s3815_s4 + $0x38] sm:$0xff] %vm2455_vm8, %v1901_v29  ;;  %v405_v34 = vpop.permute.xlu1 %404 }
 0x136   : > { %v1902_v38 = vmul.f32 %v3707_v60, %v405_v34  ;;  %v1903_v53 = vmul.f32 %v3710_v61, %v405_v34  ;;  %v409_v54 = vpop.permute.xlu0 %408 }
 0x137   : > { %v1904_v25 = vmul.f32 %v3707_v60, %v409_v54  ;;  %v1905_v16 = vmul.f32 %v3710_v61, %v409_v54  ;;  %648 = vbcast.lane.b32.xlu1 %v3543_v46, 304 }
 0x138   : > { %2463 = vst [vmem:[%s3815_s4 + $0x40] sm:$0xff] %v1902_v38  ;;  %2464 = vst.msk [vmem:[%s3815_s4 + $0x48] sm:$0xff] %vm2455_vm8, %v1903_v53  ;;  %652 = vbcast.lane.b32.xlu0 %v3543_v46, 312 }
 0x139   : > { %2465 = vst [vmem:[%s3815_s4 + $0x50] sm:$0xff] %v1904_v25  ;;  %2466 = vst.msk [vmem:[%s3815_s4 + $0x58] sm:$0xff] %vm2455_vm8, %v1905_v16  ;;  %v413_v52 = vpop.permute.xlu1 %412 }
 0x13a   : > { %v1906_v41 = vmul.f32 %v3707_v60, %v413_v52  ;;  %v1907_v29 = vmul.f32 %v3710_v61, %v413_v52  ;;  %v417_v34 = vpop.permute.xlu0 %416 }
 0x13b   : > { %v1908_v54 = vmul.f32 %v3707_v60, %v417_v34  ;;  %v1909_v38 = vmul.f32 %v3710_v61, %v417_v34  ;;  %656 = vbcast.lane.b32.xlu1 %v3543_v46, 320 }
 0x13c   : > { %2467 = vst [vmem:[%s3815_s4 + $0x60] sm:$0xff] %v1906_v41  ;;  %2468 = vst.msk [vmem:[%s3815_s4 + $0x68] sm:$0xff] %vm2455_vm8, %v1907_v29  ;;  %660 = vbcast.lane.b32.xlu0 %v3543_v46, 328 }
 0x13d   : > { %2469 = vst [vmem:[%s3815_s4 + $0x70] sm:$0xff] %v1908_v54  ;;  %2470 = vst.msk [vmem:[%s3815_s4 + $0x78] sm:$0xff] %vm2455_vm8, %v1909_v38  ;;  %v421_v53 = vpop.permute.xlu1 %420 }
 0x13e   : > { %v1910_v25 = vmul.f32 %v3707_v60, %v421_v53  ;;  %v1911_v16 = vmul.f32 %v3710_v61, %v421_v53  ;;  %v425_v52 = vpop.permute.xlu0 %424 }
 0x13f   : > { %v1912_v34 = vmul.f32 %v3707_v60, %v425_v52  ;;  %v1913_v41 = vmul.f32 %v3710_v61, %v425_v52  ;;  %664 = vbcast.lane.b32.xlu1 %v3543_v46, 336 }
 0x140   : > { %2471 = vst [vmem:[%s3815_s4 + $0x80] sm:$0xff] %v1910_v25  ;;  %2472 = vst.msk [vmem:[%s3815_s4 + $0x88] sm:$0xff] %vm2455_vm8, %v1911_v16  ;;  %668 = vbcast.lane.b32.xlu0 %v3543_v46, 344 }
 0x141   : > { %2473 = vst [vmem:[%s3815_s4 + $0x90] sm:$0xff] %v1912_v34  ;;  %2474 = vst.msk [vmem:[%s3815_s4 + $0x98] sm:$0xff] %vm2455_vm8, %v1913_v41  ;;  %v429_v29 = vpop.permute.xlu1 %428 }
 0x142   : > { %v1914_v54 = vmul.f32 %v3707_v60, %v429_v29  ;;  %v1915_v38 = vmul.f32 %v3710_v61, %v429_v29  ;;  %v433_v53 = vpop.permute.xlu0 %432 }
 0x143   : > { %v1916_v52 = vmul.f32 %v3707_v60, %v433_v53  ;;  %v1917_v25 = vmul.f32 %v3710_v61, %v433_v53  ;;  %672 = vbcast.lane.b32.xlu1 %v3543_v46, 352 }
 0x144   : > { %2475 = vst [vmem:[%s3815_s4 + $0xa0] sm:$0xff] %v1914_v54  ;;  %2476 = vst.msk [vmem:[%s3815_s4 + $0xa8] sm:$0xff] %vm2455_vm8, %v1915_v38  ;;  %676 = vbcast.lane.b32.xlu0 %v3543_v46, 360 }
 0x145   : > { %2477 = vst [vmem:[%s3815_s4 + $0xb0] sm:$0xff] %v1916_v52  ;;  %2478 = vst.msk [vmem:[%s3815_s4 + $0xb8] sm:$0xff] %vm2455_vm8, %v1917_v25  ;;  %v437_v16 = vpop.permute.xlu1 %436 }
 0x146   : > { %v1918_v34 = vmul.f32 %v3707_v60, %v437_v16  ;;  %v1919_v41 = vmul.f32 %v3710_v61, %v437_v16  ;;  %v441_v29 = vpop.permute.xlu0 %440 }
 0x147   : > { %v1920_v53 = vmul.f32 %v3707_v60, %v441_v29  ;;  %v1921_v54 = vmul.f32 %v3710_v61, %v441_v29  ;;  %683 = vbcast.lane.b32.xlu1 %v3546_v47, 256 }
 0x148   : > { %2479 = vst [vmem:[%s3815_s4 + $0xc0] sm:$0xff] %v1918_v34  ;;  %2480 = vst.msk [vmem:[%s3815_s4 + $0xc8] sm:$0xff] %vm2455_vm8, %v1919_v41  ;;  %687 = vbcast.lane.b32.xlu0 %v3546_v47, 264 }
 0x149   : > { %2481 = vst [vmem:[%s3815_s4 + $0xd0] sm:$0xff] %v1920_v53  ;;  %2482 = vst.msk [vmem:[%s3815_s4 + $0xd8] sm:$0xff] %vm2455_vm8, %v1921_v54  ;;  %v448_v46 = vpop.permute.xlu1 %447 }
 0x14a   : > { %v1922_v38 = vmul.f32 %v3714_v17, %v448_v46  ;;  %v1923_v60 = vmul.f32 %v3717_v18, %v448_v46  ;;  %v452_v52 = vpop.permute.xlu0 %451 }
 0x14b   : > { %v1924_v61 = vmul.f32 %v3714_v17, %v452_v52  ;;  %v1925_v25 = vmul.f32 %v3717_v18, %v452_v52  ;;  %691 = vbcast.lane.b32.xlu1 %v3546_v47, 272 }
 0x14c   : > { %2483 = vst [vmem:[%s3815_s4 + $0xe0] sm:$0xff] %v1922_v38  ;;  %2484 = vst.msk [vmem:[%s3815_s4 + $0xe8] sm:$0xff] %vm2455_vm8, %v1923_v60  ;;  %695 = vbcast.lane.b32.xlu0 %v3546_v47, 280 }
 0x14d   : > { %2485 = vst [vmem:[%s3815_s4 + $0xf0] sm:$0xff] %v1924_v61  ;;  %2486 = vst.msk [vmem:[%s3815_s4 + $0xf8] sm:$0xff] %vm2455_vm8, %v1925_v25  ;;  %v456_v16 = vpop.permute.xlu1 %455 }
 0x14e   : > { %v1926_v34 = vmul.f32 %v3714_v17, %v456_v16  ;;  %v1927_v41 = vmul.f32 %v3717_v18, %v456_v16  ;;  %v460_v29 = vpop.permute.xlu0 %459 }
 0x14f   : > { %v1928_v53 = vmul.f32 %v3714_v17, %v460_v29  ;;  %v1929_v54 = vmul.f32 %v3717_v18, %v460_v29  ;;  %699 = vbcast.lane.b32.xlu1 %v3546_v47, 288 }
 0x150   : > { %2487 = vst [vmem:[%s3815_s4 + $0x100] sm:$0xff] %v1926_v34  ;;  %2488 = vst.msk [vmem:[%s3815_s4 + $0x108] sm:$0xff] %vm2455_vm8, %v1927_v41  ;;  %703 = vbcast.lane.b32.xlu0 %v3546_v47, 296 }
 0x151   : > { %2489 = vst [vmem:[%s3815_s4 + $0x110] sm:$0xff] %v1928_v53  ;;  %2490 = vst.msk [vmem:[%s3815_s4 + $0x118] sm:$0xff] %vm2455_vm8, %v1929_v54  ;;  %v464_v46 = vpop.permute.xlu1 %463 }
 0x152   : > { %v1930_v38 = vmul.f32 %v3714_v17, %v464_v46  ;;  %v1931_v60 = vmul.f32 %v3717_v18, %v464_v46  ;;  %v468_v52 = vpop.permute.xlu0 %467 }
 0x153   : > { %v1932_v61 = vmul.f32 %v3714_v17, %v468_v52  ;;  %v1933_v25 = vmul.f32 %v3717_v18, %v468_v52  ;;  %707 = vbcast.lane.b32.xlu1 %v3546_v47, 304 }
 0x154   : > { %2491 = vst [vmem:[%s3815_s4 + $0x120] sm:$0xff] %v1930_v38  ;;  %2492 = vst.msk [vmem:[%s3815_s4 + $0x128] sm:$0xff] %vm2455_vm8, %v1931_v60  ;;  %711 = vbcast.lane.b32.xlu0 %v3546_v47, 312 }
 0x155   : > { %2493 = vst [vmem:[%s3815_s4 + $0x130] sm:$0xff] %v1932_v61  ;;  %2494 = vst.msk [vmem:[%s3815_s4 + $0x138] sm:$0xff] %vm2455_vm8, %v1933_v25  ;;  %v472_v16 = vpop.permute.xlu1 %471 }
 0x156   : > { %v1934_v34 = vmul.f32 %v3714_v17, %v472_v16  ;;  %v1935_v41 = vmul.f32 %v3717_v18, %v472_v16  ;;  %v476_v29 = vpop.permute.xlu0 %475 }
 0x157   : > { %v1936_v53 = vmul.f32 %v3714_v17, %v476_v29  ;;  %v1937_v54 = vmul.f32 %v3717_v18, %v476_v29  ;;  %715 = vbcast.lane.b32.xlu1 %v3546_v47, 320 }
 0x158   : > { %2495 = vst [vmem:[%s3815_s4 + $0x140] sm:$0xff] %v1934_v34  ;;  %2496 = vst.msk [vmem:[%s3815_s4 + $0x148] sm:$0xff] %vm2455_vm8, %v1935_v41  ;;  %719 = vbcast.lane.b32.xlu0 %v3546_v47, 328 }
 0x159   : > { %2497 = vst [vmem:[%s3815_s4 + $0x150] sm:$0xff] %v1936_v53  ;;  %2498 = vst.msk [vmem:[%s3815_s4 + $0x158] sm:$0xff] %vm2455_vm8, %v1937_v54  ;;  %v480_v46 = vpop.permute.xlu1 %479 }
 0x15a   : > { %v1938_v38 = vmul.f32 %v3714_v17, %v480_v46  ;;  %v1939_v60 = vmul.f32 %v3717_v18, %v480_v46  ;;  %v484_v52 = vpop.permute.xlu0 %483 }
 0x15b   : > { %v1940_v61 = vmul.f32 %v3714_v17, %v484_v52  ;;  %v1941_v25 = vmul.f32 %v3717_v18, %v484_v52  ;;  %723 = vbcast.lane.b32.xlu1 %v3546_v47, 336 }
 0x15c   : > { %2499 = vst [vmem:[%s3815_s4 + $0x160] sm:$0xff] %v1938_v38  ;;  %2500 = vst.msk [vmem:[%s3815_s4 + $0x168] sm:$0xff] %vm2455_vm8, %v1939_v60  ;;  %727 = vbcast.lane.b32.xlu0 %v3546_v47, 344 }
 0x15d   : > { %2501 = vst [vmem:[%s3815_s4 + $0x170] sm:$0xff] %v1940_v61  ;;  %2502 = vst.msk [vmem:[%s3815_s4 + $0x178] sm:$0xff] %vm2455_vm8, %v1941_v25  ;;  %v488_v16 = vpop.permute.xlu1 %487 }
 0x15e   : > { %v1942_v34 = vmul.f32 %v3714_v17, %v488_v16  ;;  %v1943_v41 = vmul.f32 %v3717_v18, %v488_v16  ;;  %v492_v29 = vpop.permute.xlu0 %491 }
 0x15f   : > { %v1944_v53 = vmul.f32 %v3714_v17, %v492_v29  ;;  %v1945_v54 = vmul.f32 %v3717_v18, %v492_v29  ;;  %731 = vbcast.lane.b32.xlu1 %v3546_v47, 352 }
 0x160   : > { %2503 = vst [vmem:[%s3815_s4 + $0x180] sm:$0xff] %v1942_v34  ;;  %2504 = vst.msk [vmem:[%s3815_s4 + $0x188] sm:$0xff] %vm2455_vm8, %v1943_v41  ;;  %735 = vbcast.lane.b32.xlu0 %v3546_v47, 360 }
 0x161   : > { %2505 = vst [vmem:[%s3815_s4 + $0x190] sm:$0xff] %v1944_v53  ;;  %2506 = vst.msk [vmem:[%s3815_s4 + $0x198] sm:$0xff] %vm2455_vm8, %v1945_v54  ;;  %v496_v46 = vpop.permute.xlu1 %495 }
 0x162   : > { %v1946_v38 = vmul.f32 %v3714_v17, %v496_v46  ;;  %v1947_v60 = vmul.f32 %v3717_v18, %v496_v46  ;;  %v500_v52 = vpop.permute.xlu0 %499 }
 0x163   : > { %v1948_v61 = vmul.f32 %v3714_v17, %v500_v52  ;;  %v1949_v25 = vmul.f32 %v3717_v18, %v500_v52  ;;  %742 = vbcast.lane.b32.xlu1 %v3549_v49, 256 }
 0x164   : > { %2507 = vst [vmem:[%s3815_s4 + $0x1a0] sm:$0xff] %v1946_v38  ;;  %2508 = vst.msk [vmem:[%s3815_s4 + $0x1a8] sm:$0xff] %vm2455_vm8, %v1947_v60  ;;  %746 = vbcast.lane.b32.xlu0 %v3549_v49, 264 }
 0x165   : > { %2509 = vst [vmem:[%s3815_s4 + $0x1b0] sm:$0xff] %v1948_v61  ;;  %2510 = vst.msk [vmem:[%s3815_s4 + $0x1b8] sm:$0xff] %vm2455_vm8, %v1949_v25  ;;  %v507_v47 = vpop.permute.xlu1 %506 }
 0x166   : > { %v1950_v16 = vmul.f32 %v3721_v20, %v507_v47  ;;  %v1951_v17 = vmul.f32 %v3724_v21, %v507_v47  ;;  %v511_v34 = vpop.permute.xlu0 %510 }
 0x167   : > { %v1952_v18 = vmul.f32 %v3721_v20, %v511_v34  ;;  %v1953_v41 = vmul.f32 %v3724_v21, %v511_v34  ;;  %750 = vbcast.lane.b32.xlu1 %v3549_v49, 272 }
 0x168   : > { %2511 = vst [vmem:[%s3815_s4 + $0x1c0] sm:$0xff] %v1950_v16  ;;  %2512 = vst.msk [vmem:[%s3815_s4 + $0x1c8] sm:$0xff] %vm2455_vm8, %v1951_v17  ;;  %754 = vbcast.lane.b32.xlu0 %v3549_v49, 280 }
 0x169   : > { %2513 = vst [vmem:[%s3815_s4 + $0x1d0] sm:$0xff] %v1952_v18  ;;  %2514 = vst.msk [vmem:[%s3815_s4 + $0x1d8] sm:$0xff] %vm2455_vm8, %v1953_v41  ;;  %v515_v29 = vpop.permute.xlu1 %514 }
 0x16a   : > { %v1954_v53 = vmul.f32 %v3721_v20, %v515_v29  ;;  %v1955_v54 = vmul.f32 %v3724_v21, %v515_v29  ;;  %v519_v46 = vpop.permute.xlu0 %518 }
 0x16b   : > { %v1956_v38 = vmul.f32 %v3721_v20, %v519_v46  ;;  %v1957_v60 = vmul.f32 %v3724_v21, %v519_v46  ;;  %758 = vbcast.lane.b32.xlu1 %v3549_v49, 288 }
 0x16c   : > { %2515 = vst [vmem:[%s3815_s4 + $0x1e0] sm:$0xff] %v1954_v53  ;;  %2516 = vst.msk [vmem:[%s3815_s4 + $0x1e8] sm:$0xff] %vm2455_vm8, %v1955_v54  ;;  %762 = vbcast.lane.b32.xlu0 %v3549_v49, 296 }
 0x16d   : > { %2517 = vst [vmem:[%s3815_s4 + $0x1f0] sm:$0xff] %v1956_v38  ;;  %2518 = vst.msk [vmem:[%s3815_s4 + $0x1f8] sm:$0xff] %vm2455_vm8, %v1957_v60  ;;  %v523_v52 = vpop.permute.xlu1 %522 }
 0x16e   : > { %v1958_v61 = vmul.f32 %v3721_v20, %v523_v52  ;;  %v1959_v25 = vmul.f32 %v3724_v21, %v523_v52  ;;  %v527_v47 = vpop.permute.xlu0 %526 }
 0x16f   : > { %v1960_v16 = vmul.f32 %v3721_v20, %v527_v47  ;;  %v1961_v17 = vmul.f32 %v3724_v21, %v527_v47  ;;  %766 = vbcast.lane.b32.xlu1 %v3549_v49, 304 }
 0x170   : > { %2519 = vst [vmem:[%s3815_s4 + $0x200] sm:$0xff] %v1958_v61  ;;  %2520 = vst.msk [vmem:[%s3815_s4 + $0x208] sm:$0xff] %vm2455_vm8, %v1959_v25  ;;  %770 = vbcast.lane.b32.xlu0 %v3549_v49, 312 }
 0x171   : > { %2521 = vst [vmem:[%s3815_s4 + $0x210] sm:$0xff] %v1960_v16  ;;  %2522 = vst.msk [vmem:[%s3815_s4 + $0x218] sm:$0xff] %vm2455_vm8, %v1961_v17  ;;  %v531_v34 = vpop.permute.xlu1 %530 }
 0x172   : > { %v1962_v18 = vmul.f32 %v3721_v20, %v531_v34  ;;  %v1963_v41 = vmul.f32 %v3724_v21, %v531_v34  ;;  %v535_v29 = vpop.permute.xlu0 %534 }
 0x173   : > { %v1964_v53 = vmul.f32 %v3721_v20, %v535_v29  ;;  %v1965_v54 = vmul.f32 %v3724_v21, %v535_v29  ;;  %774 = vbcast.lane.b32.xlu1 %v3549_v49, 320 }
 0x174   : > { %2523 = vst [vmem:[%s3815_s4 + $0x220] sm:$0xff] %v1962_v18  ;;  %2524 = vst.msk [vmem:[%s3815_s4 + $0x228] sm:$0xff] %vm2455_vm8, %v1963_v41  ;;  %778 = vbcast.lane.b32.xlu0 %v3549_v49, 328 }
 0x175   : > { %2525 = vst [vmem:[%s3815_s4 + $0x230] sm:$0xff] %v1964_v53  ;;  %2526 = vst.msk [vmem:[%s3815_s4 + $0x238] sm:$0xff] %vm2455_vm8, %v1965_v54  ;;  %v539_v46 = vpop.permute.xlu1 %538 }
 0x176   : > { %v1966_v38 = vmul.f32 %v3721_v20, %v539_v46  ;;  %v1967_v60 = vmul.f32 %v3724_v21, %v539_v46  ;;  %v543_v52 = vpop.permute.xlu0 %542 }
 0x177   : > { %v1968_v61 = vmul.f32 %v3721_v20, %v543_v52  ;;  %v1969_v25 = vmul.f32 %v3724_v21, %v543_v52  ;;  %782 = vbcast.lane.b32.xlu1 %v3549_v49, 336 }
 0x178   : > { %2527 = vst [vmem:[%s3815_s4 + $0x240] sm:$0xff] %v1966_v38  ;;  %2528 = vst.msk [vmem:[%s3815_s4 + $0x248] sm:$0xff] %vm2455_vm8, %v1967_v60  ;;  %786 = vbcast.lane.b32.xlu0 %v3549_v49, 344 }
 0x179   : > { %2529 = vst [vmem:[%s3815_s4 + $0x250] sm:$0xff] %v1968_v61  ;;  %2530 = vst.msk [vmem:[%s3815_s4 + $0x258] sm:$0xff] %vm2455_vm8, %v1969_v25  ;;  %v547_v47 = vpop.permute.xlu1 %546 }
 0x17a   : > { %v1970_v16 = vmul.f32 %v3721_v20, %v547_v47  ;;  %v1971_v17 = vmul.f32 %v3724_v21, %v547_v47  ;;  %v551_v34 = vpop.permute.xlu0 %550 }
 0x17b   : > { %v1972_v18 = vmul.f32 %v3721_v20, %v551_v34  ;;  %v1973_v41 = vmul.f32 %v3724_v21, %v551_v34  ;;  %790 = vbcast.lane.b32.xlu1 %v3549_v49, 352 }
 0x17c   : > { %2531 = vst [vmem:[%s3815_s4 + $0x260] sm:$0xff] %v1970_v16  ;;  %2532 = vst.msk [vmem:[%s3815_s4 + $0x268] sm:$0xff] %vm2455_vm8, %v1971_v17  ;;  %794 = vbcast.lane.b32.xlu0 %v3549_v49, 360 }
 0x17d   : > { %2533 = vst [vmem:[%s3815_s4 + $0x270] sm:$0xff] %v1972_v18  ;;  %2534 = vst.msk [vmem:[%s3815_s4 + $0x278] sm:$0xff] %vm2455_vm8, %v1973_v41  ;;  %v555_v29 = vpop.permute.xlu1 %554 }
 0x17e   : > { %v1974_v53 = vmul.f32 %v3721_v20, %v555_v29  ;;  %v1975_v54 = vmul.f32 %v3724_v21, %v555_v29  ;;  %v559_v46 = vpop.permute.xlu0 %558 }
 0x17f   : > { %v1976_v38 = vmul.f32 %v3721_v20, %v559_v46  ;;  %v1977_v60 = vmul.f32 %v3724_v21, %v559_v46  ;;  %801 = vbcast.lane.b32.xlu1 %v3552_v50, 256 }
 0x180   : > { %2535 = vst [vmem:[%s3815_s4 + $0x280] sm:$0xff] %v1974_v53  ;;  %2536 = vst.msk [vmem:[%s3815_s4 + $0x288] sm:$0xff] %vm2455_vm8, %v1975_v54  ;;  %805 = vbcast.lane.b32.xlu0 %v3552_v50, 264 }
 0x181   : > { %2537 = vst [vmem:[%s3815_s4 + $0x290] sm:$0xff] %v1976_v38  ;;  %2538 = vst.msk [vmem:[%s3815_s4 + $0x298] sm:$0xff] %vm2455_vm8, %v1977_v60  ;;  %v566_v49 = vpop.permute.xlu1 %565 }
 0x182   : > { %v1978_v52 = vmul.f32 %v3733_v3, %v566_v49  ;;  %v1979_v20 = vmul.f32 %v3736_v26, %v566_v49  ;;  %v570_v61 = vpop.permute.xlu0 %569 }
 0x183   : > { %v1980_v21 = vmul.f32 %v3733_v3, %v570_v61  ;;  %v1981_v25 = vmul.f32 %v3736_v26, %v570_v61  ;;  %809 = vbcast.lane.b32.xlu1 %v3552_v50, 272 }
 0x184   : > { %2539 = vst [vmem:[%s3815_s4 + $0x2a0] sm:$0xff] %v1978_v52  ;;  %2540 = vst.msk [vmem:[%s3815_s4 + $0x2a8] sm:$0xff] %vm2455_vm8, %v1979_v20  ;;  %813 = vbcast.lane.b32.xlu0 %v3552_v50, 280 }
 0x185   : > { %2541 = vst [vmem:[%s3815_s4 + $0x2b0] sm:$0xff] %v1980_v21  ;;  %2542 = vst.msk [vmem:[%s3815_s4 + $0x2b8] sm:$0xff] %vm2455_vm8, %v1981_v25  ;;  %v574_v47 = vpop.permute.xlu1 %573 }
 0x186   : > { %v1982_v16 = vmul.f32 %v3733_v3, %v574_v47  ;;  %v1983_v17 = vmul.f32 %v3736_v26, %v574_v47  ;;  %v578_v34 = vpop.permute.xlu0 %577 }
 0x187   : > { %v1984_v18 = vmul.f32 %v3733_v3, %v578_v34  ;;  %v1985_v41 = vmul.f32 %v3736_v26, %v578_v34  ;;  %817 = vbcast.lane.b32.xlu1 %v3552_v50, 288 }
 0x188   : > { %2543 = vst [vmem:[%s3815_s4 + $0x2c0] sm:$0xff] %v1982_v16  ;;  %2544 = vst.msk [vmem:[%s3815_s4 + $0x2c8] sm:$0xff] %vm2455_vm8, %v1983_v17  ;;  %821 = vbcast.lane.b32.xlu0 %v3552_v50, 296 }
 0x189   : > { %2545 = vst [vmem:[%s3815_s4 + $0x2d0] sm:$0xff] %v1984_v18  ;;  %2546 = vst.msk [vmem:[%s3815_s4 + $0x2d8] sm:$0xff] %vm2455_vm8, %v1985_v41  ;;  %v582_v29 = vpop.permute.xlu1 %581 }
 0x18a   : > { %v1986_v53 = vmul.f32 %v3733_v3, %v582_v29  ;;  %v1987_v54 = vmul.f32 %v3736_v26, %v582_v29  ;;  %v586_v46 = vpop.permute.xlu0 %585 }
 0x18b   : > { %v1988_v38 = vmul.f32 %v3733_v3, %v586_v46  ;;  %v1989_v60 = vmul.f32 %v3736_v26, %v586_v46  ;;  %825 = vbcast.lane.b32.xlu1 %v3552_v50, 304 }
 0x18c   : > { %2547 = vst [vmem:[%s3815_s4 + $0x2e0] sm:$0xff] %v1986_v53  ;;  %2548 = vst.msk [vmem:[%s3815_s4 + $0x2e8] sm:$0xff] %vm2455_vm8, %v1987_v54  ;;  %829 = vbcast.lane.b32.xlu0 %v3552_v50, 312 }
 0x18d   : > { %2549 = vst [vmem:[%s3815_s4 + $0x2f0] sm:$0xff] %v1988_v38  ;;  %2550 = vst.msk [vmem:[%s3815_s4 + $0x2f8] sm:$0xff] %vm2455_vm8, %v1989_v60  ;;  %v590_v49 = vpop.permute.xlu1 %589 }
 0x18e   : > { %v1990_v52 = vmul.f32 %v3733_v3, %v590_v49  ;;  %v1991_v20 = vmul.f32 %v3736_v26, %v590_v49  ;;  %v594_v61 = vpop.permute.xlu0 %593 }
 0x18f   : > { %v1992_v21 = vmul.f32 %v3733_v3, %v594_v61  ;;  %v1993_v25 = vmul.f32 %v3736_v26, %v594_v61  ;;  %833 = vbcast.lane.b32.xlu1 %v3552_v50, 320 }
 0x190   : > { %2551 = vst [vmem:[%s3815_s4 + $0x300] sm:$0xff] %v1990_v52  ;;  %2552 = vst.msk [vmem:[%s3815_s4 + $0x308] sm:$0xff] %vm2455_vm8, %v1991_v20  ;;  %837 = vbcast.lane.b32.xlu0 %v3552_v50, 328 }
 0x191   : > { %2553 = vst [vmem:[%s3815_s4 + $0x310] sm:$0xff] %v1992_v21  ;;  %2554 = vst.msk [vmem:[%s3815_s4 + $0x318] sm:$0xff] %vm2455_vm8, %v1993_v25  ;;  %v598_v47 = vpop.permute.xlu1 %597 }
 0x192   : > { %v1994_v16 = vmul.f32 %v3733_v3, %v598_v47  ;;  %v1995_v17 = vmul.f32 %v3736_v26, %v598_v47  ;;  %v602_v34 = vpop.permute.xlu0 %601 }
 0x193   : > { %v1996_v18 = vmul.f32 %v3733_v3, %v602_v34  ;;  %v1997_v41 = vmul.f32 %v3736_v26, %v602_v34  ;;  %841 = vbcast.lane.b32.xlu1 %v3552_v50, 336 }
 0x194   : > { %2555 = vst [vmem:[%s3815_s4 + $0x320] sm:$0xff] %v1994_v16  ;;  %2556 = vst.msk [vmem:[%s3815_s4 + $0x328] sm:$0xff] %vm2455_vm8, %v1995_v17  ;;  %845 = vbcast.lane.b32.xlu0 %v3552_v50, 344 }
 0x195   : > { %2557 = vst [vmem:[%s3815_s4 + $0x330] sm:$0xff] %v1996_v18  ;;  %2558 = vst.msk [vmem:[%s3815_s4 + $0x338] sm:$0xff] %vm2455_vm8, %v1997_v41  ;;  %v606_v29 = vpop.permute.xlu1 %605 }
 0x196   : > { %v1998_v53 = vmul.f32 %v3733_v3, %v606_v29  ;;  %v1999_v54 = vmul.f32 %v3736_v26, %v606_v29  ;;  %v610_v46 = vpop.permute.xlu0 %609 }
 0x197   : > { %v2000_v38 = vmul.f32 %v3733_v3, %v610_v46  ;;  %v2001_v60 = vmul.f32 %v3736_v26, %v610_v46  ;;  %849 = vbcast.lane.b32.xlu1 %v3552_v50, 352 }
 0x198   : > { %2559 = vst [vmem:[%s3815_s4 + $0x340] sm:$0xff] %v1998_v53  ;;  %2560 = vst.msk [vmem:[%s3815_s4 + $0x348] sm:$0xff] %vm2455_vm8, %v1999_v54  ;;  %853 = vbcast.lane.b32.xlu0 %v3552_v50, 360 }
 0x199   : > { %2561 = vst [vmem:[%s3815_s4 + $0x350] sm:$0xff] %v2000_v38  ;;  %2562 = vst.msk [vmem:[%s3815_s4 + $0x358] sm:$0xff] %vm2455_vm8, %v2001_v60  ;;  %v614_v49 = vpop.permute.xlu1 %613 }
 0x19a   : > { %v2002_v52 = vmul.f32 %v3733_v3, %v614_v49  ;;  %v2003_v20 = vmul.f32 %v3736_v26, %v614_v49  ;;  %v618_v61 = vpop.permute.xlu0 %617 }
 0x19b   : > { %v2004_v21 = vmul.f32 %v3733_v3, %v618_v61  ;;  %v2005_v25 = vmul.f32 %v3736_v26, %v618_v61  ;;  %860 = vbcast.lane.b32.xlu1 %v3573_v62, 256 }
 0x19c   : > { %2563 = vst [vmem:[%s3815_s4 + $0x360] sm:$0xff] %v2002_v52  ;;  %2564 = vst.msk [vmem:[%s3815_s4 + $0x368] sm:$0xff] %vm2455_vm8, %v2003_v20  ;;  %864 = vbcast.lane.b32.xlu0 %v3573_v62, 264 }
 0x19d   : > { %2565 = vst [vmem:[%s3815_s4 + $0x370] sm:$0xff] %v2004_v21  ;;  %2566 = vst.msk [vmem:[%s3815_s4 + $0x378] sm:$0xff] %vm2455_vm8, %v2005_v25  ;;  %v625_v50 = vpop.permute.xlu1 %624 }
 0x19e   : > { %v2006_v47 = vmul.f32 %v3727_v24, %v625_v50  ;;  %v2007_v3 = vmul.f32 %v3730_v2, %v625_v50  ;;  %v629_v16 = vpop.permute.xlu0 %628 }
 0x19f   : > { %v2008_v26 = vmul.f32 %v3727_v24, %v629_v16  ;;  %v2009_v17 = vmul.f32 %v3730_v2, %v629_v16  ;;  %868 = vbcast.lane.b32.xlu1 %v3573_v62, 272 }
 0x1a0   : > { %2567 = vst [vmem:[%s3815_s4 + $0x380] sm:$0xff] %v2006_v47  ;;  %2568 = vst.msk [vmem:[%s3815_s4 + $0x388] sm:$0xff] %vm2455_vm8, %v2007_v3  ;;  %872 = vbcast.lane.b32.xlu0 %v3573_v62, 280 }
 0x1a1   : > { %2569 = vst [vmem:[%s3815_s4 + $0x390] sm:$0xff] %v2008_v26  ;;  %2570 = vst.msk [vmem:[%s3815_s4 + $0x398] sm:$0xff] %vm2455_vm8, %v2009_v17  ;;  %v633_v34 = vpop.permute.xlu1 %632 }
 0x1a2   : > { %v2010_v18 = vmul.f32 %v3727_v24, %v633_v34  ;;  %v2011_v41 = vmul.f32 %v3730_v2, %v633_v34  ;;  %v637_v29 = vpop.permute.xlu0 %636 }
 0x1a3   : > { %v2012_v53 = vmul.f32 %v3727_v24, %v637_v29  ;;  %v2013_v54 = vmul.f32 %v3730_v2, %v637_v29  ;;  %876 = vbcast.lane.b32.xlu1 %v3573_v62, 288 }
 0x1a4   : > { %2571 = vst [vmem:[%s3815_s4 + $0x3a0] sm:$0xff] %v2010_v18  ;;  %2572 = vst.msk [vmem:[%s3815_s4 + $0x3a8] sm:$0xff] %vm2455_vm8, %v2011_v41  ;;  %880 = vbcast.lane.b32.xlu0 %v3573_v62, 296 }
 0x1a5   : > { %2573 = vst [vmem:[%s3815_s4 + $0x3b0] sm:$0xff] %v2012_v53  ;;  %2574 = vst.msk [vmem:[%s3815_s4 + $0x3b8] sm:$0xff] %vm2455_vm8, %v2013_v54  ;;  %v641_v46 = vpop.permute.xlu1 %640 }
 0x1a6   : > { %v2014_v38 = vmul.f32 %v3727_v24, %v641_v46  ;;  %v2015_v60 = vmul.f32 %v3730_v2, %v641_v46  ;;  %v645_v49 = vpop.permute.xlu0 %644 }
 0x1a7   : > { %v2016_v52 = vmul.f32 %v3727_v24, %v645_v49  ;;  %v2017_v20 = vmul.f32 %v3730_v2, %v645_v49  ;;  %884 = vbcast.lane.b32.xlu1 %v3573_v62, 304 }
 0x1a8   : > { %2575 = vst [vmem:[%s3815_s4 + $0x3c0] sm:$0xff] %v2014_v38  ;;  %2576 = vst.msk [vmem:[%s3815_s4 + $0x3c8] sm:$0xff] %vm2455_vm8, %v2015_v60  ;;  %888 = vbcast.lane.b32.xlu0 %v3573_v62, 312 }
 0x1a9   : > { %2577 = vst [vmem:[%s3815_s4 + $0x3d0] sm:$0xff] %v2016_v52  ;;  %2578 = vst.msk [vmem:[%s3815_s4 + $0x3d8] sm:$0xff] %vm2455_vm8, %v2017_v20  ;;  %v649_v61 = vpop.permute.xlu1 %648 }
 0x1aa   : > { %v2018_v21 = vmul.f32 %v3727_v24, %v649_v61  ;;  %v2019_v25 = vmul.f32 %v3730_v2, %v649_v61  ;;  %v653_v50 = vpop.permute.xlu0 %652 }
 0x1ab   : > { %v2020_v47 = vmul.f32 %v3727_v24, %v653_v50  ;;  %v2021_v3 = vmul.f32 %v3730_v2, %v653_v50  ;;  %892 = vbcast.lane.b32.xlu1 %v3573_v62, 320 }
 0x1ac   : > { %2579 = vst [vmem:[%s3815_s4 + $0x3e0] sm:$0xff] %v2018_v21  ;;  %2580 = vst.msk [vmem:[%s3815_s4 + $0x3e8] sm:$0xff] %vm2455_vm8, %v2019_v25  ;;  %896 = vbcast.lane.b32.xlu0 %v3573_v62, 328 }
 0x1ad   : > { %2581 = vst [vmem:[%s3815_s4 + $0x3f0] sm:$0xff] %v2020_v47  ;;  %2582 = vst.msk [vmem:[%s3815_s4 + $0x3f8] sm:$0xff] %vm2455_vm8, %v2021_v3  ;;  %v657_v16 = vpop.permute.xlu1 %656 }
 0x1ae   : > { %v2022_v26 = vmul.f32 %v3727_v24, %v657_v16  ;;  %v2023_v17 = vmul.f32 %v3730_v2, %v657_v16  ;;  %v661_v34 = vpop.permute.xlu0 %660 }
 0x1af   : > { %v2024_v18 = vmul.f32 %v3727_v24, %v661_v34  ;;  %v2025_v41 = vmul.f32 %v3730_v2, %v661_v34  ;;  %900 = vbcast.lane.b32.xlu1 %v3573_v62, 336 }
 0x1b0   : > { %2583 = vst [vmem:[%s3815_s4 + $0x400] sm:$0xff] %v2022_v26  ;;  %2584 = vst.msk [vmem:[%s3815_s4 + $0x408] sm:$0xff] %vm2455_vm8, %v2023_v17  ;;  %904 = vbcast.lane.b32.xlu0 %v3573_v62, 344 }
 0x1b1   : > { %2585 = vst [vmem:[%s3815_s4 + $0x410] sm:$0xff] %v2024_v18  ;;  %2586 = vst.msk [vmem:[%s3815_s4 + $0x418] sm:$0xff] %vm2455_vm8, %v2025_v41  ;;  %v665_v29 = vpop.permute.xlu1 %664 }
 0x1b2   : > { %v2026_v53 = vmul.f32 %v3727_v24, %v665_v29  ;;  %v2027_v54 = vmul.f32 %v3730_v2, %v665_v29  ;;  %v669_v46 = vpop.permute.xlu0 %668 }
 0x1b3   : > { %v2028_v38 = vmul.f32 %v3727_v24, %v669_v46  ;;  %v2029_v60 = vmul.f32 %v3730_v2, %v669_v46  ;;  %908 = vbcast.lane.b32.xlu1 %v3573_v62, 352 }
 0x1b4   : > { %2587 = vst [vmem:[%s3815_s4 + $0x420] sm:$0xff] %v2026_v53  ;;  %2588 = vst.msk [vmem:[%s3815_s4 + $0x428] sm:$0xff] %vm2455_vm8, %v2027_v54  ;;  %912 = vbcast.lane.b32.xlu0 %v3573_v62, 360 }
 0x1b5   : > { %2589 = vst [vmem:[%s3815_s4 + $0x430] sm:$0xff] %v2028_v38  ;;  %2590 = vst.msk [vmem:[%s3815_s4 + $0x438] sm:$0xff] %vm2455_vm8, %v2029_v60  ;;  %v673_v49 = vpop.permute.xlu1 %672 }
 0x1b6   : > { %v2030_v52 = vmul.f32 %v3727_v24, %v673_v49  ;;  %v2031_v20 = vmul.f32 %v3730_v2, %v673_v49  ;;  %v677_v61 = vpop.permute.xlu0 %676 }
 0x1b7   : > { %v2032_v21 = vmul.f32 %v3727_v24, %v677_v61  ;;  %v2033_v25 = vmul.f32 %v3730_v2, %v677_v61  ;;  %919 = vbcast.lane.b32.xlu1 %v3576_v63, 256 }
 0x1b8   : > { %2591 = vst [vmem:[%s3815_s4 + $0x440] sm:$0xff] %v2030_v52  ;;  %2592 = vst.msk [vmem:[%s3815_s4 + $0x448] sm:$0xff] %vm2455_vm8, %v2031_v20  ;;  %923 = vbcast.lane.b32.xlu0 %v3576_v63, 264 }
 0x1b9   : > { %2593 = vst [vmem:[%s3815_s4 + $0x450] sm:$0xff] %v2032_v21  ;;  %2594 = vst.msk [vmem:[%s3815_s4 + $0x458] sm:$0xff] %vm2455_vm8, %v2033_v25  ;;  %v684_v62 = vpop.permute.xlu1 %683 }
 0x1ba   : > { %v2034_v50 = vmul.f32 %v3739_v27, %v684_v62  ;;  %v2035_v24 = vmul.f32 %v3742_v28, %v684_v62  ;;  %v688_v47 = vpop.permute.xlu0 %687 }
 0x1bb   : > { %v2036_v2 = vmul.f32 %v3739_v27, %v688_v47  ;;  %v2037_v3 = vmul.f32 %v3742_v28, %v688_v47  ;;  %927 = vbcast.lane.b32.xlu1 %v3576_v63, 272 }
 0x1bc   : > { %2595 = vst [vmem:[%s3815_s4 + $0x460] sm:$0xff] %v2034_v50  ;;  %2596 = vst.msk [vmem:[%s3815_s4 + $0x468] sm:$0xff] %vm2455_vm8, %v2035_v24  ;;  %931 = vbcast.lane.b32.xlu0 %v3576_v63, 280 }
 0x1bd   : > { %2597 = vst [vmem:[%s3815_s4 + $0x470] sm:$0xff] %v2036_v2  ;;  %2598 = vst.msk [vmem:[%s3815_s4 + $0x478] sm:$0xff] %vm2455_vm8, %v2037_v3  ;;  %v692_v16 = vpop.permute.xlu1 %691 }
 0x1be   : > { %v2038_v26 = vmul.f32 %v3739_v27, %v692_v16  ;;  %v2039_v17 = vmul.f32 %v3742_v28, %v692_v16  ;;  %v696_v34 = vpop.permute.xlu0 %695 }
 0x1bf   : > { %v2040_v18 = vmul.f32 %v3739_v27, %v696_v34  ;;  %v2041_v41 = vmul.f32 %v3742_v28, %v696_v34  ;;  %935 = vbcast.lane.b32.xlu1 %v3576_v63, 288 }
 0x1c0   : > { %2599 = vst [vmem:[%s3815_s4 + $0x480] sm:$0xff] %v2038_v26  ;;  %2600 = vst.msk [vmem:[%s3815_s4 + $0x488] sm:$0xff] %vm2455_vm8, %v2039_v17  ;;  %939 = vbcast.lane.b32.xlu0 %v3576_v63, 296 }
 0x1c1   : > { %2601 = vst [vmem:[%s3815_s4 + $0x490] sm:$0xff] %v2040_v18  ;;  %2602 = vst.msk [vmem:[%s3815_s4 + $0x498] sm:$0xff] %vm2455_vm8, %v2041_v41  ;;  %v700_v29 = vpop.permute.xlu1 %699 }
 0x1c2   : > { %v2042_v53 = vmul.f32 %v3739_v27, %v700_v29  ;;  %v2043_v54 = vmul.f32 %v3742_v28, %v700_v29  ;;  %v704_v46 = vpop.permute.xlu0 %703 }
 0x1c3   : > { %v2044_v38 = vmul.f32 %v3739_v27, %v704_v46  ;;  %v2045_v60 = vmul.f32 %v3742_v28, %v704_v46  ;;  %943 = vbcast.lane.b32.xlu1 %v3576_v63, 304 }
 0x1c4   : > { %2603 = vst [vmem:[%s3815_s4 + $0x4a0] sm:$0xff] %v2042_v53  ;;  %2604 = vst.msk [vmem:[%s3815_s4 + $0x4a8] sm:$0xff] %vm2455_vm8, %v2043_v54  ;;  %947 = vbcast.lane.b32.xlu0 %v3576_v63, 312 }
 0x1c5   : > { %2605 = vst [vmem:[%s3815_s4 + $0x4b0] sm:$0xff] %v2044_v38  ;;  %2606 = vst.msk [vmem:[%s3815_s4 + $0x4b8] sm:$0xff] %vm2455_vm8, %v2045_v60  ;;  %v708_v49 = vpop.permute.xlu1 %707 }
 0x1c6   : > { %v2046_v52 = vmul.f32 %v3739_v27, %v708_v49  ;;  %v2047_v20 = vmul.f32 %v3742_v28, %v708_v49  ;;  %v712_v61 = vpop.permute.xlu0 %711 }
 0x1c7   : > { %v2048_v21 = vmul.f32 %v3739_v27, %v712_v61  ;;  %v2049_v25 = vmul.f32 %v3742_v28, %v712_v61  ;;  %951 = vbcast.lane.b32.xlu1 %v3576_v63, 320 }
 0x1c8   : > { %2607 = vst [vmem:[%s3815_s4 + $0x4c0] sm:$0xff] %v2046_v52  ;;  %2608 = vst.msk [vmem:[%s3815_s4 + $0x4c8] sm:$0xff] %vm2455_vm8, %v2047_v20  ;;  %955 = vbcast.lane.b32.xlu0 %v3576_v63, 328 }
 0x1c9   : > { %2609 = vst [vmem:[%s3815_s4 + $0x4d0] sm:$0xff] %v2048_v21  ;;  %2610 = vst.msk [vmem:[%s3815_s4 + $0x4d8] sm:$0xff] %vm2455_vm8, %v2049_v25  ;;  %v716_v62 = vpop.permute.xlu1 %715 }
 0x1ca   : > { %v2050_v50 = vmul.f32 %v3739_v27, %v716_v62  ;;  %v2051_v24 = vmul.f32 %v3742_v28, %v716_v62  ;;  %v720_v47 = vpop.permute.xlu0 %719 }
 0x1cb   : > { %v2052_v2 = vmul.f32 %v3739_v27, %v720_v47  ;;  %v2053_v3 = vmul.f32 %v3742_v28, %v720_v47  ;;  %959 = vbcast.lane.b32.xlu1 %v3576_v63, 336 }
 0x1cc   : > { %2611 = vst [vmem:[%s3815_s4 + $0x4e0] sm:$0xff] %v2050_v50  ;;  %2612 = vst.msk [vmem:[%s3815_s4 + $0x4e8] sm:$0xff] %vm2455_vm8, %v2051_v24  ;;  %963 = vbcast.lane.b32.xlu0 %v3576_v63, 344 }
 0x1cd   : > { %2613 = vst [vmem:[%s3815_s4 + $0x4f0] sm:$0xff] %v2052_v2  ;;  %2614 = vst.msk [vmem:[%s3815_s4 + $0x4f8] sm:$0xff] %vm2455_vm8, %v2053_v3  ;;  %v724_v16 = vpop.permute.xlu1 %723 }
 0x1ce   : > { %v2054_v26 = vmul.f32 %v3739_v27, %v724_v16  ;;  %v2055_v17 = vmul.f32 %v3742_v28, %v724_v16  ;;  %v728_v34 = vpop.permute.xlu0 %727 }
 0x1cf   : > { %v2056_v18 = vmul.f32 %v3739_v27, %v728_v34  ;;  %v2057_v41 = vmul.f32 %v3742_v28, %v728_v34  ;;  %967 = vbcast.lane.b32.xlu1 %v3576_v63, 352 }
 0x1d0   : > { %2615 = vst [vmem:[%s3815_s4 + $0x500] sm:$0xff] %v2054_v26  ;;  %2616 = vst.msk [vmem:[%s3815_s4 + $0x508] sm:$0xff] %vm2455_vm8, %v2055_v17  ;;  %971 = vbcast.lane.b32.xlu0 %v3576_v63, 360 }
 0x1d1   : > { %2617 = vst [vmem:[%s3815_s4 + $0x510] sm:$0xff] %v2056_v18  ;;  %2618 = vst.msk [vmem:[%s3815_s4 + $0x518] sm:$0xff] %vm2455_vm8, %v2057_v41  ;;  %v732_v29 = vpop.permute.xlu1 %731 }
 0x1d2   : > { %v2058_v53 = vmul.f32 %v3739_v27, %v732_v29  ;;  %v2059_v54 = vmul.f32 %v3742_v28, %v732_v29  ;;  %v736_v46 = vpop.permute.xlu0 %735 }
 0x1d3   : > { %v2060_v38 = vmul.f32 %v3739_v27, %v736_v46  ;;  %v2061_v60 = vmul.f32 %v3742_v28, %v736_v46  ;;  %978 = vbcast.lane.b32.xlu1 %v3587_v14, 256 }
 0x1d4   : > { %2619 = vst [vmem:[%s3815_s4 + $0x520] sm:$0xff] %v2058_v53  ;;  %2620 = vst.msk [vmem:[%s3815_s4 + $0x528] sm:$0xff] %vm2455_vm8, %v2059_v54  ;;  %982 = vbcast.lane.b32.xlu0 %v3587_v14, 264 }
 0x1d5   : > { %2621 = vst [vmem:[%s3815_s4 + $0x530] sm:$0xff] %v2060_v38  ;;  %2622 = vst.msk [vmem:[%s3815_s4 + $0x538] sm:$0xff] %vm2455_vm8, %v2061_v60  ;;  %v743_v63 = vpop.permute.xlu1 %742 }
 0x1d6   : > { %v2062_v49 = vmul.f32 %v3745_v12, %v743_v63  ;;  %v2063_v27 = vmul.f32 %v3748_v31, %v743_v63  ;;  %v747_v52 = vpop.permute.xlu0 %746 }
 0x1d7   : > { %v2064_v28 = vmul.f32 %v3745_v12, %v747_v52  ;;  %v2065_v20 = vmul.f32 %v3748_v31, %v747_v52  ;;  %986 = vbcast.lane.b32.xlu1 %v3587_v14, 272 }
 0x1d8   : > { %2623 = vst [vmem:[%s3815_s4 + $0x540] sm:$0xff] %v2062_v49  ;;  %2624 = vst.msk [vmem:[%s3815_s4 + $0x548] sm:$0xff] %vm2455_vm8, %v2063_v27  ;;  %990 = vbcast.lane.b32.xlu0 %v3587_v14, 280 }
 0x1d9   : > { %2625 = vst [vmem:[%s3815_s4 + $0x550] sm:$0xff] %v2064_v28  ;;  %2626 = vst.msk [vmem:[%s3815_s4 + $0x558] sm:$0xff] %vm2455_vm8, %v2065_v20  ;;  %v751_v61 = vpop.permute.xlu1 %750 }
 0x1da   : > { %v2066_v21 = vmul.f32 %v3745_v12, %v751_v61  ;;  %v2067_v25 = vmul.f32 %v3748_v31, %v751_v61  ;;  %v755_v62 = vpop.permute.xlu0 %754 }
 0x1db   : > { %v2068_v50 = vmul.f32 %v3745_v12, %v755_v62  ;;  %v2069_v24 = vmul.f32 %v3748_v31, %v755_v62  ;;  %994 = vbcast.lane.b32.xlu1 %v3587_v14, 288 }
 0x1dc   : > { %2627 = vst [vmem:[%s3815_s4 + $0x560] sm:$0xff] %v2066_v21  ;;  %2628 = vst.msk [vmem:[%s3815_s4 + $0x568] sm:$0xff] %vm2455_vm8, %v2067_v25  ;;  %998 = vbcast.lane.b32.xlu0 %v3587_v14, 296 }
 0x1dd   : > { %2629 = vst [vmem:[%s3815_s4 + $0x570] sm:$0xff] %v2068_v50  ;;  %2630 = vst.msk [vmem:[%s3815_s4 + $0x578] sm:$0xff] %vm2455_vm8, %v2069_v24  ;;  %v759_v47 = vpop.permute.xlu1 %758 }
 0x1de   : > { %v2070_v2 = vmul.f32 %v3745_v12, %v759_v47  ;;  %v2071_v3 = vmul.f32 %v3748_v31, %v759_v47  ;;  %v763_v16 = vpop.permute.xlu0 %762 }
 0x1df   : > { %v2072_v26 = vmul.f32 %v3745_v12, %v763_v16  ;;  %v2073_v17 = vmul.f32 %v3748_v31, %v763_v16  ;;  %1002 = vbcast.lane.b32.xlu1 %v3587_v14, 304 }
 0x1e0   : > { %2631 = vst [vmem:[%s3815_s4 + $0x580] sm:$0xff] %v2070_v2  ;;  %2632 = vst.msk [vmem:[%s3815_s4 + $0x588] sm:$0xff] %vm2455_vm8, %v2071_v3  ;;  %1006 = vbcast.lane.b32.xlu0 %v3587_v14, 312 }
 0x1e1   : > { %2633 = vst [vmem:[%s3815_s4 + $0x590] sm:$0xff] %v2072_v26  ;;  %2634 = vst.msk [vmem:[%s3815_s4 + $0x598] sm:$0xff] %vm2455_vm8, %v2073_v17  ;;  %v767_v34 = vpop.permute.xlu1 %766 }
 0x1e2   : > { %v2074_v18 = vmul.f32 %v3745_v12, %v767_v34  ;;  %v2075_v41 = vmul.f32 %v3748_v31, %v767_v34  ;;  %v771_v29 = vpop.permute.xlu0 %770 }
 0x1e3   : > { %v2076_v53 = vmul.f32 %v3745_v12, %v771_v29  ;;  %v2077_v54 = vmul.f32 %v3748_v31, %v771_v29  ;;  %1010 = vbcast.lane.b32.xlu1 %v3587_v14, 320 }
 0x1e4   : > { %2635 = vst [vmem:[%s3815_s4 + $0x5a0] sm:$0xff] %v2074_v18  ;;  %2636 = vst.msk [vmem:[%s3815_s4 + $0x5a8] sm:$0xff] %vm2455_vm8, %v2075_v41  ;;  %1014 = vbcast.lane.b32.xlu0 %v3587_v14, 328 }
 0x1e5   : > { %2637 = vst [vmem:[%s3815_s4 + $0x5b0] sm:$0xff] %v2076_v53  ;;  %2638 = vst.msk [vmem:[%s3815_s4 + $0x5b8] sm:$0xff] %vm2455_vm8, %v2077_v54  ;;  %v775_v46 = vpop.permute.xlu1 %774 }
 0x1e6   : > { %v2078_v38 = vmul.f32 %v3745_v12, %v775_v46  ;;  %v2079_v60 = vmul.f32 %v3748_v31, %v775_v46  ;;  %v779_v63 = vpop.permute.xlu0 %778 }
 0x1e7   : > { %v2080_v49 = vmul.f32 %v3745_v12, %v779_v63  ;;  %v2081_v27 = vmul.f32 %v3748_v31, %v779_v63  ;;  %1018 = vbcast.lane.b32.xlu1 %v3587_v14, 336 }
 0x1e8   : > { %2639 = vst [vmem:[%s3815_s4 + $0x5c0] sm:$0xff] %v2078_v38  ;;  %2640 = vst.msk [vmem:[%s3815_s4 + $0x5c8] sm:$0xff] %vm2455_vm8, %v2079_v60  ;;  %1022 = vbcast.lane.b32.xlu0 %v3587_v14, 344 }
 0x1e9   : > { %2641 = vst [vmem:[%s3815_s4 + $0x5d0] sm:$0xff] %v2080_v49  ;;  %2642 = vst.msk [vmem:[%s3815_s4 + $0x5d8] sm:$0xff] %vm2455_vm8, %v2081_v27  ;;  %v783_v52 = vpop.permute.xlu1 %782 }
 0x1ea   : > { %v2082_v28 = vmul.f32 %v3745_v12, %v783_v52  ;;  %v2083_v20 = vmul.f32 %v3748_v31, %v783_v52  ;;  %v787_v61 = vpop.permute.xlu0 %786 }
 0x1eb   : > { %v2084_v21 = vmul.f32 %v3745_v12, %v787_v61  ;;  %v2085_v25 = vmul.f32 %v3748_v31, %v787_v61  ;;  %1026 = vbcast.lane.b32.xlu1 %v3587_v14, 352 }
 0x1ec   : > { %2643 = vst [vmem:[%s3815_s4 + $0x5e0] sm:$0xff] %v2082_v28  ;;  %2644 = vst.msk [vmem:[%s3815_s4 + $0x5e8] sm:$0xff] %vm2455_vm8, %v2083_v20  ;;  %1030 = vbcast.lane.b32.xlu0 %v3587_v14, 360 }
 0x1ed   : > { %2645 = vst [vmem:[%s3815_s4 + $0x5f0] sm:$0xff] %v2084_v21  ;;  %2646 = vst.msk [vmem:[%s3815_s4 + $0x5f8] sm:$0xff] %vm2455_vm8, %v2085_v25  ;;  %v791_v62 = vpop.permute.xlu1 %790 }
 0x1ee   : > { %v2086_v50 = vmul.f32 %v3745_v12, %v791_v62  ;;  %v2087_v24 = vmul.f32 %v3748_v31, %v791_v62  ;;  %v795_v47 = vpop.permute.xlu0 %794 }
 0x1ef   : > { %v2088_v2 = vmul.f32 %v3745_v12, %v795_v47  ;;  %v2089_v3 = vmul.f32 %v3748_v31, %v795_v47  ;;  %1037 = vbcast.lane.b32.xlu1 %v3589_v15, 256 }
 0x1f0   : > { %2647 = vst [vmem:[%s3815_s4 + $0x600] sm:$0xff] %v2086_v50  ;;  %2648 = vst.msk [vmem:[%s3815_s4 + $0x608] sm:$0xff] %vm2455_vm8, %v2087_v24  ;;  %1041 = vbcast.lane.b32.xlu0 %v3589_v15, 264 }
 0x1f1   : > { %2649 = vst [vmem:[%s3815_s4 + $0x610] sm:$0xff] %v2088_v2  ;;  %2650 = vst.msk [vmem:[%s3815_s4 + $0x618] sm:$0xff] %vm2455_vm8, %v2089_v3  ;;  %v802_v14 = vpop.permute.xlu1 %801 }
 0x1f2   : > { %v2090_v16 = vmul.f32 %v3751_v40, %v802_v14  ;;  %v2091_v12 = vmul.f32 %v3754_v42, %v802_v14  ;;  %v806_v26 = vpop.permute.xlu0 %805 }
 0x1f3   : > { %v2092_v31 = vmul.f32 %v3751_v40, %v806_v26  ;;  %v2093_v17 = vmul.f32 %v3754_v42, %v806_v26  ;;  %1045 = vbcast.lane.b32.xlu1 %v3589_v15, 272 }
 0x1f4   : > { %2651 = vst [vmem:[%s3815_s4 + $0x620] sm:$0xff] %v2090_v16  ;;  %2652 = vst.msk [vmem:[%s3815_s4 + $0x628] sm:$0xff] %vm2455_vm8, %v2091_v12  ;;  %1049 = vbcast.lane.b32.xlu0 %v3589_v15, 280 }
 0x1f5   : > { %2653 = vst [vmem:[%s3815_s4 + $0x630] sm:$0xff] %v2092_v31  ;;  %2654 = vst.msk [vmem:[%s3815_s4 + $0x638] sm:$0xff] %vm2455_vm8, %v2093_v17  ;;  %v810_v34 = vpop.permute.xlu1 %809 }
 0x1f6   : > { %v2094_v18 = vmul.f32 %v3751_v40, %v810_v34  ;;  %v2095_v41 = vmul.f32 %v3754_v42, %v810_v34  ;;  %v814_v29 = vpop.permute.xlu0 %813 }
 0x1f7   : > { %v2096_v53 = vmul.f32 %v3751_v40, %v814_v29  ;;  %v2097_v54 = vmul.f32 %v3754_v42, %v814_v29  ;;  %1053 = vbcast.lane.b32.xlu1 %v3589_v15, 288 }
 0x1f8   : > { %2655 = vst [vmem:[%s3815_s4 + $0x640] sm:$0xff] %v2094_v18  ;;  %2656 = vst.msk [vmem:[%s3815_s4 + $0x648] sm:$0xff] %vm2455_vm8, %v2095_v41  ;;  %1057 = vbcast.lane.b32.xlu0 %v3589_v15, 296 }
 0x1f9   : > { %2657 = vst [vmem:[%s3815_s4 + $0x650] sm:$0xff] %v2096_v53  ;;  %2658 = vst.msk [vmem:[%s3815_s4 + $0x658] sm:$0xff] %vm2455_vm8, %v2097_v54  ;;  %v818_v46 = vpop.permute.xlu1 %817 }
 0x1fa   : > { %v2098_v38 = vmul.f32 %v3751_v40, %v818_v46  ;;  %v2099_v60 = vmul.f32 %v3754_v42, %v818_v46  ;;  %v822_v63 = vpop.permute.xlu0 %821 }
 0x1fb   : > { %v2100_v49 = vmul.f32 %v3751_v40, %v822_v63  ;;  %v2101_v27 = vmul.f32 %v3754_v42, %v822_v63  ;;  %1061 = vbcast.lane.b32.xlu1 %v3589_v15, 304 }
 0x1fc   : > { %2659 = vst [vmem:[%s3815_s4 + $0x660] sm:$0xff] %v2098_v38  ;;  %2660 = vst.msk [vmem:[%s3815_s4 + $0x668] sm:$0xff] %vm2455_vm8, %v2099_v60  ;;  %1065 = vbcast.lane.b32.xlu0 %v3589_v15, 312 }
 0x1fd   : > { %2661 = vst [vmem:[%s3815_s4 + $0x670] sm:$0xff] %v2100_v49  ;;  %2662 = vst.msk [vmem:[%s3815_s4 + $0x678] sm:$0xff] %vm2455_vm8, %v2101_v27  ;;  %v826_v52 = vpop.permute.xlu1 %825 }
 0x1fe   : > { %v2102_v28 = vmul.f32 %v3751_v40, %v826_v52  ;;  %v2103_v20 = vmul.f32 %v3754_v42, %v826_v52  ;;  %v830_v61 = vpop.permute.xlu0 %829 }
 0x1ff   : > { %v2104_v21 = vmul.f32 %v3751_v40, %v830_v61  ;;  %v2105_v25 = vmul.f32 %v3754_v42, %v830_v61  ;;  %1069 = vbcast.lane.b32.xlu1 %v3589_v15, 320 }
 0x200   : > { %2663 = vst [vmem:[%s3815_s4 + $0x680] sm:$0xff] %v2102_v28  ;;  %2664 = vst.msk [vmem:[%s3815_s4 + $0x688] sm:$0xff] %vm2455_vm8, %v2103_v20  ;;  %1073 = vbcast.lane.b32.xlu0 %v3589_v15, 328 }
 0x201   : > { %2665 = vst [vmem:[%s3815_s4 + $0x690] sm:$0xff] %v2104_v21  ;;  %2666 = vst.msk [vmem:[%s3815_s4 + $0x698] sm:$0xff] %vm2455_vm8, %v2105_v25  ;;  %v834_v62 = vpop.permute.xlu1 %833 }
 0x202   : > { %v2106_v50 = vmul.f32 %v3751_v40, %v834_v62  ;;  %v2107_v24 = vmul.f32 %v3754_v42, %v834_v62  ;;  %v838_v47 = vpop.permute.xlu0 %837 }
 0x203   : > { %v2108_v2 = vmul.f32 %v3751_v40, %v838_v47  ;;  %v2109_v3 = vmul.f32 %v3754_v42, %v838_v47  ;;  %1077 = vbcast.lane.b32.xlu1 %v3589_v15, 336 }
 0x204   : > { %2667 = vst [vmem:[%s3815_s4 + $0x6a0] sm:$0xff] %v2106_v50  ;;  %2668 = vst.msk [vmem:[%s3815_s4 + $0x6a8] sm:$0xff] %vm2455_vm8, %v2107_v24  ;;  %1081 = vbcast.lane.b32.xlu0 %v3589_v15, 344 }
 0x205   : > { %2669 = vst [vmem:[%s3815_s4 + $0x6b0] sm:$0xff] %v2108_v2  ;;  %2670 = vst.msk [vmem:[%s3815_s4 + $0x6b8] sm:$0xff] %vm2455_vm8, %v2109_v3  ;;  %v842_v14 = vpop.permute.xlu1 %841 }
 0x206   : > { %v2110_v16 = vmul.f32 %v3751_v40, %v842_v14  ;;  %v2111_v12 = vmul.f32 %v3754_v42, %v842_v14  ;;  %v846_v26 = vpop.permute.xlu0 %845 }
 0x207   : > { %v2112_v31 = vmul.f32 %v3751_v40, %v846_v26  ;;  %v2113_v17 = vmul.f32 %v3754_v42, %v846_v26  ;;  %1085 = vbcast.lane.b32.xlu1 %v3589_v15, 352 }
 0x208   : > { %2671 = vst [vmem:[%s3815_s4 + $0x6c0] sm:$0xff] %v2110_v16  ;;  %2672 = vst.msk [vmem:[%s3815_s4 + $0x6c8] sm:$0xff] %vm2455_vm8, %v2111_v12  ;;  %1089 = vbcast.lane.b32.xlu0 %v3589_v15, 360 }
 0x209   : > { %2673 = vst [vmem:[%s3815_s4 + $0x6d0] sm:$0xff] %v2112_v31  ;;  %2674 = vst.msk [vmem:[%s3815_s4 + $0x6d8] sm:$0xff] %vm2455_vm8, %v2113_v17  ;;  %v850_v34 = vpop.permute.xlu1 %849 }
 0x20a   : > { %v2114_v18 = vmul.f32 %v3751_v40, %v850_v34  ;;  %v2115_v41 = vmul.f32 %v3754_v42, %v850_v34  ;;  %v854_v29 = vpop.permute.xlu0 %853 }
 0x20b   : > { %v2116_v53 = vmul.f32 %v3751_v40, %v854_v29  ;;  %v2117_v54 = vmul.f32 %v3754_v42, %v854_v29  ;;  %1096 = vbcast.lane.b32.xlu1 %v3578_v0, 256 }
 0x20c   : > { %2675 = vst [vmem:[%s3815_s4 + $0x6e0] sm:$0xff] %v2114_v18  ;;  %2676 = vst.msk [vmem:[%s3815_s4 + $0x6e8] sm:$0xff] %vm2455_vm8, %v2115_v41  ;;  %1100 = vbcast.lane.b32.xlu0 %v3578_v0, 264 }
 0x20d   : > { %2677 = vst [vmem:[%s3815_s4 + $0x6f0] sm:$0xff] %v2116_v53  ;;  %2678 = vst.msk [vmem:[%s3815_s4 + $0x6f8] sm:$0xff] %vm2455_vm8, %v2117_v54  ;;  %v861_v15 = vpop.permute.xlu1 %860 }
 0x20e   : > { %v2118_v46 = vmul.f32 %v3652_v30, %v861_v15  ;;  %v2119_v40 = vmul.f32 %v3655_v1, %v861_v15  ;;  %v865_v38 = vpop.permute.xlu0 %864 }
 0x20f   : > { %v2120_v42 = vmul.f32 %v3652_v30, %v865_v38  ;;  %v2121_v60 = vmul.f32 %v3655_v1, %v865_v38  ;;  %1104 = vbcast.lane.b32.xlu1 %v3578_v0, 272 }
 0x210   : > { %2679 = vst [vmem:[%s3815_s4 + $0x700] sm:$0xff] %v2118_v46  ;;  %2680 = vst.msk [vmem:[%s3815_s4 + $0x708] sm:$0xff] %vm2455_vm8, %v2119_v40  ;;  %1108 = vbcast.lane.b32.xlu0 %v3578_v0, 280 }
 0x211   : > { %2681 = vst [vmem:[%s3815_s4 + $0x710] sm:$0xff] %v2120_v42  ;;  %2682 = vst.msk [vmem:[%s3815_s4 + $0x718] sm:$0xff] %vm2455_vm8, %v2121_v60  ;;  %v869_v63 = vpop.permute.xlu1 %868 }
 0x212   : > { %v2122_v49 = vmul.f32 %v3652_v30, %v869_v63  ;;  %v2123_v27 = vmul.f32 %v3655_v1, %v869_v63  ;;  %v873_v52 = vpop.permute.xlu0 %872 }
 0x213   : > { %v2124_v28 = vmul.f32 %v3652_v30, %v873_v52  ;;  %v2125_v20 = vmul.f32 %v3655_v1, %v873_v52  ;;  %1112 = vbcast.lane.b32.xlu1 %v3578_v0, 288 }
 0x214   : > { %2683 = vst [vmem:[%s3815_s4 + $0x720] sm:$0xff] %v2122_v49  ;;  %2684 = vst.msk [vmem:[%s3815_s4 + $0x728] sm:$0xff] %vm2455_vm8, %v2123_v27  ;;  %1116 = vbcast.lane.b32.xlu0 %v3578_v0, 296 }
 0x215   : > { %2685 = vst [vmem:[%s3815_s4 + $0x730] sm:$0xff] %v2124_v28  ;;  %2686 = vst.msk [vmem:[%s3815_s4 + $0x738] sm:$0xff] %vm2455_vm8, %v2125_v20  ;;  %v877_v61 = vpop.permute.xlu1 %876 }
 0x216   : > { %v2126_v21 = vmul.f32 %v3652_v30, %v877_v61  ;;  %v2127_v25 = vmul.f32 %v3655_v1, %v877_v61  ;;  %v881_v62 = vpop.permute.xlu0 %880 }
 0x217   : > { %v2128_v50 = vmul.f32 %v3652_v30, %v881_v62  ;;  %v2129_v24 = vmul.f32 %v3655_v1, %v881_v62  ;;  %1120 = vbcast.lane.b32.xlu1 %v3578_v0, 304 }
 0x218   : > { %2687 = vst [vmem:[%s3815_s4 + $0x740] sm:$0xff] %v2126_v21  ;;  %2688 = vst.msk [vmem:[%s3815_s4 + $0x748] sm:$0xff] %vm2455_vm8, %v2127_v25  ;;  %1124 = vbcast.lane.b32.xlu0 %v3578_v0, 312 }
 0x219   : > { %2689 = vst [vmem:[%s3815_s4 + $0x750] sm:$0xff] %v2128_v50  ;;  %2690 = vst.msk [vmem:[%s3815_s4 + $0x758] sm:$0xff] %vm2455_vm8, %v2129_v24  ;;  %v885_v47 = vpop.permute.xlu1 %884 }
 0x21a   : > { %v2130_v2 = vmul.f32 %v3652_v30, %v885_v47  ;;  %v2131_v3 = vmul.f32 %v3655_v1, %v885_v47  ;;  %v889_v14 = vpop.permute.xlu0 %888 }
 0x21b   : > { %v2132_v16 = vmul.f32 %v3652_v30, %v889_v14  ;;  %v2133_v12 = vmul.f32 %v3655_v1, %v889_v14  ;;  %1128 = vbcast.lane.b32.xlu1 %v3578_v0, 320 }
 0x21c   : > { %2691 = vst [vmem:[%s3815_s4 + $0x760] sm:$0xff] %v2130_v2  ;;  %2692 = vst.msk [vmem:[%s3815_s4 + $0x768] sm:$0xff] %vm2455_vm8, %v2131_v3  ;;  %1132 = vbcast.lane.b32.xlu0 %v3578_v0, 328 }
 0x21d   : > { %2693 = vst [vmem:[%s3815_s4 + $0x770] sm:$0xff] %v2132_v16  ;;  %2694 = vst.msk [vmem:[%s3815_s4 + $0x778] sm:$0xff] %vm2455_vm8, %v2133_v12  ;;  %v893_v26 = vpop.permute.xlu1 %892 }
 0x21e   : > { %v2134_v31 = vmul.f32 %v3652_v30, %v893_v26  ;;  %v2135_v17 = vmul.f32 %v3655_v1, %v893_v26  ;;  %v897_v34 = vpop.permute.xlu0 %896 }
 0x21f   : > { %v2136_v18 = vmul.f32 %v3652_v30, %v897_v34  ;;  %v2137_v41 = vmul.f32 %v3655_v1, %v897_v34  ;;  %1136 = vbcast.lane.b32.xlu1 %v3578_v0, 336 }
 0x220   : > { %2695 = vst [vmem:[%s3815_s4 + $0x780] sm:$0xff] %v2134_v31  ;;  %2696 = vst.msk [vmem:[%s3815_s4 + $0x788] sm:$0xff] %vm2455_vm8, %v2135_v17  ;;  %1140 = vbcast.lane.b32.xlu0 %v3578_v0, 344 }
 0x221   : > { %2697 = vst [vmem:[%s3815_s4 + $0x790] sm:$0xff] %v2136_v18  ;;  %2698 = vst.msk [vmem:[%s3815_s4 + $0x798] sm:$0xff] %vm2455_vm8, %v2137_v41  ;;  %v901_v29 = vpop.permute.xlu1 %900 }
 0x222   : > { %v2138_v53 = vmul.f32 %v3652_v30, %v901_v29  ;;  %v2139_v54 = vmul.f32 %v3655_v1, %v901_v29  ;;  %v905_v15 = vpop.permute.xlu0 %904 }
 0x223   : > { %v2140_v46 = vmul.f32 %v3652_v30, %v905_v15  ;;  %v2141_v40 = vmul.f32 %v3655_v1, %v905_v15  ;;  %1144 = vbcast.lane.b32.xlu1 %v3578_v0, 352 }
 0x224   : > { %2699 = vst [vmem:[%s3815_s4 + $0x7a0] sm:$0xff] %v2138_v53  ;;  %2700 = vst.msk [vmem:[%s3815_s4 + $0x7a8] sm:$0xff] %vm2455_vm8, %v2139_v54  ;;  %1148 = vbcast.lane.b32.xlu0 %v3578_v0, 360 }
 0x225   : > { %2701 = vst [vmem:[%s3815_s4 + $0x7b0] sm:$0xff] %v2140_v46  ;;  %2702 = vst.msk [vmem:[%s3815_s4 + $0x7b8] sm:$0xff] %vm2455_vm8, %v2141_v40  ;;  %v909_v38 = vpop.permute.xlu1 %908 }
 0x226   : > { %v2142_v42 = vmul.f32 %v3652_v30, %v909_v38  ;;  %v2143_v60 = vmul.f32 %v3655_v1, %v909_v38  ;;  %v913_v63 = vpop.permute.xlu0 %912 }
 0x227   : > { %v2144_v49 = vmul.f32 %v3652_v30, %v913_v63  ;;  %v2145_v27 = vmul.f32 %v3655_v1, %v913_v63  ;;  %1155 = vbcast.lane.b32.xlu1 %v3580_v6, 256 }
 0x228   : > { %2703 = vst [vmem:[%s3815_s4 + $0x7c0] sm:$0xff] %v2142_v42  ;;  %2704 = vst.msk [vmem:[%s3815_s4 + $0x7c8] sm:$0xff] %vm2455_vm8, %v2143_v60  ;;  %1159 = vbcast.lane.b32.xlu0 %v3580_v6, 264 }
 0x229   : > { %2705 = vst [vmem:[%s3815_s4 + $0x7d0] sm:$0xff] %v2144_v49  ;;  %2706 = vst.msk [vmem:[%s3815_s4 + $0x7d8] sm:$0xff] %vm2455_vm8, %v2145_v27  ;;  %v920_v0 = vpop.permute.xlu1 %919 }
 0x22a   : > { %v2146_v52 = vmul.f32 %v3665_v5, %v920_v0  ;;  %v2147_v30 = vmul.f32 %v3668_v32, %v920_v0  ;;  %v924_v28 = vpop.permute.xlu0 %923 }
 0x22b   : > { %v2148_v1 = vmul.f32 %v3665_v5, %v924_v28  ;;  %v2149_v20 = vmul.f32 %v3668_v32, %v924_v28  ;;  %1163 = vbcast.lane.b32.xlu1 %v3580_v6, 272 }
 0x22c   : > { %2707 = vst [vmem:[%s3815_s4 + $0x7e0] sm:$0xff] %v2146_v52  ;;  %2708 = vst.msk [vmem:[%s3815_s4 + $0x7e8] sm:$0xff] %vm2455_vm8, %v2147_v30  ;;  %1167 = vbcast.lane.b32.xlu0 %v3580_v6, 280 }
 0x22d   : > { %2709 = vst [vmem:[%s3815_s4 + $0x7f0] sm:$0xff] %v2148_v1  ;;  %2710 = vst.msk [vmem:[%s3815_s4 + $0x7f8] sm:$0xff] %vm2455_vm8, %v2149_v20  ;;  %v928_v61 = vpop.permute.xlu1 %927 }
 0x22e   : > { %v2150_v21 = vmul.f32 %v3665_v5, %v928_v61  ;;  %v2151_v25 = vmul.f32 %v3668_v32, %v928_v61  ;;  %v932_v62 = vpop.permute.xlu0 %931 }
 0x22f   : > { %v2152_v50 = vmul.f32 %v3665_v5, %v932_v62  ;;  %v2153_v24 = vmul.f32 %v3668_v32, %v932_v62  ;;  %1171 = vbcast.lane.b32.xlu1 %v3580_v6, 288 }
 0x230   : > { %2711 = vst [vmem:[%s3815_s4 + $0x800] sm:$0xff] %v2150_v21  ;;  %2712 = vst.msk [vmem:[%s3815_s4 + $0x808] sm:$0xff] %vm2455_vm8, %v2151_v25  ;;  %1175 = vbcast.lane.b32.xlu0 %v3580_v6, 296 }
 0x231   : > { %2713 = vst [vmem:[%s3815_s4 + $0x810] sm:$0xff] %v2152_v50  ;;  %2714 = vst.msk [vmem:[%s3815_s4 + $0x818] sm:$0xff] %vm2455_vm8, %v2153_v24  ;;  %v936_v47 = vpop.permute.xlu1 %935 }
 0x232   : > { %v2154_v2 = vmul.f32 %v3665_v5, %v936_v47  ;;  %v2155_v3 = vmul.f32 %v3668_v32, %v936_v47  ;;  %v940_v14 = vpop.permute.xlu0 %939 }
 0x233   : > { %v2156_v16 = vmul.f32 %v3665_v5, %v940_v14  ;;  %v2157_v12 = vmul.f32 %v3668_v32, %v940_v14  ;;  %1179 = vbcast.lane.b32.xlu1 %v3580_v6, 304 }
 0x234   : > { %2715 = vst [vmem:[%s3815_s4 + $0x820] sm:$0xff] %v2154_v2  ;;  %2716 = vst.msk [vmem:[%s3815_s4 + $0x828] sm:$0xff] %vm2455_vm8, %v2155_v3  ;;  %1183 = vbcast.lane.b32.xlu0 %v3580_v6, 312 }
 0x235   : > { %2717 = vst [vmem:[%s3815_s4 + $0x830] sm:$0xff] %v2156_v16  ;;  %2718 = vst.msk [vmem:[%s3815_s4 + $0x838] sm:$0xff] %vm2455_vm8, %v2157_v12  ;;  %v944_v26 = vpop.permute.xlu1 %943 }
 0x236   : > { %v2158_v31 = vmul.f32 %v3665_v5, %v944_v26  ;;  %v2159_v17 = vmul.f32 %v3668_v32, %v944_v26  ;;  %v948_v34 = vpop.permute.xlu0 %947 }
 0x237   : > { %v2160_v18 = vmul.f32 %v3665_v5, %v948_v34  ;;  %v2161_v41 = vmul.f32 %v3668_v32, %v948_v34  ;;  %1187 = vbcast.lane.b32.xlu1 %v3580_v6, 320 }
 0x238   : > { %2719 = vst [vmem:[%s3815_s4 + $0x840] sm:$0xff] %v2158_v31  ;;  %2720 = vst.msk [vmem:[%s3815_s4 + $0x848] sm:$0xff] %vm2455_vm8, %v2159_v17  ;;  %1191 = vbcast.lane.b32.xlu0 %v3580_v6, 328 }
 0x239   : > { %2721 = vst [vmem:[%s3815_s4 + $0x850] sm:$0xff] %v2160_v18  ;;  %2722 = vst.msk [vmem:[%s3815_s4 + $0x858] sm:$0xff] %vm2455_vm8, %v2161_v41  ;;  %v952_v29 = vpop.permute.xlu1 %951 }
 0x23a   : > { %v2162_v53 = vmul.f32 %v3665_v5, %v952_v29  ;;  %v2163_v54 = vmul.f32 %v3668_v32, %v952_v29  ;;  %v956_v15 = vpop.permute.xlu0 %955 }
 0x23b   : > { %v2164_v46 = vmul.f32 %v3665_v5, %v956_v15  ;;  %v2165_v40 = vmul.f32 %v3668_v32, %v956_v15  ;;  %1195 = vbcast.lane.b32.xlu1 %v3580_v6, 336 }
 0x23c   : > { %2723 = vst [vmem:[%s3815_s4 + $0x860] sm:$0xff] %v2162_v53  ;;  %2724 = vst.msk [vmem:[%s3815_s4 + $0x868] sm:$0xff] %vm2455_vm8, %v2163_v54  ;;  %1199 = vbcast.lane.b32.xlu0 %v3580_v6, 344 }
 0x23d   : > { %2725 = vst [vmem:[%s3815_s4 + $0x870] sm:$0xff] %v2164_v46  ;;  %2726 = vst.msk [vmem:[%s3815_s4 + $0x878] sm:$0xff] %vm2455_vm8, %v2165_v40  ;;  %v960_v38 = vpop.permute.xlu1 %959 }
 0x23e   : > { %v2166_v42 = vmul.f32 %v3665_v5, %v960_v38  ;;  %v2167_v60 = vmul.f32 %v3668_v32, %v960_v38  ;;  %v964_v63 = vpop.permute.xlu0 %963 }
 0x23f   : > { %v2168_v49 = vmul.f32 %v3665_v5, %v964_v63  ;;  %v2169_v27 = vmul.f32 %v3668_v32, %v964_v63  ;;  %1203 = vbcast.lane.b32.xlu1 %v3580_v6, 352 }
 0x240   : > { %2727 = vst [vmem:[%s3815_s4 + $0x880] sm:$0xff] %v2166_v42  ;;  %2728 = vst.msk [vmem:[%s3815_s4 + $0x888] sm:$0xff] %vm2455_vm8, %v2167_v60  ;;  %1207 = vbcast.lane.b32.xlu0 %v3580_v6, 360 }
 0x241   : > { %2729 = vst [vmem:[%s3815_s4 + $0x890] sm:$0xff] %v2168_v49  ;;  %2730 = vst.msk [vmem:[%s3815_s4 + $0x898] sm:$0xff] %vm2455_vm8, %v2169_v27  ;;  %v968_v0 = vpop.permute.xlu1 %967 }
 0x242   : > { %v2170_v52 = vmul.f32 %v3665_v5, %v968_v0  ;;  %v2171_v30 = vmul.f32 %v3668_v32, %v968_v0  ;;  %v972_v28 = vpop.permute.xlu0 %971 }
 0x243   : > { %v2172_v1 = vmul.f32 %v3665_v5, %v972_v28  ;;  %v2173_v20 = vmul.f32 %v3668_v32, %v972_v28  ;;  %1214 = vbcast.lane.b32.xlu1 %v3582_v11, 256 }
 0x244   : > { %2731 = vst [vmem:[%s3815_s4 + $0x8a0] sm:$0xff] %v2170_v52  ;;  %2732 = vst.msk [vmem:[%s3815_s4 + $0x8a8] sm:$0xff] %vm2455_vm8, %v2171_v30  ;;  %1218 = vbcast.lane.b32.xlu0 %v3582_v11, 264 }
 0x245   : > { %2733 = vst [vmem:[%s3815_s4 + $0x8b0] sm:$0xff] %v2172_v1  ;;  %2734 = vst.msk [vmem:[%s3815_s4 + $0x8b8] sm:$0xff] %vm2455_vm8, %v2173_v20  ;;  %v979_v6 = vpop.permute.xlu1 %978 }
 0x246   : > { %v2174_v61 = vmul.f32 %v3671_v7, %v979_v6  ;;  %v2175_v5 = vmul.f32 %v3674_v9, %v979_v6  ;;  %v983_v21 = vpop.permute.xlu0 %982 }
 0x247   : > { %v2176_v32 = vmul.f32 %v3671_v7, %v983_v21  ;;  %v2177_v25 = vmul.f32 %v3674_v9, %v983_v21  ;;  %1222 = vbcast.lane.b32.xlu1 %v3582_v11, 272 }
 0x248   : > { %2735 = vst [vmem:[%s3815_s4 + $0x8c0] sm:$0xff] %v2174_v61  ;;  %2736 = vst.msk [vmem:[%s3815_s4 + $0x8c8] sm:$0xff] %vm2455_vm8, %v2175_v5  ;;  %1226 = vbcast.lane.b32.xlu0 %v3582_v11, 280 }
 0x249   : > { %2737 = vst [vmem:[%s3815_s4 + $0x8d0] sm:$0xff] %v2176_v32  ;;  %2738 = vst.msk [vmem:[%s3815_s4 + $0x8d8] sm:$0xff] %vm2455_vm8, %v2177_v25  ;;  %v987_v62 = vpop.permute.xlu1 %986 }
 0x24a   : > { %v2178_v50 = vmul.f32 %v3671_v7, %v987_v62  ;;  %v2179_v24 = vmul.f32 %v3674_v9, %v987_v62  ;;  %v991_v47 = vpop.permute.xlu0 %990 }
 0x24b   : > { %v2180_v2 = vmul.f32 %v3671_v7, %v991_v47  ;;  %v2181_v3 = vmul.f32 %v3674_v9, %v991_v47  ;;  %1230 = vbcast.lane.b32.xlu1 %v3582_v11, 288 }
 0x24c   : > { %2739 = vst [vmem:[%s3815_s4 + $0x8e0] sm:$0xff] %v2178_v50  ;;  %2740 = vst.msk [vmem:[%s3815_s4 + $0x8e8] sm:$0xff] %vm2455_vm8, %v2179_v24  ;;  %1234 = vbcast.lane.b32.xlu0 %v3582_v11, 296 }
 0x24d   : > { %2741 = vst [vmem:[%s3815_s4 + $0x8f0] sm:$0xff] %v2180_v2  ;;  %2742 = vst.msk [vmem:[%s3815_s4 + $0x8f8] sm:$0xff] %vm2455_vm8, %v2181_v3  ;;  %v995_v14 = vpop.permute.xlu1 %994 }
 0x24e   : > { %v2182_v16 = vmul.f32 %v3671_v7, %v995_v14  ;;  %v2183_v12 = vmul.f32 %v3674_v9, %v995_v14  ;;  %v999_v26 = vpop.permute.xlu0 %998 }
 0x24f   : > { %v2184_v31 = vmul.f32 %v3671_v7, %v999_v26  ;;  %v2185_v17 = vmul.f32 %v3674_v9, %v999_v26  ;;  %1238 = vbcast.lane.b32.xlu1 %v3582_v11, 304 }
 0x250   : > { %2743 = vst [vmem:[%s3815_s4 + $0x900] sm:$0xff] %v2182_v16  ;;  %2744 = vst.msk [vmem:[%s3815_s4 + $0x908] sm:$0xff] %vm2455_vm8, %v2183_v12  ;;  %1242 = vbcast.lane.b32.xlu0 %v3582_v11, 312 }
 0x251   : > { %2745 = vst [vmem:[%s3815_s4 + $0x910] sm:$0xff] %v2184_v31  ;;  %2746 = vst.msk [vmem:[%s3815_s4 + $0x918] sm:$0xff] %vm2455_vm8, %v2185_v17  ;;  %v1003_v34 = vpop.permute.xlu1 %1002 }
 0x252   : > { %v2186_v18 = vmul.f32 %v3671_v7, %v1003_v34  ;;  %v2187_v41 = vmul.f32 %v3674_v9, %v1003_v34  ;;  %v1007_v29 = vpop.permute.xlu0 %1006 }
 0x253   : > { %v2188_v53 = vmul.f32 %v3671_v7, %v1007_v29  ;;  %v2189_v54 = vmul.f32 %v3674_v9, %v1007_v29  ;;  %1246 = vbcast.lane.b32.xlu1 %v3582_v11, 320 }
 0x254   : > { %2747 = vst [vmem:[%s3815_s4 + $0x920] sm:$0xff] %v2186_v18  ;;  %2748 = vst.msk [vmem:[%s3815_s4 + $0x928] sm:$0xff] %vm2455_vm8, %v2187_v41  ;;  %1250 = vbcast.lane.b32.xlu0 %v3582_v11, 328 }
 0x255   : > { %2749 = vst [vmem:[%s3815_s4 + $0x930] sm:$0xff] %v2188_v53  ;;  %2750 = vst.msk [vmem:[%s3815_s4 + $0x938] sm:$0xff] %vm2455_vm8, %v2189_v54  ;;  %v1011_v15 = vpop.permute.xlu1 %1010 }
 0x256   : > { %v2190_v46 = vmul.f32 %v3671_v7, %v1011_v15  ;;  %v2191_v40 = vmul.f32 %v3674_v9, %v1011_v15  ;;  %v1015_v38 = vpop.permute.xlu0 %1014 }
 0x257   : > { %v2192_v42 = vmul.f32 %v3671_v7, %v1015_v38  ;;  %v2193_v60 = vmul.f32 %v3674_v9, %v1015_v38  ;;  %1254 = vbcast.lane.b32.xlu1 %v3582_v11, 336 }
 0x258   : > { %2751 = vst [vmem:[%s3815_s4 + $0x940] sm:$0xff] %v2190_v46  ;;  %2752 = vst.msk [vmem:[%s3815_s4 + $0x948] sm:$0xff] %vm2455_vm8, %v2191_v40  ;;  %1258 = vbcast.lane.b32.xlu0 %v3582_v11, 344 }
 0x259   : > { %2753 = vst [vmem:[%s3815_s4 + $0x950] sm:$0xff] %v2192_v42  ;;  %2754 = vst.msk [vmem:[%s3815_s4 + $0x958] sm:$0xff] %vm2455_vm8, %v2193_v60  ;;  %v1019_v63 = vpop.permute.xlu1 %1018 }
 0x25a   : > { %v2194_v49 = vmul.f32 %v3671_v7, %v1019_v63  ;;  %v2195_v27 = vmul.f32 %v3674_v9, %v1019_v63  ;;  %v1023_v0 = vpop.permute.xlu0 %1022 }
 0x25b   : > { %v2196_v52 = vmul.f32 %v3671_v7, %v1023_v0  ;;  %v2197_v30 = vmul.f32 %v3674_v9, %v1023_v0  ;;  %1262 = vbcast.lane.b32.xlu1 %v3582_v11, 352 }
 0x25c   : > { %2755 = vst [vmem:[%s3815_s4 + $0x960] sm:$0xff] %v2194_v49  ;;  %2756 = vst.msk [vmem:[%s3815_s4 + $0x968] sm:$0xff] %vm2455_vm8, %v2195_v27  ;;  %1266 = vbcast.lane.b32.xlu0 %v3582_v11, 360 }
 0x25d   : > { %2757 = vst [vmem:[%s3815_s4 + $0x970] sm:$0xff] %v2196_v52  ;;  %2758 = vst.msk [vmem:[%s3815_s4 + $0x978] sm:$0xff] %vm2455_vm8, %v2197_v30  ;;  %v1027_v28 = vpop.permute.xlu1 %1026 }
 0x25e   : > { %v2198_v1 = vmul.f32 %v3671_v7, %v1027_v28  ;;  %v2199_v20 = vmul.f32 %v3674_v9, %v1027_v28  ;;  %v1031_v6 = vpop.permute.xlu0 %1030 }
 0x25f   : > { %v2200_v61 = vmul.f32 %v3671_v7, %v1031_v6  ;;  %v2201_v5 = vmul.f32 %v3674_v9, %v1031_v6  ;;  %1273 = vbcast.lane.b32.xlu1 %v3584_v13, 256 }
 0x260   : > { %2759 = vst [vmem:[%s3815_s4 + $0x980] sm:$0xff] %v2198_v1  ;;  %2760 = vst.msk [vmem:[%s3815_s4 + $0x988] sm:$0xff] %vm2455_vm8, %v2199_v20  ;;  %1277 = vbcast.lane.b32.xlu0 %v3584_v13, 264 }
 0x261   : > { %2761 = vst [vmem:[%s3815_s4 + $0x990] sm:$0xff] %v2200_v61  ;;  %2762 = vst.msk [vmem:[%s3815_s4 + $0x998] sm:$0xff] %vm2455_vm8, %v2201_v5  ;;  %v1038_v11 = vpop.permute.xlu1 %1037 }
 0x262   : > { %v2202_v21 = vmul.f32 %v3683_v23, %v1038_v11  ;;  %v2203_v7 = vmul.f32 %v3686_v35, %v1038_v11  ;;  %v1042_v32 = vpop.permute.xlu0 %1041 }
 0x263   : > { %v2204_v9 = vmul.f32 %v3683_v23, %v1042_v32  ;;  %v2205_v25 = vmul.f32 %v3686_v35, %v1042_v32  ;;  %1281 = vbcast.lane.b32.xlu1 %v3584_v13, 272 }
 0x264   : > { %2763 = vst [vmem:[%s3815_s4 + $0x9a0] sm:$0xff] %v2202_v21  ;;  %2764 = vst.msk [vmem:[%s3815_s4 + $0x9a8] sm:$0xff] %vm2455_vm8, %v2203_v7  ;;  %1285 = vbcast.lane.b32.xlu0 %v3584_v13, 280 }
 0x265   : > { %2765 = vst [vmem:[%s3815_s4 + $0x9b0] sm:$0xff] %v2204_v9  ;;  %2766 = vst.msk [vmem:[%s3815_s4 + $0x9b8] sm:$0xff] %vm2455_vm8, %v2205_v25  ;;  %v1046_v62 = vpop.permute.xlu1 %1045 }
 0x266   : > { %v2206_v50 = vmul.f32 %v3683_v23, %v1046_v62  ;;  %v2207_v24 = vmul.f32 %v3686_v35, %v1046_v62  ;;  %v1050_v47 = vpop.permute.xlu0 %1049 }
 0x267   : > { %v2208_v2 = vmul.f32 %v3683_v23, %v1050_v47  ;;  %v2209_v3 = vmul.f32 %v3686_v35, %v1050_v47  ;;  %1289 = vbcast.lane.b32.xlu1 %v3584_v13, 288 }
 0x268   : > { %2767 = vst [vmem:[%s3815_s4 + $0x9c0] sm:$0xff] %v2206_v50  ;;  %2768 = vst.msk [vmem:[%s3815_s4 + $0x9c8] sm:$0xff] %vm2455_vm8, %v2207_v24  ;;  %1293 = vbcast.lane.b32.xlu0 %v3584_v13, 296 }
 0x269   : > { %2769 = vst [vmem:[%s3815_s4 + $0x9d0] sm:$0xff] %v2208_v2  ;;  %2770 = vst.msk [vmem:[%s3815_s4 + $0x9d8] sm:$0xff] %vm2455_vm8, %v2209_v3  ;;  %v1054_v14 = vpop.permute.xlu1 %1053 }
 0x26a   : > { %v2210_v16 = vmul.f32 %v3683_v23, %v1054_v14  ;;  %v2211_v12 = vmul.f32 %v3686_v35, %v1054_v14  ;;  %v1058_v26 = vpop.permute.xlu0 %1057 }
 0x26b   : > { %v2212_v31 = vmul.f32 %v3683_v23, %v1058_v26  ;;  %v2213_v17 = vmul.f32 %v3686_v35, %v1058_v26  ;;  %1297 = vbcast.lane.b32.xlu1 %v3584_v13, 304 }
 0x26c   : > { %2771 = vst [vmem:[%s3815_s4 + $0x9e0] sm:$0xff] %v2210_v16  ;;  %2772 = vst.msk [vmem:[%s3815_s4 + $0x9e8] sm:$0xff] %vm2455_vm8, %v2211_v12  ;;  %1301 = vbcast.lane.b32.xlu0 %v3584_v13, 312 }
 0x26d   : > { %2773 = vst [vmem:[%s3815_s4 + $0x9f0] sm:$0xff] %v2212_v31  ;;  %2774 = vst.msk [vmem:[%s3815_s4 + $0x9f8] sm:$0xff] %vm2455_vm8, %v2213_v17  ;;  %v1062_v34 = vpop.permute.xlu1 %1061 }
 0x26e   : > { %v2214_v18 = vmul.f32 %v3683_v23, %v1062_v34  ;;  %v2215_v41 = vmul.f32 %v3686_v35, %v1062_v34  ;;  %v1066_v29 = vpop.permute.xlu0 %1065 }
 0x26f   : > { %v2216_v53 = vmul.f32 %v3683_v23, %v1066_v29  ;;  %v2217_v54 = vmul.f32 %v3686_v35, %v1066_v29  ;;  %1305 = vbcast.lane.b32.xlu1 %v3584_v13, 320 }
 0x270   : > { %2775 = vst [vmem:[%s3815_s4 + $0xa00] sm:$0xff] %v2214_v18  ;;  %2776 = vst.msk [vmem:[%s3815_s4 + $0xa08] sm:$0xff] %vm2455_vm8, %v2215_v41  ;;  %1309 = vbcast.lane.b32.xlu0 %v3584_v13, 328 }
 0x271   : > { %2777 = vst [vmem:[%s3815_s4 + $0xa10] sm:$0xff] %v2216_v53  ;;  %2778 = vst.msk [vmem:[%s3815_s4 + $0xa18] sm:$0xff] %vm2455_vm8, %v2217_v54  ;;  %v1070_v15 = vpop.permute.xlu1 %1069 }
 0x272   : > { %v2218_v46 = vmul.f32 %v3683_v23, %v1070_v15  ;;  %v2219_v40 = vmul.f32 %v3686_v35, %v1070_v15  ;;  %v1074_v38 = vpop.permute.xlu0 %1073 }
 0x273   : > { %v2220_v42 = vmul.f32 %v3683_v23, %v1074_v38  ;;  %v2221_v60 = vmul.f32 %v3686_v35, %v1074_v38  ;;  %1313 = vbcast.lane.b32.xlu1 %v3584_v13, 336 }
 0x274   : > { %2779 = vst [vmem:[%s3815_s4 + $0xa20] sm:$0xff] %v2218_v46  ;;  %2780 = vst.msk [vmem:[%s3815_s4 + $0xa28] sm:$0xff] %vm2455_vm8, %v2219_v40  ;;  %1317 = vbcast.lane.b32.xlu0 %v3584_v13, 344 }
 0x275   : > { %2781 = vst [vmem:[%s3815_s4 + $0xa30] sm:$0xff] %v2220_v42  ;;  %2782 = vst.msk [vmem:[%s3815_s4 + $0xa38] sm:$0xff] %vm2455_vm8, %v2221_v60  ;;  %v1078_v63 = vpop.permute.xlu1 %1077 }
 0x276   : > { %v2222_v49 = vmul.f32 %v3683_v23, %v1078_v63  ;;  %v2223_v27 = vmul.f32 %v3686_v35, %v1078_v63  ;;  %v1082_v0 = vpop.permute.xlu0 %1081 }
 0x277   : > { %v2224_v52 = vmul.f32 %v3683_v23, %v1082_v0  ;;  %v2225_v30 = vmul.f32 %v3686_v35, %v1082_v0  ;;  %1321 = vbcast.lane.b32.xlu1 %v3584_v13, 352 }
 0x278   : > { %2783 = vst [vmem:[%s3815_s4 + $0xa40] sm:$0xff] %v2222_v49  ;;  %2784 = vst.msk [vmem:[%s3815_s4 + $0xa48] sm:$0xff] %vm2455_vm8, %v2223_v27  ;;  %1325 = vbcast.lane.b32.xlu0 %v3584_v13, 360 }
 0x279   : > { %2785 = vst [vmem:[%s3815_s4 + $0xa50] sm:$0xff] %v2224_v52  ;;  %2786 = vst.msk [vmem:[%s3815_s4 + $0xa58] sm:$0xff] %vm2455_vm8, %v2225_v30  ;;  %v1086_v28 = vpop.permute.xlu1 %1085 }
 0x27a   : > { %v2226_v1 = vmul.f32 %v3683_v23, %v1086_v28  ;;  %v2227_v20 = vmul.f32 %v3686_v35, %v1086_v28  ;;  %v1090_v6 = vpop.permute.xlu0 %1089 }
 0x27b   : > { %v2228_v61 = vmul.f32 %v3683_v23, %v1090_v6  ;;  %v2229_v5 = vmul.f32 %v3686_v35, %v1090_v6  ;;  %1332 = vbcast.lane.b32.xlu1 %v3558_v55, 256 }
 0x27c   : > { %2787 = vst [vmem:[%s3815_s4 + $0xa60] sm:$0xff] %v2226_v1  ;;  %2788 = vst.msk [vmem:[%s3815_s4 + $0xa68] sm:$0xff] %vm2455_vm8, %v2227_v20  ;;  %1336 = vbcast.lane.b32.xlu0 %v3558_v55, 264 }
 0x27d   : > { %2789 = vst [vmem:[%s3815_s4 + $0xa70] sm:$0xff] %v2228_v61  ;;  %2790 = vst.msk [vmem:[%s3815_s4 + $0xa78] sm:$0xff] %vm2455_vm8, %v2229_v5  ;;  %v1097_v13 = vpop.permute.xlu1 %1096 }
 0x27e   : > { %v2230_v11 = vmul.f32 %v3658_v8, %v1097_v13  ;;  %v2231_v23 = vmul.f32 %v3661_v10, %v1097_v13  ;;  %v1101_v21 = vpop.permute.xlu0 %1100 }
 0x27f   : > { %v2232_v35 = vmul.f32 %v3658_v8, %v1101_v21  ;;  %v2233_v7 = vmul.f32 %v3661_v10, %v1101_v21  ;;  %1340 = vbcast.lane.b32.xlu1 %v3558_v55, 272 }
 0x280   : > { %2791 = vst [vmem:[%s3815_s4 + $0xa80] sm:$0xff] %v2230_v11  ;;  %2792 = vst.msk [vmem:[%s3815_s4 + $0xa88] sm:$0xff] %vm2455_vm8, %v2231_v23  ;;  %1344 = vbcast.lane.b32.xlu0 %v3558_v55, 280 }
 0x281   : > { %2793 = vst [vmem:[%s3815_s4 + $0xa90] sm:$0xff] %v2232_v35  ;;  %2794 = vst.msk [vmem:[%s3815_s4 + $0xa98] sm:$0xff] %vm2455_vm8, %v2233_v7  ;;  %v1105_v32 = vpop.permute.xlu1 %1104 }
 0x282   : > { %v2234_v9 = vmul.f32 %v3658_v8, %v1105_v32  ;;  %v2235_v25 = vmul.f32 %v3661_v10, %v1105_v32  ;;  %v1109_v62 = vpop.permute.xlu0 %1108 }
 0x283   : > { %v2236_v50 = vmul.f32 %v3658_v8, %v1109_v62  ;;  %v2237_v24 = vmul.f32 %v3661_v10, %v1109_v62  ;;  %1348 = vbcast.lane.b32.xlu1 %v3558_v55, 288 }
 0x284   : > { %2795 = vst [vmem:[%s3815_s4 + $0xaa0] sm:$0xff] %v2234_v9  ;;  %2796 = vst.msk [vmem:[%s3815_s4 + $0xaa8] sm:$0xff] %vm2455_vm8, %v2235_v25  ;;  %1352 = vbcast.lane.b32.xlu0 %v3558_v55, 296 }
 0x285   : > { %2797 = vst [vmem:[%s3815_s4 + $0xab0] sm:$0xff] %v2236_v50  ;;  %2798 = vst.msk [vmem:[%s3815_s4 + $0xab8] sm:$0xff] %vm2455_vm8, %v2237_v24  ;;  %v1113_v47 = vpop.permute.xlu1 %1112 }
 0x286   : > { %v2238_v2 = vmul.f32 %v3658_v8, %v1113_v47  ;;  %v2239_v3 = vmul.f32 %v3661_v10, %v1113_v47  ;;  %v1117_v14 = vpop.permute.xlu0 %1116 }
 0x287   : > { %v2240_v16 = vmul.f32 %v3658_v8, %v1117_v14  ;;  %v2241_v12 = vmul.f32 %v3661_v10, %v1117_v14  ;;  %1356 = vbcast.lane.b32.xlu1 %v3558_v55, 304 }
 0x288   : > { %2799 = vst [vmem:[%s3815_s4 + $0xac0] sm:$0xff] %v2238_v2  ;;  %2800 = vst.msk [vmem:[%s3815_s4 + $0xac8] sm:$0xff] %vm2455_vm8, %v2239_v3  ;;  %1360 = vbcast.lane.b32.xlu0 %v3558_v55, 312 }
 0x289   : > { %2801 = vst [vmem:[%s3815_s4 + $0xad0] sm:$0xff] %v2240_v16  ;;  %2802 = vst.msk [vmem:[%s3815_s4 + $0xad8] sm:$0xff] %vm2455_vm8, %v2241_v12  ;;  %v1121_v26 = vpop.permute.xlu1 %1120 }
 0x28a   : > { %v2242_v31 = vmul.f32 %v3658_v8, %v1121_v26  ;;  %v2243_v17 = vmul.f32 %v3661_v10, %v1121_v26  ;;  %v1125_v34 = vpop.permute.xlu0 %1124 }
 0x28b   : > { %v2244_v18 = vmul.f32 %v3658_v8, %v1125_v34  ;;  %v2245_v41 = vmul.f32 %v3661_v10, %v1125_v34  ;;  %1364 = vbcast.lane.b32.xlu1 %v3558_v55, 320 }
 0x28c   : > { %2803 = vst [vmem:[%s3815_s4 + $0xae0] sm:$0xff] %v2242_v31  ;;  %2804 = vst.msk [vmem:[%s3815_s4 + $0xae8] sm:$0xff] %vm2455_vm8, %v2243_v17  ;;  %1368 = vbcast.lane.b32.xlu0 %v3558_v55, 328 }
 0x28d   : > { %2805 = vst [vmem:[%s3815_s4 + $0xaf0] sm:$0xff] %v2244_v18  ;;  %2806 = vst.msk [vmem:[%s3815_s4 + $0xaf8] sm:$0xff] %vm2455_vm8, %v2245_v41  ;;  %v1129_v29 = vpop.permute.xlu1 %1128 }
 0x28e   : > { %v2246_v53 = vmul.f32 %v3658_v8, %v1129_v29  ;;  %v2247_v54 = vmul.f32 %v3661_v10, %v1129_v29  ;;  %v1133_v15 = vpop.permute.xlu0 %1132 }
 0x28f   : > { %v2248_v46 = vmul.f32 %v3658_v8, %v1133_v15  ;;  %v2249_v40 = vmul.f32 %v3661_v10, %v1133_v15  ;;  %1372 = vbcast.lane.b32.xlu1 %v3558_v55, 336 }
 0x290   : > { %2807 = vst [vmem:[%s3815_s4 + $0xb00] sm:$0xff] %v2246_v53  ;;  %2808 = vst.msk [vmem:[%s3815_s4 + $0xb08] sm:$0xff] %vm2455_vm8, %v2247_v54  ;;  %1376 = vbcast.lane.b32.xlu0 %v3558_v55, 344 }
 0x291   : > { %2809 = vst [vmem:[%s3815_s4 + $0xb10] sm:$0xff] %v2248_v46  ;;  %2810 = vst.msk [vmem:[%s3815_s4 + $0xb18] sm:$0xff] %vm2455_vm8, %v2249_v40  ;;  %v1137_v38 = vpop.permute.xlu1 %1136 }
 0x292   : > { %v2250_v42 = vmul.f32 %v3658_v8, %v1137_v38  ;;  %v2251_v60 = vmul.f32 %v3661_v10, %v1137_v38  ;;  %v1141_v63 = vpop.permute.xlu0 %1140 }
 0x293   : > { %v2252_v49 = vmul.f32 %v3658_v8, %v1141_v63  ;;  %v2253_v27 = vmul.f32 %v3661_v10, %v1141_v63  ;;  %1380 = vbcast.lane.b32.xlu1 %v3558_v55, 352 }
 0x294   : > { %2811 = vst [vmem:[%s3815_s4 + $0xb20] sm:$0xff] %v2250_v42  ;;  %2812 = vst.msk [vmem:[%s3815_s4 + $0xb28] sm:$0xff] %vm2455_vm8, %v2251_v60  ;;  %1384 = vbcast.lane.b32.xlu0 %v3558_v55, 360 }
 0x295   : > { %2813 = vst [vmem:[%s3815_s4 + $0xb30] sm:$0xff] %v2252_v49  ;;  %2814 = vst.msk [vmem:[%s3815_s4 + $0xb38] sm:$0xff] %vm2455_vm8, %v2253_v27  ;;  %v1145_v0 = vpop.permute.xlu1 %1144 }
 0x296   : > { %v2254_v52 = vmul.f32 %v3658_v8, %v1145_v0  ;;  %v2255_v30 = vmul.f32 %v3661_v10, %v1145_v0  ;;  %v1149_v28 = vpop.permute.xlu0 %1148 }
 0x297   : > { %v2256_v1 = vmul.f32 %v3658_v8, %v1149_v28  ;;  %v2257_v20 = vmul.f32 %v3661_v10, %v1149_v28  ;;  %1391 = vbcast.lane.b32.xlu1 %v3561_v56, 256 }
 0x298   : > { %2815 = vst [vmem:[%s3815_s4 + $0xb40] sm:$0xff] %v2254_v52  ;;  %2816 = vst.msk [vmem:[%s3815_s4 + $0xb48] sm:$0xff] %vm2455_vm8, %v2255_v30  ;;  %1395 = vbcast.lane.b32.xlu0 %v3561_v56, 264 }
 0x299   : > { %2817 = vst [vmem:[%s3815_s4 + $0xb50] sm:$0xff] %v2256_v1  ;;  %2818 = vst.msk [vmem:[%s3815_s4 + $0xb58] sm:$0xff] %vm2455_vm8, %v2257_v20  ;;  %v1156_v55 = vpop.permute.xlu1 %1155 }
 0x29a   : > { %v2258_v6 = vmul.f32 %v3677_v22, %v1156_v55  ;;  %v2259_v8 = vmul.f32 %v3680_v33, %v1156_v55  ;;  %v1160_v61 = vpop.permute.xlu0 %1159 }
 0x29b   : > { %v2260_v10 = vmul.f32 %v3677_v22, %v1160_v61  ;;  %v2261_v5 = vmul.f32 %v3680_v33, %v1160_v61  ;;  %1399 = vbcast.lane.b32.xlu1 %v3561_v56, 272 }
 0x29c   : > { %2819 = vst [vmem:[%s3815_s4 + $0xb60] sm:$0xff] %v2258_v6  ;;  %2820 = vst.msk [vmem:[%s3815_s4 + $0xb68] sm:$0xff] %vm2455_vm8, %v2259_v8  ;;  %1403 = vbcast.lane.b32.xlu0 %v3561_v56, 280 }
 0x29d   : > { %2821 = vst [vmem:[%s3815_s4 + $0xb70] sm:$0xff] %v2260_v10  ;;  %2822 = vst.msk [vmem:[%s3815_s4 + $0xb78] sm:$0xff] %vm2455_vm8, %v2261_v5  ;;  %v1164_v13 = vpop.permute.xlu1 %1163 }
 0x29e   : > { %v2262_v11 = vmul.f32 %v3677_v22, %v1164_v13  ;;  %v2263_v23 = vmul.f32 %v3680_v33, %v1164_v13  ;;  %v1168_v21 = vpop.permute.xlu0 %1167 }
 0x29f   : > { %v2264_v35 = vmul.f32 %v3677_v22, %v1168_v21  ;;  %v2265_v7 = vmul.f32 %v3680_v33, %v1168_v21  ;;  %1407 = vbcast.lane.b32.xlu1 %v3561_v56, 288 }
 0x2a0   : > { %2823 = vst [vmem:[%s3815_s4 + $0xb80] sm:$0xff] %v2262_v11  ;;  %2824 = vst.msk [vmem:[%s3815_s4 + $0xb88] sm:$0xff] %vm2455_vm8, %v2263_v23  ;;  %1411 = vbcast.lane.b32.xlu0 %v3561_v56, 296 }
 0x2a1   : > { %2825 = vst [vmem:[%s3815_s4 + $0xb90] sm:$0xff] %v2264_v35  ;;  %2826 = vst.msk [vmem:[%s3815_s4 + $0xb98] sm:$0xff] %vm2455_vm8, %v2265_v7  ;;  %v1172_v32 = vpop.permute.xlu1 %1171 }
 0x2a2   : > { %v2266_v9 = vmul.f32 %v3677_v22, %v1172_v32  ;;  %v2267_v25 = vmul.f32 %v3680_v33, %v1172_v32  ;;  %v1176_v62 = vpop.permute.xlu0 %1175 }
 0x2a3   : > { %v2268_v50 = vmul.f32 %v3677_v22, %v1176_v62  ;;  %v2269_v24 = vmul.f32 %v3680_v33, %v1176_v62  ;;  %1415 = vbcast.lane.b32.xlu1 %v3561_v56, 304 }
 0x2a4   : > { %2827 = vst [vmem:[%s3815_s4 + $0xba0] sm:$0xff] %v2266_v9  ;;  %2828 = vst.msk [vmem:[%s3815_s4 + $0xba8] sm:$0xff] %vm2455_vm8, %v2267_v25  ;;  %1419 = vbcast.lane.b32.xlu0 %v3561_v56, 312 }
 0x2a5   : > { %2829 = vst [vmem:[%s3815_s4 + $0xbb0] sm:$0xff] %v2268_v50  ;;  %2830 = vst.msk [vmem:[%s3815_s4 + $0xbb8] sm:$0xff] %vm2455_vm8, %v2269_v24  ;;  %v1180_v47 = vpop.permute.xlu1 %1179 }
 0x2a6   : > { %v2270_v2 = vmul.f32 %v3677_v22, %v1180_v47  ;;  %v2271_v3 = vmul.f32 %v3680_v33, %v1180_v47  ;;  %v1184_v14 = vpop.permute.xlu0 %1183 }
 0x2a7   : > { %v2272_v16 = vmul.f32 %v3677_v22, %v1184_v14  ;;  %v2273_v12 = vmul.f32 %v3680_v33, %v1184_v14  ;;  %1423 = vbcast.lane.b32.xlu1 %v3561_v56, 320 }
 0x2a8   : > { %2831 = vst [vmem:[%s3815_s4 + $0xbc0] sm:$0xff] %v2270_v2  ;;  %2832 = vst.msk [vmem:[%s3815_s4 + $0xbc8] sm:$0xff] %vm2455_vm8, %v2271_v3  ;;  %1427 = vbcast.lane.b32.xlu0 %v3561_v56, 328 }
 0x2a9   : > { %2833 = vst [vmem:[%s3815_s4 + $0xbd0] sm:$0xff] %v2272_v16  ;;  %2834 = vst.msk [vmem:[%s3815_s4 + $0xbd8] sm:$0xff] %vm2455_vm8, %v2273_v12  ;;  %v1188_v26 = vpop.permute.xlu1 %1187 }
 0x2aa   : > { %v2274_v31 = vmul.f32 %v3677_v22, %v1188_v26  ;;  %v2275_v17 = vmul.f32 %v3680_v33, %v1188_v26  ;;  %v1192_v34 = vpop.permute.xlu0 %1191 }
 0x2ab   : > { %v2276_v18 = vmul.f32 %v3677_v22, %v1192_v34  ;;  %v2277_v41 = vmul.f32 %v3680_v33, %v1192_v34  ;;  %1431 = vbcast.lane.b32.xlu1 %v3561_v56, 336 }
 0x2ac   : > { %2835 = vst [vmem:[%s3815_s4 + $0xbe0] sm:$0xff] %v2274_v31  ;;  %2836 = vst.msk [vmem:[%s3815_s4 + $0xbe8] sm:$0xff] %vm2455_vm8, %v2275_v17  ;;  %1435 = vbcast.lane.b32.xlu0 %v3561_v56, 344 }
 0x2ad   : > { %2837 = vst [vmem:[%s3815_s4 + $0xbf0] sm:$0xff] %v2276_v18  ;;  %2838 = vst.msk [vmem:[%s3815_s4 + $0xbf8] sm:$0xff] %vm2455_vm8, %v2277_v41  ;;  %v1196_v29 = vpop.permute.xlu1 %1195 }
 0x2ae   : > { %v2278_v53 = vmul.f32 %v3677_v22, %v1196_v29  ;;  %v2279_v54 = vmul.f32 %v3680_v33, %v1196_v29  ;;  %v1200_v15 = vpop.permute.xlu0 %1199 }
 0x2af   : > { %v2280_v46 = vmul.f32 %v3677_v22, %v1200_v15  ;;  %v2281_v40 = vmul.f32 %v3680_v33, %v1200_v15  ;;  %1439 = vbcast.lane.b32.xlu1 %v3561_v56, 352 }
 0x2b0   : > { %2839 = vst [vmem:[%s3815_s4 + $0xc00] sm:$0xff] %v2278_v53  ;;  %2840 = vst.msk [vmem:[%s3815_s4 + $0xc08] sm:$0xff] %vm2455_vm8, %v2279_v54  ;;  %1443 = vbcast.lane.b32.xlu0 %v3561_v56, 360 }
 0x2b1   : > { %2841 = vst [vmem:[%s3815_s4 + $0xc10] sm:$0xff] %v2280_v46  ;;  %2842 = vst.msk [vmem:[%s3815_s4 + $0xc18] sm:$0xff] %vm2455_vm8, %v2281_v40  ;;  %v1204_v38 = vpop.permute.xlu1 %1203  ;;  %v5508_v46 = vld [vmem:[#allocation7_spill] sm:$0xff] }
 0x2b2   : > { %v2282_v42 = vmul.f32 %v3677_v22, %v1204_v38  ;;  %v2283_v60 = vmul.f32 %v3680_v33, %v1204_v38  ;;  %v1208_v63 = vpop.permute.xlu0 %1207 }
 0x2b3   : > { %v2284_v49 = vmul.f32 %v3677_v22, %v1208_v63  ;;  %v2285_v27 = vmul.f32 %v3680_v33, %v1208_v63  ;;  %1450 = vbcast.lane.b32.xlu1 %v3564_v57, 256 }
 0x2b4   : > { %2843 = vst [vmem:[%s3815_s4 + $0xc20] sm:$0xff] %v2282_v42  ;;  %2844 = vst.msk [vmem:[%s3815_s4 + $0xc28] sm:$0xff] %vm2455_vm8, %v2283_v60  ;;  %1454 = vbcast.lane.b32.xlu0 %v3564_v57, 264 }
 0x2b5   : > { %2845 = vst [vmem:[%s3815_s4 + $0xc30] sm:$0xff] %v2284_v49  ;;  %2846 = vst.msk [vmem:[%s3815_s4 + $0xc38] sm:$0xff] %vm2455_vm8, %v2285_v27  ;;  %v1215_v56 = vpop.permute.xlu1 %1214 }
 0x2b6   : > { %v2286_v0 = vmul.f32 %v3689_v36, %v1215_v56  ;;  %v2287_v22 = vmul.f32 %v3692_v19, %v1215_v56  ;;  %v1219_v52 = vpop.permute.xlu0 %1218 }
 0x2b7   : > { %v2288_v33 = vmul.f32 %v3689_v36, %v1219_v52  ;;  %v2289_v30 = vmul.f32 %v3692_v19, %v1219_v52  ;;  %1458 = vbcast.lane.b32.xlu1 %v3564_v57, 272 }
 0x2b8   : > { %2847 = vst [vmem:[%s3815_s4 + $0xc40] sm:$0xff] %v2286_v0  ;;  %2848 = vst.msk [vmem:[%s3815_s4 + $0xc48] sm:$0xff] %vm2455_vm8, %v2287_v22  ;;  %1462 = vbcast.lane.b32.xlu0 %v3564_v57, 280 }
 0x2b9   : > { %2849 = vst [vmem:[%s3815_s4 + $0xc50] sm:$0xff] %v2288_v33  ;;  %2850 = vst.msk [vmem:[%s3815_s4 + $0xc58] sm:$0xff] %vm2455_vm8, %v2289_v30  ;;  %v1223_v28 = vpop.permute.xlu1 %1222 }
 0x2ba   : > { %v2290_v1 = vmul.f32 %v3689_v36, %v1223_v28  ;;  %v2291_v20 = vmul.f32 %v3692_v19, %v1223_v28  ;;  %v1227_v55 = vpop.permute.xlu0 %1226 }
 0x2bb   : > { %v2292_v6 = vmul.f32 %v3689_v36, %v1227_v55  ;;  %v2293_v8 = vmul.f32 %v3692_v19, %v1227_v55  ;;  %1466 = vbcast.lane.b32.xlu1 %v3564_v57, 288 }
 0x2bc   : > { %2851 = vst [vmem:[%s3815_s4 + $0xc60] sm:$0xff] %v2290_v1  ;;  %2852 = vst.msk [vmem:[%s3815_s4 + $0xc68] sm:$0xff] %vm2455_vm8, %v2291_v20  ;;  %1470 = vbcast.lane.b32.xlu0 %v3564_v57, 296 }
 0x2bd   : > { %2853 = vst [vmem:[%s3815_s4 + $0xc70] sm:$0xff] %v2292_v6  ;;  %2854 = vst.msk [vmem:[%s3815_s4 + $0xc78] sm:$0xff] %vm2455_vm8, %v2293_v8  ;;  %v1231_v61 = vpop.permute.xlu1 %1230 }
 0x2be   : > { %v2294_v10 = vmul.f32 %v3689_v36, %v1231_v61  ;;  %v2295_v5 = vmul.f32 %v3692_v19, %v1231_v61  ;;  %v1235_v13 = vpop.permute.xlu0 %1234 }
 0x2bf   : > { %v2296_v11 = vmul.f32 %v3689_v36, %v1235_v13  ;;  %v2297_v23 = vmul.f32 %v3692_v19, %v1235_v13  ;;  %1474 = vbcast.lane.b32.xlu1 %v3564_v57, 304 }
 0x2c0   : > { %2855 = vst [vmem:[%s3815_s4 + $0xc80] sm:$0xff] %v2294_v10  ;;  %2856 = vst.msk [vmem:[%s3815_s4 + $0xc88] sm:$0xff] %vm2455_vm8, %v2295_v5  ;;  %1478 = vbcast.lane.b32.xlu0 %v3564_v57, 312 }
 0x2c1   : > { %2857 = vst [vmem:[%s3815_s4 + $0xc90] sm:$0xff] %v2296_v11  ;;  %2858 = vst.msk [vmem:[%s3815_s4 + $0xc98] sm:$0xff] %vm2455_vm8, %v2297_v23  ;;  %v1239_v21 = vpop.permute.xlu1 %1238 }
 0x2c2   : > { %v2298_v35 = vmul.f32 %v3689_v36, %v1239_v21  ;;  %v2299_v7 = vmul.f32 %v3692_v19, %v1239_v21  ;;  %v1243_v32 = vpop.permute.xlu0 %1242 }
 0x2c3   : > { %v2300_v9 = vmul.f32 %v3689_v36, %v1243_v32  ;;  %v2301_v25 = vmul.f32 %v3692_v19, %v1243_v32  ;;  %1482 = vbcast.lane.b32.xlu1 %v3564_v57, 320 }
 0x2c4   : > { %2859 = vst [vmem:[%s3815_s4 + $0xca0] sm:$0xff] %v2298_v35  ;;  %2860 = vst.msk [vmem:[%s3815_s4 + $0xca8] sm:$0xff] %vm2455_vm8, %v2299_v7  ;;  %1486 = vbcast.lane.b32.xlu0 %v3564_v57, 328 }
 0x2c5   : > { %2861 = vst [vmem:[%s3815_s4 + $0xcb0] sm:$0xff] %v2300_v9  ;;  %2862 = vst.msk [vmem:[%s3815_s4 + $0xcb8] sm:$0xff] %vm2455_vm8, %v2301_v25  ;;  %v1247_v62 = vpop.permute.xlu1 %1246 }
 0x2c6   : > { %v2302_v50 = vmul.f32 %v3689_v36, %v1247_v62  ;;  %v2303_v24 = vmul.f32 %v3692_v19, %v1247_v62  ;;  %v1251_v47 = vpop.permute.xlu0 %1250 }
 0x2c7   : > { %v2304_v2 = vmul.f32 %v3689_v36, %v1251_v47  ;;  %v2305_v3 = vmul.f32 %v3692_v19, %v1251_v47  ;;  %1490 = vbcast.lane.b32.xlu1 %v3564_v57, 336 }
 0x2c8   : > { %2863 = vst [vmem:[%s3815_s4 + $0xcc0] sm:$0xff] %v2302_v50  ;;  %2864 = vst.msk [vmem:[%s3815_s4 + $0xcc8] sm:$0xff] %vm2455_vm8, %v2303_v24  ;;  %1494 = vbcast.lane.b32.xlu0 %v3564_v57, 344 }
 0x2c9   : > { %2865 = vst [vmem:[%s3815_s4 + $0xcd0] sm:$0xff] %v2304_v2  ;;  %2866 = vst.msk [vmem:[%s3815_s4 + $0xcd8] sm:$0xff] %vm2455_vm8, %v2305_v3  ;;  %v1255_v14 = vpop.permute.xlu1 %1254 }
 0x2ca   : > { %v2306_v16 = vmul.f32 %v3689_v36, %v1255_v14  ;;  %v2307_v12 = vmul.f32 %v3692_v19, %v1255_v14  ;;  %v1259_v26 = vpop.permute.xlu0 %1258 }
 0x2cb   : > { %v2308_v31 = vmul.f32 %v3689_v36, %v1259_v26  ;;  %v2309_v17 = vmul.f32 %v3692_v19, %v1259_v26  ;;  %1498 = vbcast.lane.b32.xlu1 %v3564_v57, 352 }
 0x2cc   : > { %2867 = vst [vmem:[%s3815_s4 + $0xce0] sm:$0xff] %v2306_v16  ;;  %2868 = vst.msk [vmem:[%s3815_s4 + $0xce8] sm:$0xff] %vm2455_vm8, %v2307_v12  ;;  %1502 = vbcast.lane.b32.xlu0 %v3564_v57, 360 }
 0x2cd   : > { %2869 = vst [vmem:[%s3815_s4 + $0xcf0] sm:$0xff] %v2308_v31  ;;  %2870 = vst.msk [vmem:[%s3815_s4 + $0xcf8] sm:$0xff] %vm2455_vm8, %v2309_v17  ;;  %v1263_v34 = vpop.permute.xlu1 %1262 }
 0x2ce   : > { %v2310_v18 = vmul.f32 %v3689_v36, %v1263_v34  ;;  %v2311_v41 = vmul.f32 %v3692_v19, %v1263_v34  ;;  %v1267_v29 = vpop.permute.xlu0 %1266 }
 0x2cf   : > { %v2312_v53 = vmul.f32 %v3689_v36, %v1267_v29  ;;  %v2313_v54 = vmul.f32 %v3692_v19, %v1267_v29  ;;  %1509 = vbcast.lane.b32.xlu1 %v3569_v59, 256 }
 0x2d0   : > { %2871 = vst [vmem:[%s3815_s4 + $0xd00] sm:$0xff] %v2310_v18  ;;  %2872 = vst.msk [vmem:[%s3815_s4 + $0xd08] sm:$0xff] %vm2455_vm8, %v2311_v41  ;;  %1513 = vbcast.lane.b32.xlu0 %v3569_v59, 264 }
 0x2d1   : > { %2873 = vst [vmem:[%s3815_s4 + $0xd10] sm:$0xff] %v2312_v53  ;;  %2874 = vst.msk [vmem:[%s3815_s4 + $0xd18] sm:$0xff] %vm2455_vm8, %v2313_v54  ;;  %v1274_v57 = vpop.permute.xlu1 %1273 }
 0x2d2   : > { %v2314_v15 = vmul.f32 %v3696_v37, %v1274_v57  ;;  %v2315_v36 = vmul.f32 %v5508_v46, %v1274_v57  ;;  %v1278_v40 = vpop.permute.xlu0 %1277 }
 0x2d3   : > { %v2316_v19 = vmul.f32 %v3696_v37, %v1278_v40  ;;  %v2317_v38 = vmul.f32 %v5508_v46, %v1278_v40  ;;  %1517 = vbcast.lane.b32.xlu1 %v3569_v59, 272 }
 0x2d4   : > { %2875 = vst [vmem:[%s3815_s4 + $0xd20] sm:$0xff] %v2314_v15  ;;  %2876 = vst.msk [vmem:[%s3815_s4 + $0xd28] sm:$0xff] %vm2455_vm8, %v2315_v36  ;;  %1521 = vbcast.lane.b32.xlu0 %v3569_v59, 280 }
 0x2d5   : > { %2877 = vst [vmem:[%s3815_s4 + $0xd30] sm:$0xff] %v2316_v19  ;;  %2878 = vst.msk [vmem:[%s3815_s4 + $0xd38] sm:$0xff] %vm2455_vm8, %v2317_v38  ;;  %v1282_v42 = vpop.permute.xlu1 %1281 }
 0x2d6   : > { %v2318_v60 = vmul.f32 %v3696_v37, %v1282_v42  ;;  %v2319_v63 = vmul.f32 %v5508_v46, %v1282_v42  ;;  %v1286_v49 = vpop.permute.xlu0 %1285 }
 0x2d7   : > { %v2320_v27 = vmul.f32 %v3696_v37, %v1286_v49  ;;  %v2321_v56 = vmul.f32 %v5508_v46, %v1286_v49  ;;  %1525 = vbcast.lane.b32.xlu1 %v3569_v59, 288 }
 0x2d8   : > { %2879 = vst [vmem:[%s3815_s4 + $0xd40] sm:$0xff] %v2318_v60  ;;  %2880 = vst.msk [vmem:[%s3815_s4 + $0xd48] sm:$0xff] %vm2455_vm8, %v2319_v63  ;;  %1529 = vbcast.lane.b32.xlu0 %v3569_v59, 296 }
 0x2d9   : > { %2881 = vst [vmem:[%s3815_s4 + $0xd50] sm:$0xff] %v2320_v27  ;;  %2882 = vst.msk [vmem:[%s3815_s4 + $0xd58] sm:$0xff] %vm2455_vm8, %v2321_v56  ;;  %v1290_v0 = vpop.permute.xlu1 %1289 }
 0x2da   : > { %v2322_v22 = vmul.f32 %v3696_v37, %v1290_v0  ;;  %v2323_v52 = vmul.f32 %v5508_v46, %v1290_v0  ;;  %v1294_v33 = vpop.permute.xlu0 %1293 }
 0x2db   : > { %v2324_v30 = vmul.f32 %v3696_v37, %v1294_v33  ;;  %v2325_v28 = vmul.f32 %v5508_v46, %v1294_v33  ;;  %1533 = vbcast.lane.b32.xlu1 %v3569_v59, 304 }
 0x2dc   : > { %2883 = vst [vmem:[%s3815_s4 + $0xd60] sm:$0xff] %v2322_v22  ;;  %2884 = vst.msk [vmem:[%s3815_s4 + $0xd68] sm:$0xff] %vm2455_vm8, %v2323_v52  ;;  %1537 = vbcast.lane.b32.xlu0 %v3569_v59, 312 }
 0x2dd   : > { %2885 = vst [vmem:[%s3815_s4 + $0xd70] sm:$0xff] %v2324_v30  ;;  %2886 = vst.msk [vmem:[%s3815_s4 + $0xd78] sm:$0xff] %vm2455_vm8, %v2325_v28  ;;  %v1298_v1 = vpop.permute.xlu1 %1297 }
 0x2de   : > { %v2326_v20 = vmul.f32 %v3696_v37, %v1298_v1  ;;  %v2327_v55 = vmul.f32 %v5508_v46, %v1298_v1  ;;  %v1302_v6 = vpop.permute.xlu0 %1301 }
 0x2df   : > { %v2328_v8 = vmul.f32 %v3696_v37, %v1302_v6  ;;  %v2329_v61 = vmul.f32 %v5508_v46, %v1302_v6  ;;  %1541 = vbcast.lane.b32.xlu1 %v3569_v59, 320 }
 0x2e0   : > { %2887 = vst [vmem:[%s3815_s4 + $0xd80] sm:$0xff] %v2326_v20  ;;  %2888 = vst.msk [vmem:[%s3815_s4 + $0xd88] sm:$0xff] %vm2455_vm8, %v2327_v55  ;;  %1545 = vbcast.lane.b32.xlu0 %v3569_v59, 328 }
 0x2e1   : > { %2889 = vst [vmem:[%s3815_s4 + $0xd90] sm:$0xff] %v2328_v8  ;;  %2890 = vst.msk [vmem:[%s3815_s4 + $0xd98] sm:$0xff] %vm2455_vm8, %v2329_v61  ;;  %v1306_v10 = vpop.permute.xlu1 %1305 }
 0x2e2   : > { %v2330_v5 = vmul.f32 %v3696_v37, %v1306_v10  ;;  %v2331_v13 = vmul.f32 %v5508_v46, %v1306_v10  ;;  %v1310_v11 = vpop.permute.xlu0 %1309 }
 0x2e3   : > { %v2332_v23 = vmul.f32 %v3696_v37, %v1310_v11  ;;  %v2333_v21 = vmul.f32 %v5508_v46, %v1310_v11  ;;  %1549 = vbcast.lane.b32.xlu1 %v3569_v59, 336 }
 0x2e4   : > { %2891 = vst [vmem:[%s3815_s4 + $0xda0] sm:$0xff] %v2330_v5  ;;  %2892 = vst.msk [vmem:[%s3815_s4 + $0xda8] sm:$0xff] %vm2455_vm8, %v2331_v13  ;;  %1553 = vbcast.lane.b32.xlu0 %v3569_v59, 344 }
 0x2e5   : > { %2893 = vst [vmem:[%s3815_s4 + $0xdb0] sm:$0xff] %v2332_v23  ;;  %2894 = vst.msk [vmem:[%s3815_s4 + $0xdb8] sm:$0xff] %vm2455_vm8, %v2333_v21  ;;  %v1314_v35 = vpop.permute.xlu1 %1313 }
 0x2e6   : > { %v2334_v7 = vmul.f32 %v3696_v37, %v1314_v35  ;;  %v2335_v32 = vmul.f32 %v5508_v46, %v1314_v35  ;;  %v1318_v9 = vpop.permute.xlu0 %1317 }
 0x2e7   : > { %v2336_v25 = vmul.f32 %v3696_v37, %v1318_v9  ;;  %v2337_v62 = vmul.f32 %v5508_v46, %v1318_v9  ;;  %1557 = vbcast.lane.b32.xlu1 %v3569_v59, 352 }
 0x2e8   : > { %2895 = vst [vmem:[%s3815_s4 + $0xdc0] sm:$0xff] %v2334_v7  ;;  %2896 = vst.msk [vmem:[%s3815_s4 + $0xdc8] sm:$0xff] %vm2455_vm8, %v2335_v32  ;;  %1561 = vbcast.lane.b32.xlu0 %v3569_v59, 360 }
 0x2e9   : > { %2897 = vst [vmem:[%s3815_s4 + $0xdd0] sm:$0xff] %v2336_v25  ;;  %2898 = vst.msk [vmem:[%s3815_s4 + $0xdd8] sm:$0xff] %vm2455_vm8, %v2337_v62  ;;  %v1322_v50 = vpop.permute.xlu1 %1321 }
 0x2ea   : > { %v2338_v24 = vmul.f32 %v3696_v37, %v1322_v50  ;;  %v2339_v47 = vmul.f32 %v5508_v46, %v1322_v50  ;;  %v1326_v2 = vpop.permute.xlu0 %1325 }
 0x2eb   : > { %v2340_v3 = vmul.f32 %v3696_v37, %v1326_v2  ;;  %v2341_v14 = vmul.f32 %v5508_v46, %v1326_v2 }
 0x2ec   : > { %2899 = vst [vmem:[%s3815_s4 + $0xde0] sm:$0xff] %v2338_v24  ;;  %2900 = vst.msk [vmem:[%s3815_s4 + $0xde8] sm:$0xff] %vm2455_vm8, %v2339_v47 }
 0x2ed   : > { %2901 = vst [vmem:[%s3815_s4 + $0xdf0] sm:$0xff] %v2340_v3  ;;  %2902 = vst.msk [vmem:[%s3815_s4 + $0xdf8] sm:$0xff] %vm2455_vm8, %v2341_v14  ;;  %v1333_v59 = vpop.permute.xlu1 %1332 }
 0x2ee   : > { %v2342_v16 = vmul.f32 %v3763_v58, %v1333_v59  ;;  %v2343_v12 = vmul.f32 %v3766_v45, %v1333_v59  ;;  %v1337_v26 = vpop.permute.xlu0 %1336 }
 0x2ef   : > { %v2344_v37 = vmul.f32 %v3763_v58, %v1337_v26  ;;  %v2345_v31 = vmul.f32 %v3766_v45, %v1337_v26 }
 0x2f0   : > { %2903 = vst [vmem:[%s3815_s4 + $0xe00] sm:$0xff] %v2342_v16  ;;  %2904 = vst.msk [vmem:[%s3815_s4 + $0xe08] sm:$0xff] %vm2455_vm8, %v2343_v12 }
 0x2f1   : > { %2905 = vst [vmem:[%s3815_s4 + $0xe10] sm:$0xff] %v2344_v37  ;;  %2906 = vst.msk [vmem:[%s3815_s4 + $0xe18] sm:$0xff] %vm2455_vm8, %v2345_v31  ;;  %v1341_v17 = vpop.permute.xlu1 %1340 }
 0x2f2   : > { %v2346_v34 = vmul.f32 %v3763_v58, %v1341_v17  ;;  %v2347_v18 = vmul.f32 %v3766_v45, %v1341_v17  ;;  %v1345_v41 = vpop.permute.xlu0 %1344 }
 0x2f3   : > { %v2348_v29 = vmul.f32 %v3763_v58, %v1345_v41  ;;  %v2349_v53 = vmul.f32 %v3766_v45, %v1345_v41 }
 0x2f4   : > { %2907 = vst [vmem:[%s3815_s4 + $0xe20] sm:$0xff] %v2346_v34  ;;  %2908 = vst.msk [vmem:[%s3815_s4 + $0xe28] sm:$0xff] %vm2455_vm8, %v2347_v18 }
 0x2f5   : > { %2909 = vst [vmem:[%s3815_s4 + $0xe30] sm:$0xff] %v2348_v29  ;;  %2910 = vst.msk [vmem:[%s3815_s4 + $0xe38] sm:$0xff] %vm2455_vm8, %v2349_v53  ;;  %v1349_v54 = vpop.permute.xlu1 %1348 }
 0x2f6   : > { %v2350_v57 = vmul.f32 %v3763_v58, %v1349_v54  ;;  %v2351_v15 = vmul.f32 %v3766_v45, %v1349_v54  ;;  %v1353_v46 = vpop.permute.xlu0 %1352 }
 0x2f7   : > { %v2352_v36 = vmul.f32 %v3763_v58, %v1353_v46  ;;  %v2353_v40 = vmul.f32 %v3766_v45, %v1353_v46 }
 0x2f8   : > { %2911 = vst [vmem:[%s3815_s4 + $0xe40] sm:$0xff] %v2350_v57  ;;  %2912 = vst.msk [vmem:[%s3815_s4 + $0xe48] sm:$0xff] %vm2455_vm8, %v2351_v15 }
 0x2f9   : > { %2913 = vst [vmem:[%s3815_s4 + $0xe50] sm:$0xff] %v2352_v36  ;;  %2914 = vst.msk [vmem:[%s3815_s4 + $0xe58] sm:$0xff] %vm2455_vm8, %v2353_v40  ;;  %v1357_v19 = vpop.permute.xlu1 %1356 }
 0x2fa   : > { %v2354_v38 = vmul.f32 %v3763_v58, %v1357_v19  ;;  %v2355_v42 = vmul.f32 %v3766_v45, %v1357_v19  ;;  %v1361_v60 = vpop.permute.xlu0 %1360 }
 0x2fb   : > { %v2356_v63 = vmul.f32 %v3763_v58, %v1361_v60  ;;  %v2357_v49 = vmul.f32 %v3766_v45, %v1361_v60 }
 0x2fc   : > { %2915 = vst [vmem:[%s3815_s4 + $0xe60] sm:$0xff] %v2354_v38  ;;  %2916 = vst.msk [vmem:[%s3815_s4 + $0xe68] sm:$0xff] %vm2455_vm8, %v2355_v42 }
 0x2fd   : > { %2917 = vst [vmem:[%s3815_s4 + $0xe70] sm:$0xff] %v2356_v63  ;;  %2918 = vst.msk [vmem:[%s3815_s4 + $0xe78] sm:$0xff] %vm2455_vm8, %v2357_v49  ;;  %v1365_v27 = vpop.permute.xlu1 %1364 }
 0x2fe   : > { %v2358_v56 = vmul.f32 %v3763_v58, %v1365_v27  ;;  %v2359_v0 = vmul.f32 %v3766_v45, %v1365_v27  ;;  %v1369_v22 = vpop.permute.xlu0 %1368 }
 0x2ff   : > { %v2360_v52 = vmul.f32 %v3763_v58, %v1369_v22  ;;  %v2361_v33 = vmul.f32 %v3766_v45, %v1369_v22 }
 0x300   : > { %2919 = vst [vmem:[%s3815_s4 + $0xe80] sm:$0xff] %v2358_v56  ;;  %2920 = vst.msk [vmem:[%s3815_s4 + $0xe88] sm:$0xff] %vm2455_vm8, %v2359_v0 }
 0x301   : > { %2921 = vst [vmem:[%s3815_s4 + $0xe90] sm:$0xff] %v2360_v52  ;;  %2922 = vst.msk [vmem:[%s3815_s4 + $0xe98] sm:$0xff] %vm2455_vm8, %v2361_v33  ;;  %v1373_v30 = vpop.permute.xlu1 %1372 }
 0x302   : > { %v2362_v28 = vmul.f32 %v3763_v58, %v1373_v30  ;;  %v2363_v1 = vmul.f32 %v3766_v45, %v1373_v30  ;;  %v1377_v20 = vpop.permute.xlu0 %1376 }
 0x303   : > { %v2364_v55 = vmul.f32 %v3763_v58, %v1377_v20  ;;  %v2365_v6 = vmul.f32 %v3766_v45, %v1377_v20 }
 0x304   : > { %2923 = vst [vmem:[%s3815_s4 + $0xea0] sm:$0xff] %v2362_v28  ;;  %2924 = vst.msk [vmem:[%s3815_s4 + $0xea8] sm:$0xff] %vm2455_vm8, %v2363_v1 }
 0x305   : > { %2925 = vst [vmem:[%s3815_s4 + $0xeb0] sm:$0xff] %v2364_v55  ;;  %2926 = vst.msk [vmem:[%s3815_s4 + $0xeb8] sm:$0xff] %vm2455_vm8, %v2365_v6  ;;  %v1381_v8 = vpop.permute.xlu1 %1380 }
 0x306   : > { %v2366_v61 = vmul.f32 %v3763_v58, %v1381_v8  ;;  %v2367_v10 = vmul.f32 %v3766_v45, %v1381_v8  ;;  %v1385_v5 = vpop.permute.xlu0 %1384 }
 0x307   : > { %v2368_v13 = vmul.f32 %v3763_v58, %v1385_v5  ;;  %v2369_v11 = vmul.f32 %v3766_v45, %v1385_v5 }
 0x308   : > { %2927 = vst [vmem:[%s3815_s4 + $0xec0] sm:$0xff] %v2366_v61  ;;  %2928 = vst.msk [vmem:[%s3815_s4 + $0xec8] sm:$0xff] %vm2455_vm8, %v2367_v10 }
 0x309   : > { %2929 = vst [vmem:[%s3815_s4 + $0xed0] sm:$0xff] %v2368_v13  ;;  %2930 = vst.msk [vmem:[%s3815_s4 + $0xed8] sm:$0xff] %vm2455_vm8, %v2369_v11  ;;  %v1392_v23 = vpop.permute.xlu1 %1391 }
 0x30a   : > { %v2370_v21 = vmul.f32 %v3770_v48, %v1392_v23  ;;  %v2371_v35 = vmul.f32 %v3773_v39, %v1392_v23  ;;  %v1396_v7 = vpop.permute.xlu0 %1395 }
 0x30b   : > { %v2372_v58 = vmul.f32 %v3770_v48, %v1396_v7  ;;  %v2373_v45 = vmul.f32 %v3773_v39, %v1396_v7 }
 0x30c   : > { %2931 = vst [vmem:[%s3815_s4 + $0xee0] sm:$0xff] %v2370_v21  ;;  %2932 = vst.msk [vmem:[%s3815_s4 + $0xee8] sm:$0xff] %vm2455_vm8, %v2371_v35 }
 0x30d   : > { %2933 = vst [vmem:[%s3815_s4 + $0xef0] sm:$0xff] %v2372_v58  ;;  %2934 = vst.msk [vmem:[%s3815_s4 + $0xef8] sm:$0xff] %vm2455_vm8, %v2373_v45  ;;  %v1400_v32 = vpop.permute.xlu1 %1399 }
 0x30e   : > { %v2374_v9 = vmul.f32 %v3770_v48, %v1400_v32  ;;  %v2375_v25 = vmul.f32 %v3773_v39, %v1400_v32  ;;  %v1404_v62 = vpop.permute.xlu0 %1403 }
 0x30f   : > { %v2376_v50 = vmul.f32 %v3770_v48, %v1404_v62  ;;  %v2377_v24 = vmul.f32 %v3773_v39, %v1404_v62 }
 0x310   : > { %2935 = vst [vmem:[%s3815_s4 + $0xf00] sm:$0xff] %v2374_v9  ;;  %2936 = vst.msk [vmem:[%s3815_s4 + $0xf08] sm:$0xff] %vm2455_vm8, %v2375_v25 }
 0x311   : > { %2937 = vst [vmem:[%s3815_s4 + $0xf10] sm:$0xff] %v2376_v50  ;;  %2938 = vst.msk [vmem:[%s3815_s4 + $0xf18] sm:$0xff] %vm2455_vm8, %v2377_v24  ;;  %v1408_v47 = vpop.permute.xlu1 %1407 }
 0x312   : > { %v2378_v2 = vmul.f32 %v3770_v48, %v1408_v47  ;;  %v2379_v3 = vmul.f32 %v3773_v39, %v1408_v47  ;;  %v1412_v14 = vpop.permute.xlu0 %1411 }
 0x313   : > { %v2380_v59 = vmul.f32 %v3770_v48, %v1412_v14  ;;  %v2381_v16 = vmul.f32 %v3773_v39, %v1412_v14 }
 0x314   : > { %2939 = vst [vmem:[%s3815_s4 + $0xf20] sm:$0xff] %v2378_v2  ;;  %2940 = vst.msk [vmem:[%s3815_s4 + $0xf28] sm:$0xff] %vm2455_vm8, %v2379_v3 }
 0x315   : > { %2941 = vst [vmem:[%s3815_s4 + $0xf30] sm:$0xff] %v2380_v59  ;;  %2942 = vst.msk [vmem:[%s3815_s4 + $0xf38] sm:$0xff] %vm2455_vm8, %v2381_v16  ;;  %v1416_v12 = vpop.permute.xlu1 %1415 }
 0x316   : > { %v2382_v26 = vmul.f32 %v3770_v48, %v1416_v12  ;;  %v2383_v37 = vmul.f32 %v3773_v39, %v1416_v12  ;;  %v1420_v31 = vpop.permute.xlu0 %1419 }
 0x317   : > { %v2384_v17 = vmul.f32 %v3770_v48, %v1420_v31  ;;  %v2385_v34 = vmul.f32 %v3773_v39, %v1420_v31 }
 0x318   : > { %2943 = vst [vmem:[%s3815_s4 + $0xf40] sm:$0xff] %v2382_v26  ;;  %2944 = vst.msk [vmem:[%s3815_s4 + $0xf48] sm:$0xff] %vm2455_vm8, %v2383_v37 }
 0x319   : > { %2945 = vst [vmem:[%s3815_s4 + $0xf50] sm:$0xff] %v2384_v17  ;;  %2946 = vst.msk [vmem:[%s3815_s4 + $0xf58] sm:$0xff] %vm2455_vm8, %v2385_v34  ;;  %v1424_v18 = vpop.permute.xlu1 %1423 }
 0x31a   : > { %v2386_v41 = vmul.f32 %v3770_v48, %v1424_v18  ;;  %v2387_v29 = vmul.f32 %v3773_v39, %v1424_v18  ;;  %v1428_v53 = vpop.permute.xlu0 %1427 }
 0x31b   : > { %v2388_v54 = vmul.f32 %v3770_v48, %v1428_v53  ;;  %v2389_v57 = vmul.f32 %v3773_v39, %v1428_v53 }
 0x31c   : > { %2947 = vst [vmem:[%s3815_s4 + $0xf60] sm:$0xff] %v2386_v41  ;;  %2948 = vst.msk [vmem:[%s3815_s4 + $0xf68] sm:$0xff] %vm2455_vm8, %v2387_v29 }
 0x31d   : > { %2949 = vst [vmem:[%s3815_s4 + $0xf70] sm:$0xff] %v2388_v54  ;;  %2950 = vst.msk [vmem:[%s3815_s4 + $0xf78] sm:$0xff] %vm2455_vm8, %v2389_v57  ;;  %v1432_v15 = vpop.permute.xlu1 %1431 }
 0x31e   : > { %v2390_v46 = vmul.f32 %v3770_v48, %v1432_v15  ;;  %v2391_v36 = vmul.f32 %v3773_v39, %v1432_v15  ;;  %v1436_v40 = vpop.permute.xlu0 %1435 }
 0x31f   : > { %v2392_v19 = vmul.f32 %v3770_v48, %v1436_v40  ;;  %v2393_v38 = vmul.f32 %v3773_v39, %v1436_v40 }
 0x320   : > { %2951 = vst [vmem:[%s3815_s4 + $0xf80] sm:$0xff] %v2390_v46  ;;  %2952 = vst.msk [vmem:[%s3815_s4 + $0xf88] sm:$0xff] %vm2455_vm8, %v2391_v36 }
 0x321   : > { %2953 = vst [vmem:[%s3815_s4 + $0xf90] sm:$0xff] %v2392_v19  ;;  %2954 = vst.msk [vmem:[%s3815_s4 + $0xf98] sm:$0xff] %vm2455_vm8, %v2393_v38  ;;  %v1440_v42 = vpop.permute.xlu1 %1439 }
 0x322   : > { %v2394_v60 = vmul.f32 %v3770_v48, %v1440_v42  ;;  %v2395_v63 = vmul.f32 %v3773_v39, %v1440_v42  ;;  %v1444_v49 = vpop.permute.xlu0 %1443 }
 0x323   : > { %v2396_v27 = vmul.f32 %v3770_v48, %v1444_v49  ;;  %v2397_v56 = vmul.f32 %v3773_v39, %v1444_v49 }
 0x324   : > { %2955 = vst [vmem:[%s3815_s4 + $0xfa0] sm:$0xff] %v2394_v60  ;;  %2956 = vst.msk [vmem:[%s3815_s4 + $0xfa8] sm:$0xff] %vm2455_vm8, %v2395_v63 }
 0x325   : > { %2957 = vst [vmem:[%s3815_s4 + $0xfb0] sm:$0xff] %v2396_v27  ;;  %2958 = vst.msk [vmem:[%s3815_s4 + $0xfb8] sm:$0xff] %vm2455_vm8, %v2397_v56  ;;  %v1451_v0 = vpop.permute.xlu1 %1450 }
 0x326   : > { %v2398_v22 = vmul.f32 %v3776_v43, %v1451_v0  ;;  %v2399_v52 = vmul.f32 %v3779_v4, %v1451_v0  ;;  %v1455_v33 = vpop.permute.xlu0 %1454 }
 0x327   : > { %v2400_v48 = vmul.f32 %v3776_v43, %v1455_v33  ;;  %v2401_v39 = vmul.f32 %v3779_v4, %v1455_v33 }
 0x328   : > { %2959 = vst [vmem:[%s3815_s4 + $0xfc0] sm:$0xff] %v2398_v22  ;;  %2960 = vst.msk [vmem:[%s3815_s4 + $0xfc8] sm:$0xff] %vm2455_vm8, %v2399_v52 }
 0x329   : > { %2961 = vst [vmem:[%s3815_s4 + $0xfd0] sm:$0xff] %v2400_v48  ;;  %2962 = vst.msk [vmem:[%s3815_s4 + $0xfd8] sm:$0xff] %vm2455_vm8, %v2401_v39  ;;  %v1459_v30 = vpop.permute.xlu1 %1458 }
 0x32a   : > { %v2402_v28 = vmul.f32 %v3776_v43, %v1459_v30  ;;  %v2403_v1 = vmul.f32 %v3779_v4, %v1459_v30  ;;  %v1463_v20 = vpop.permute.xlu0 %1462 }
 0x32b   : > { %v2404_v55 = vmul.f32 %v3776_v43, %v1463_v20  ;;  %v2405_v6 = vmul.f32 %v3779_v4, %v1463_v20 }
 0x32c   : > { %2963 = vst [vmem:[%s3815_s4 + $0xfe0] sm:$0xff] %v2402_v28  ;;  %2964 = vst.msk [vmem:[%s3815_s4 + $0xfe8] sm:$0xff] %vm2455_vm8, %v2403_v1 }
 0x32d   : > { %2965 = vst [vmem:[%s3815_s4 + $0xff0] sm:$0xff] %v2404_v55  ;;  %2966 = vst.msk [vmem:[%s3815_s4 + $0xff8] sm:$0xff] %vm2455_vm8, %v2405_v6  ;;  %v1467_v8 = vpop.permute.xlu1 %1466 }
 0x32e   : > { %v2406_v61 = vmul.f32 %v3776_v43, %v1467_v8  ;;  %v2407_v10 = vmul.f32 %v3779_v4, %v1467_v8  ;;  %v1471_v5 = vpop.permute.xlu0 %1470 }
 0x32f   : > { %v2408_v13 = vmul.f32 %v3776_v43, %v1471_v5  ;;  %v2409_v11 = vmul.f32 %v3779_v4, %v1471_v5 }
 0x330   : > { %2967 = vst [vmem:[%s3815_s4 + $0x1000] sm:$0xff] %v2406_v61  ;;  %2968 = vst.msk [vmem:[%s3815_s4 + $0x1008] sm:$0xff] %vm2455_vm8, %v2407_v10 }
 0x331   : > { %2969 = vst [vmem:[%s3815_s4 + $0x1010] sm:$0xff] %v2408_v13  ;;  %2970 = vst.msk [vmem:[%s3815_s4 + $0x1018] sm:$0xff] %vm2455_vm8, %v2409_v11  ;;  %v1475_v23 = vpop.permute.xlu1 %1474 }
 0x332   : > { %v2410_v21 = vmul.f32 %v3776_v43, %v1475_v23  ;;  %v2411_v35 = vmul.f32 %v3779_v4, %v1475_v23  ;;  %v1479_v7 = vpop.permute.xlu0 %1478 }
 0x333   : > { %v2412_v58 = vmul.f32 %v3776_v43, %v1479_v7  ;;  %v2413_v45 = vmul.f32 %v3779_v4, %v1479_v7 }
 0x334   : > { %2971 = vst [vmem:[%s3815_s4 + $0x1020] sm:$0xff] %v2410_v21  ;;  %2972 = vst.msk [vmem:[%s3815_s4 + $0x1028] sm:$0xff] %vm2455_vm8, %v2411_v35 }
 0x335   : > { %2973 = vst [vmem:[%s3815_s4 + $0x1030] sm:$0xff] %v2412_v58  ;;  %2974 = vst.msk [vmem:[%s3815_s4 + $0x1038] sm:$0xff] %vm2455_vm8, %v2413_v45  ;;  %v1483_v32 = vpop.permute.xlu1 %1482 }
 0x336   : > { %v2414_v9 = vmul.f32 %v3776_v43, %v1483_v32  ;;  %v2415_v25 = vmul.f32 %v3779_v4, %v1483_v32  ;;  %v1487_v62 = vpop.permute.xlu0 %1486 }
 0x337   : > { %v2416_v50 = vmul.f32 %v3776_v43, %v1487_v62  ;;  %v2417_v24 = vmul.f32 %v3779_v4, %v1487_v62 }
 0x338   : > { %2975 = vst [vmem:[%s3815_s4 + $0x1040] sm:$0xff] %v2414_v9  ;;  %2976 = vst.msk [vmem:[%s3815_s4 + $0x1048] sm:$0xff] %vm2455_vm8, %v2415_v25 }
 0x339   : > { %2977 = vst [vmem:[%s3815_s4 + $0x1050] sm:$0xff] %v2416_v50  ;;  %2978 = vst.msk [vmem:[%s3815_s4 + $0x1058] sm:$0xff] %vm2455_vm8, %v2417_v24  ;;  %v1491_v47 = vpop.permute.xlu1 %1490 }
 0x33a   : > { %v2418_v2 = vmul.f32 %v3776_v43, %v1491_v47  ;;  %v2419_v3 = vmul.f32 %v3779_v4, %v1491_v47  ;;  %v1495_v14 = vpop.permute.xlu0 %1494 }
 0x33b   : > { %v2420_v59 = vmul.f32 %v3776_v43, %v1495_v14  ;;  %v2421_v16 = vmul.f32 %v3779_v4, %v1495_v14 }
 0x33c   : > { %2979 = vst [vmem:[%s3815_s4 + $0x1060] sm:$0xff] %v2418_v2  ;;  %2980 = vst.msk [vmem:[%s3815_s4 + $0x1068] sm:$0xff] %vm2455_vm8, %v2419_v3 }
 0x33d   : > { %2981 = vst [vmem:[%s3815_s4 + $0x1070] sm:$0xff] %v2420_v59  ;;  %2982 = vst.msk [vmem:[%s3815_s4 + $0x1078] sm:$0xff] %vm2455_vm8, %v2421_v16  ;;  %v1499_v12 = vpop.permute.xlu1 %1498 }
 0x33e   : > { %v2422_v26 = vmul.f32 %v3776_v43, %v1499_v12  ;;  %v2423_v37 = vmul.f32 %v3779_v4, %v1499_v12  ;;  %v1503_v31 = vpop.permute.xlu0 %1502 }
 0x33f   : > { %v2424_v17 = vmul.f32 %v3776_v43, %v1503_v31  ;;  %v2425_v34 = vmul.f32 %v3779_v4, %v1503_v31 }
 0x340   : > { %2983 = vst [vmem:[%s3815_s4 + $0x1080] sm:$0xff] %v2422_v26  ;;  %2984 = vst.msk [vmem:[%s3815_s4 + $0x1088] sm:$0xff] %vm2455_vm8, %v2423_v37 }
 0x341   : > { %2985 = vst [vmem:[%s3815_s4 + $0x1090] sm:$0xff] %v2424_v17  ;;  %2986 = vst.msk [vmem:[%s3815_s4 + $0x1098] sm:$0xff] %vm2455_vm8, %v2425_v34  ;;  %v1510_v18 = vpop.permute.xlu1 %1509 }
 0x342   : > { %v2426_v41 = vmul.f32 %v3783_v44, %v1510_v18  ;;  %v2427_v29 = vmul.f32 %v3786_v51, %v1510_v18  ;;  %v1514_v53 = vpop.permute.xlu0 %1513 }
 0x343   : > { %v2428_v43 = vmul.f32 %v3783_v44, %v1514_v53  ;;  %v2429_v4 = vmul.f32 %v3786_v51, %v1514_v53 }
 0x344   : > { %2987 = vst [vmem:[%s3815_s4 + $0x10a0] sm:$0xff] %v2426_v41  ;;  %2988 = vst.msk [vmem:[%s3815_s4 + $0x10a8] sm:$0xff] %vm2455_vm8, %v2427_v29 }
 0x345   : > { %2989 = vst [vmem:[%s3815_s4 + $0x10b0] sm:$0xff] %v2428_v43  ;;  %2990 = vst.msk [vmem:[%s3815_s4 + $0x10b8] sm:$0xff] %vm2455_vm8, %v2429_v4  ;;  %v1518_v54 = vpop.permute.xlu1 %1517 }
 0x346   : > { %v2430_v57 = vmul.f32 %v3783_v44, %v1518_v54  ;;  %v2431_v15 = vmul.f32 %v3786_v51, %v1518_v54  ;;  %v1522_v46 = vpop.permute.xlu0 %1521 }
 0x347   : > { %v2432_v36 = vmul.f32 %v3783_v44, %v1522_v46  ;;  %v2433_v40 = vmul.f32 %v3786_v51, %v1522_v46 }
 0x348   : > { %2991 = vst [vmem:[%s3815_s4 + $0x10c0] sm:$0xff] %v2430_v57  ;;  %2992 = vst.msk [vmem:[%s3815_s4 + $0x10c8] sm:$0xff] %vm2455_vm8, %v2431_v15 }
 0x349   : > { %2993 = vst [vmem:[%s3815_s4 + $0x10d0] sm:$0xff] %v2432_v36  ;;  %2994 = vst.msk [vmem:[%s3815_s4 + $0x10d8] sm:$0xff] %vm2455_vm8, %v2433_v40  ;;  %v1526_v19 = vpop.permute.xlu1 %1525 }
 0x34a   : > { %v2434_v38 = vmul.f32 %v3783_v44, %v1526_v19  ;;  %v2435_v42 = vmul.f32 %v3786_v51, %v1526_v19  ;;  %v1530_v60 = vpop.permute.xlu0 %1529 }
 0x34b   : > { %v2436_v63 = vmul.f32 %v3783_v44, %v1530_v60  ;;  %v2437_v49 = vmul.f32 %v3786_v51, %v1530_v60 }
 0x34c   : > { %2995 = vst [vmem:[%s3815_s4 + $0x10e0] sm:$0xff] %v2434_v38  ;;  %2996 = vst.msk [vmem:[%s3815_s4 + $0x10e8] sm:$0xff] %vm2455_vm8, %v2435_v42 }
 0x34d   : > { %2997 = vst [vmem:[%s3815_s4 + $0x10f0] sm:$0xff] %v2436_v63  ;;  %2998 = vst.msk [vmem:[%s3815_s4 + $0x10f8] sm:$0xff] %vm2455_vm8, %v2437_v49  ;;  %v1534_v27 = vpop.permute.xlu1 %1533 }
 0x34e   : > { %v2438_v56 = vmul.f32 %v3783_v44, %v1534_v27  ;;  %v2439_v0 = vmul.f32 %v3786_v51, %v1534_v27  ;;  %v1538_v22 = vpop.permute.xlu0 %1537 }
 0x34f   : > { %v2440_v52 = vmul.f32 %v3783_v44, %v1538_v22  ;;  %v2441_v33 = vmul.f32 %v3786_v51, %v1538_v22 }
 0x350   : > { %2999 = vst [vmem:[%s3815_s4 + $0x1100] sm:$0xff] %v2438_v56  ;;  %3000 = vst.msk [vmem:[%s3815_s4 + $0x1108] sm:$0xff] %vm2455_vm8, %v2439_v0 }
 0x351   : > { %3001 = vst [vmem:[%s3815_s4 + $0x1110] sm:$0xff] %v2440_v52  ;;  %3002 = vst.msk [vmem:[%s3815_s4 + $0x1118] sm:$0xff] %vm2455_vm8, %v2441_v33  ;;  %v1542_v48 = vpop.permute.xlu1 %1541 }
 0x352   : > { %v2442_v39 = vmul.f32 %v3783_v44, %v1542_v48  ;;  %v2443_v30 = vmul.f32 %v3786_v51, %v1542_v48  ;;  %v1546_v28 = vpop.permute.xlu0 %1545 }
 0x353   : > { %v2444_v1 = vmul.f32 %v3783_v44, %v1546_v28  ;;  %v2445_v20 = vmul.f32 %v3786_v51, %v1546_v28 }
 0x354   : > { %3003 = vst [vmem:[%s3815_s4 + $0x1120] sm:$0xff] %v2442_v39  ;;  %3004 = vst.msk [vmem:[%s3815_s4 + $0x1128] sm:$0xff] %vm2455_vm8, %v2443_v30 }
 0x355   : > { %3005 = vst [vmem:[%s3815_s4 + $0x1130] sm:$0xff] %v2444_v1  ;;  %3006 = vst.msk [vmem:[%s3815_s4 + $0x1138] sm:$0xff] %vm2455_vm8, %v2445_v20  ;;  %v1550_v55 = vpop.permute.xlu1 %1549 }
 0x356   : > { %v2446_v6 = vmul.f32 %v3783_v44, %v1550_v55  ;;  %v2447_v8 = vmul.f32 %v3786_v51, %v1550_v55  ;;  %v1554_v61 = vpop.permute.xlu0 %1553 }
 0x357   : > { %v2448_v10 = vmul.f32 %v3783_v44, %v1554_v61  ;;  %v2449_v5 = vmul.f32 %v3786_v51, %v1554_v61 }
 0x358   : > { %3007 = vst [vmem:[%s3815_s4 + $0x1140] sm:$0xff] %v2446_v6  ;;  %3008 = vst.msk [vmem:[%s3815_s4 + $0x1148] sm:$0xff] %vm2455_vm8, %v2447_v8 }
 0x359   : > { %3009 = vst [vmem:[%s3815_s4 + $0x1150] sm:$0xff] %v2448_v10  ;;  %3010 = vst.msk [vmem:[%s3815_s4 + $0x1158] sm:$0xff] %vm2455_vm8, %v2449_v5  ;;  %v1558_v13 = vpop.permute.xlu1 %1557 }
 0x35a   : > { %v2450_v11 = vmul.f32 %v3783_v44, %v1558_v13  ;;  %v2451_v23 = vmul.f32 %v3786_v51, %v1558_v13  ;;  %v1562_v21 = vpop.permute.xlu0 %1561 }
 0x35b   : > { %v2452_v35 = vmul.f32 %v3783_v44, %v1562_v21  ;;  %v2453_v7 = vmul.f32 %v3786_v51, %v1562_v21 }
 0x35c   : > { %3011 = vst [vmem:[%s3815_s4 + $0x1160] sm:$0xff] %v2450_v11  ;;  %3012 = vst.msk [vmem:[%s3815_s4 + $0x1168] sm:$0xff] %vm2455_vm8, %v2451_v23 }
 0x35d   : > { %3013 = vst [vmem:[%s3815_s4 + $0x1170] sm:$0xff] %v2452_v35  ;;  %3014 = vst.msk [vmem:[%s3815_s4 + $0x1178] sm:$0xff] %vm2455_vm8, %v2453_v7 }
 0x35e   : > { %s3144_s14 = smul.u32 28, %s3334_s9  ;;  %s3042_s15 = sshll.u32 %s3815_s4, 4  ;;  %s3043_s15 = int_to_ptr.vmem [resolvable:$true] %s3042_s15 }
 0x35f   : > { %s3159_s18 = smul.u32 1120, %s3338_s10  ;;  %s3354_s22 = smov 3584  }
 0x360   : > { %3160 = sst [smem:[#allocation5]] (%p3422_p3), %s3354_s22  ;;  %s3355_s25 = smov 7168  }
 0x361   : > { %s3029_s21 = sadd.s32 %s3159_s18, %s3144_s14  ;;  %3161 = sst [smem:[#allocation5 + $0x1]] (%p3422_p3), %s3355_s25 }
 0x362   : > { %s3141_s23 = sshll.u32 %s3029_s21, 7  ;;  %s3356_s29 = smov 14  }
 0x363   : > { %s3031_s28 = scalar_lea.hbm %s5485_s1, %s3141_s23  ;;  %3162 = sst [smem:[#allocation5 + $0x2]] (%p3422_p3), %s3356_s29 }
 0x364   : > { %s3357_s9 = smov 256   ;;  %s3358_s10 = smov 16  }
 0x365   : > { %3163 = sst [smem:[#allocation5 + $0x3]] (%p3422_p3), %s3357_s9  ;;  %s3359_s30 = smov 131072  }
 0x366   : > { %3164 = sst [smem:[#allocation5 + $0x4]] (%p3422_p3), %s3357_s9  ;;  %s3360_s2 = smov 0  }
 0x367   : > { %3165 = sst [smem:[#allocation5 + $0x5]] (%p3422_p3), %s3358_s10 }
 0x368   : > { %3166 = dma.general (%p3422_p3), %s3043_s15, 71680, %s3031_s28, %s3016_s5, %s3359_s30, [#allocation5], %s3360_s2, 0  }
 0x369 PF: > { %p3172_p13 = scmp.ge.s32.totalorder %s3350_s13, 2  ;;  %s3070_s3 = sand.u32 1, %s3322_s6  }
 0x36a   : > { %s3071_s4 = scalar_lea.sflag [#allocation3], %s3070_s3 }
 0x36b   : > { %p3169_p0 = pnand %p3172_p13, %p3431_p8 }
 0x36d   : > { %p3170_p1 = pneg %p3169_p0 }
 0x36f   : > { %3317 = dma.done.wait (%p3170_p1), %s3071_s4, 71680  }
 0x370   : > { %3319 = vsyncadd (%p3170_p1), %s3071_s4, 4294895616  ;;  %s14_s13 = sadd.s32 1, %s3350_s13   ;;  %s5509_s6 = smov %s3326_s7 }
 0x371   : > { %p11_p2 = scmp.ge.s32.totalorder %s14_s13, 6   ;;  %s5510_s7 = smov %s3330_s8 }
 0x372   : > { %s5511_s8 = smov %s3440_s24  ;;  %s5512_s9 = smov %s3342_s11 }
 0x373   : > { %s5513_s10 = smov %s3346_s12  ;;  %s5514_s11 = smov %s5517_s16 }
 0x374   : > { %s5515_s12 = smov %s5521_s17  ;;  %13 = sbr.rel (!%p11_p2) target bundleno = 5 (0x5), region = 65 }
 0x379   :  { %3076 = vsyncpa [#allocation3], 1 }
 0x37a   :  { %3078 = vsyncpa [#allocation3 + $0x1], 1 }

</bundles_post_ra>
